<compile_context>
chip_gen: v5e
topology: v5e:2x2
jax: 0.10.0
libtpu: 0.0.40
codegen_flags: <defaults>
</compile_context>

<pallas_src>
import functools

import jax
import jax.numpy as jnp
import numpy as np
from jax import lax
from jax.experimental import pallas as pl
from jax.experimental.pallas import tpu as pltpu


def _l2_normalize(v):
    nrm = jnp.sqrt(jnp.sum(v * v, axis=1, keepdims=True))
    return v / jnp.maximum(nrm, 1e-12)


def _dygraph_edgeconv_kernel(xq_ref, xk_ref, wid_ref, wd_ref, b_ref,
                             o_ref, oh_ref, *, k, idx_bits):
    """One (batch, query-tile) grid step.

    xq_ref : [1, tq, C]   query node features (channels last)
    xk_ref : [1, N,  C]   all node features of this batch element (keys)
    wid_ref: [C, Coutp]   (W_i - W_d), acts on x_i
    wd_ref : [C, Coutp]   W_d, acts on x_j
    b_ref  : [1, Coutp]   bias
    o_ref  : [1, tq, Coutp]
    oh_ref : VMEM scratch [k, tq, N], one-hot neighbour selectors
    """
    xq = xq_ref[0]                                   # [tq, C] f32
    xk = xk_ref[0]                                   # [N,  C] f32
    tq, n = xq.shape[0], xk.shape[0]

    # ---- kNN ranking score (rank-only): rows are unit-norm, so
    # ||xi - xj||^2 = 2 - 2*<xi,xj>; ranking by (1 - inner) is identical. ----
    qn = _l2_normalize(xq)
    kn = _l2_normalize(xk)
    inner = lax.dot_general(qn, kn, (((1,), (1,)), ((), ())),
                            preferred_element_type=jnp.float32)   # [tq, N]
    score = jnp.maximum(1.0 - inner, 0.0)                          # in [0, 2]

    # ---- fused min+argmin via an order-preserving packed int32 key ---------
    # high (31 - idx_bits) bits: quantized score; low idx_bits bits: column.
    val_bits = 31 - idx_bits
    low_mask = (1 << idx_bits) - 1
    scale = float(1 << (val_bits - 1))              # score in [0,2] -> [0, 2^val_bits)
    qval = jnp.minimum((score * scale).astype(jnp.int32),
                       jnp.int32((1 << val_bits) - 1))
    col = lax.broadcasted_iota(jnp.int32, (tq, n), 1)
    key0 = qval * jnp.int32(1 << idx_bits) + col                   # [tq, N] int32
    int_max = jnp.int32(2**31 - 1)

    def select_one(i, key):
        kmin = jnp.min(key, axis=1, keepdims=True)                 # one XLU reduce
        hit = col == jnp.bitwise_and(kmin, jnp.int32(low_mask))    # [tq, N]
        oh_ref[i] = hit.astype(jnp.float32)
        return jnp.where(hit, int_max, key)                        # drop chosen neighbour

    lax.fori_loop(0, k, select_one, key0, unroll=True)

    # ---- EdgeConv: max_j relu(x_i (Wi - Wd) + x_j Wd + b)
    #             == relu(base + max_j x_j Wd)   (relu / base hoisted) -------
    base = jnp.dot(xq, wid_ref[...], preferred_element_type=jnp.float32) + b_ref[...]
    xwd = jnp.dot(xk, wd_ref[...], preferred_element_type=jnp.float32)        # [N, Coutp]
    cp = xwd.shape[-1]
    oh = oh_ref[...].reshape(k * tq, n)                                        # stacked one-hots
    neigh = jnp.dot(oh, xwd, preferred_element_type=jnp.float32)               # ONE MXU matmul
    neigh_max = jnp.max(neigh.reshape(k, tq, cp), axis=0)                      # [tq, Coutp]
    o_ref[0] = jnp.maximum(base + neigh_max, 0.0)


def _pick_query_tile(n):
    for t in (128, 64, 32, 16, 8):
        if n % t == 0:
            return t
    return n        # fall back to a single full-N tile


def dygraph_conv3d(x_ncdhw, weight, bias, k=9):
    """x_ncdhw: [B, C, D, H, W]; weight: [Cout, 2C]; bias: [Cout] -> [B, Cout, D, H, W]."""
    B, C, D, H, W = x_ncdhw.shape
    N = D * H * W
    Cout = weight.shape[0]
    assert k <= N, "need at least k graph nodes"

    # channels-last node features
    x_nodes = x_ncdhw.reshape(B, C, N).transpose(0, 2, 1).astype(jnp.float32)  # [B, N, C]

    # split the 1x1 conv weight:
    #   out = x_i @ Wi + (x_j - x_i) @ Wd + b = x_i @ (Wi - Wd) + x_j @ Wd + b
    wi = weight[:, :C].T.astype(jnp.float32)       # [C, Cout]
    wd = weight[:, C:].T.astype(jnp.float32)       # [C, Cout]
    wid = wi - wd

    # pad output channels to a lane-dense multiple of 128 (unmasked stores)
    Coutp = max(128, ((Cout + 127) // 128) * 128)
    pad = Coutp - Cout
    wid_p = jnp.pad(wid, ((0, 0), (0, pad)))
    wd_p = jnp.pad(wd, ((0, 0), (0, pad)))
    b_p = jnp.pad(bias.astype(jnp.float32).reshape(1, Cout), ((0, 0), (0, pad)))

    tq = _pick_query_tile(N)
    nq = N // tq
    idx_bits = max(1, int(N - 1).bit_length())     # bits needed for a column index

    kernel = functools.partial(_dygraph_edgeconv_kernel, k=k, idx_bits=idx_bits)
    out_p = pl.pallas_call(
        kernel,
        out_shape=jax.ShapeDtypeStruct((B, N, Coutp), jnp.float32),
        grid_spec=pltpu.PrefetchScalarGridSpec(
            num_scalar_prefetch=0,
            grid=(B, nq),
            in_specs=[
                pl.BlockSpec((1, tq, C), lambda b, q: (b, q, 0)),   # query rows
                pl.BlockSpec((1, N, C), lambda b, q: (b, 0, 0)),    # all key rows
                pl.BlockSpec((C, Coutp), lambda b, q: (0, 0)),      # Wi - Wd
                pl.BlockSpec((C, Coutp), lambda b, q: (0, 0)),      # Wd
                pl.BlockSpec((1, Coutp), lambda b, q: (0, 0)),      # bias
            ],
            out_specs=pl.BlockSpec((1, tq, Coutp), lambda b, q: (b, q, 0)),
            scratch_shapes=[pltpu.VMEM((k, tq, N), jnp.float32)],   # one-hot stack
        ),
        compiler_params=pltpu.CompilerParams(
            dimension_semantics=("parallel", "parallel"),
            vmem_limit_bytes=32 * 1024 * 1024,
        ),
    )(x_nodes, x_nodes, wid_p, wd_p, b_p)

    out = out_p[:, :, :Cout]                                        # drop lane padding
    return out.transpose(0, 2, 1).reshape(B, Cout, D, H, W)


def reference_dygraph_conv3d(x, weight, bias, k):
    """Pure-JAX reference of the same forward (for a correctness check)."""
    B, C, D, H, W = x.shape
    N = D * H * W
    Cout = weight.shape[0]
    xf = x.reshape(B, C, N).transpose(0, 2, 1).astype(jnp.float32)   # [B, N, C]

    nrm = jnp.sqrt(jnp.sum(xf * xf, axis=-1, keepdims=True))
    xn = xf / jnp.maximum(nrm, 1e-12)
    inner = jnp.einsum('bnc,bmc->bnm', xn, xn, precision=lax.Precision.HIGHEST)
    xsq = jnp.sum(xn * xn, axis=-1, keepdims=True)
    dist = xsq + jnp.swapaxes(xsq, 1, 2) - 2.0 * inner
    _, nn_idx = lax.top_k(-dist, k)                                  # [B, N, k]

    x_j = jax.vmap(lambda xb, ib: xb[ib])(xf, nn_idx)                # [B, N, k, C]
    x_i = xf[:, :, None, :]
    feat = jnp.concatenate([jnp.broadcast_to(x_i, x_j.shape), x_j - x_i], axis=-1)
    out = jnp.einsum('bnkf,of->bnko', feat, weight.astype(jnp.float32),
                     precision=lax.Precision.HIGHEST) + bias.astype(jnp.float32)
    out = jnp.maximum(out, 0.0)
    out = jnp.max(out, axis=2)                                       # [B, N, Cout]
    return out.transpose(0, 2, 1).reshape(B, Cout, D, H, W)


if __name__ == "__main__":
    B, C, D, H, W = 2, 16, 4, 4, 4          # N = 64 graph nodes
    Cout, K = 32, 9                         # Grapher3D uses Cout = 2*C

    key = jax.random.PRNGKey(0)
    kx, kw, kb = jax.random.split(key, 3)
    x = jax.random.normal(kx, (B, C, D, H, W), dtype=jnp.float32)
    # deterministic parameters for BasicConv([2*C, Cout], bias=True) 1x1 conv
    weight = 0.1 * jax.random.normal(kw, (Cout, 2 * C), dtype=jnp.float32)
    bias = 0.1 * jax.random.normal(kb, (Cout,), dtype=jnp.float32)

    out = dygraph_conv3d(x, weight, bias, k=K)
    out = jax.block_until_ready(out)

    assert out.shape == (B, Cout, D, H, W), out.shape
    ref = reference_dygraph_conv3d(x, weight, bias, K)
    np.testing.assert_allclose(np.asarray(out), np.asarray(ref), rtol=2e-3, atol=2e-3)

    print("KERNEL_OK")
</pallas_src>

<mosaic_0001>
module attributes {stable_mosaic.version = 11 : i64} {
  func.func @_dygraph_edgeconv_kernel(%arg0: i32, %arg1: i32, %arg2: memref<1x64x16xf32, #tpu.memory_space<vmem>>, %arg3: memref<1x64x16xf32, #tpu.memory_space<vmem>>, %arg4: memref<16x128xf32, #tpu.memory_space<vmem>>, %arg5: memref<16x128xf32, #tpu.memory_space<vmem>>, %arg6: memref<1x128xf32, #tpu.memory_space<vmem>>, %arg7: memref<1x64x128xf32, #tpu.memory_space<vmem>>, %arg8: memref<9x64x64xf32, #tpu.memory_space<vmem>>) attributes {dimension_semantics = [#tpu.dimension_semantics<parallel>, #tpu.dimension_semantics<parallel>], iteration_bounds = array<i64: 2, 1>, scalar_prefetch = 0 : i64, scratch_operands = 1 : i64, tpu.core_type = #tpu.core_type<tc>, window_params = [{transform_indices = @transform_0, window_bounds = array<i64: 1, 64, 16>}, {transform_indices = @transform_1, window_bounds = array<i64: 1, 64, 16>}, {pipeline_mode = #tpu.pipeline_mode<synchronous>, transform_indices = @transform_2, window_bounds = array<i64: 16, 128>}, {pipeline_mode = #tpu.pipeline_mode<synchronous>, transform_indices = @transform_3, window_bounds = array<i64: 16, 128>}, {pipeline_mode = #tpu.pipeline_mode<synchronous>, transform_indices = @transform_4, window_bounds = array<i64: 1, 128>}, {transform_indices = @transform_5, window_bounds = array<i64: 1, 64, 128>}]} {
    %c0 = arith.constant 0 : index
    %c0_0 = arith.constant 0 : index
    %c0_1 = arith.constant 0 : index
    %0 = vector.load %arg2[%c0, %c0_0, %c0_1] : memref<1x64x16xf32, #tpu.memory_space<vmem>>, vector<1x64x16xf32>
    %1 = vector.shape_cast %0 : vector<1x64x16xf32> to vector<64x16xf32>
    %c0_2 = arith.constant 0 : index
    %c0_3 = arith.constant 0 : index
    %c0_4 = arith.constant 0 : index
    %2 = vector.load %arg3[%c0_2, %c0_3, %c0_4] : memref<1x64x16xf32, #tpu.memory_space<vmem>>, vector<1x64x16xf32>
    %3 = vector.shape_cast %2 : vector<1x64x16xf32> to vector<64x16xf32>
    %4 = arith.mulf %1, %1 : vector<64x16xf32>
    %cst = arith.constant dense<0.000000e+00> : vector<64xf32>
    %5 = vector.multi_reduction <add>, %4, %cst [1] : vector<64x16xf32> to vector<64xf32>
    %6 = vector.shape_cast %5 : vector<64xf32> to vector<64x1xf32>
    %7 = math.sqrt %6 : vector<64x1xf32>
    %cst_5 = arith.constant 9.99999996E-13 : f32
    %8 = vector.broadcast %cst_5 : f32 to vector<64x1xf32>
    %9 = arith.maximumf %7, %8 : vector<64x1xf32>
    %10 = vector.broadcast %9 : vector<64x1xf32> to vector<64x16xf32>
    %11 = arith.divf %1, %10 : vector<64x16xf32>
    %12 = arith.mulf %3, %3 : vector<64x16xf32>
    %cst_6 = arith.constant dense<0.000000e+00> : vector<64xf32>
    %13 = vector.multi_reduction <add>, %12, %cst_6 [1] : vector<64x16xf32> to vector<64xf32>
    %14 = vector.shape_cast %13 : vector<64xf32> to vector<64x1xf32>
    %15 = math.sqrt %14 : vector<64x1xf32>
    %cst_7 = arith.constant 9.99999996E-13 : f32
    %16 = vector.broadcast %cst_7 : f32 to vector<64x1xf32>
    %17 = arith.maximumf %15, %16 : vector<64x1xf32>
    %18 = vector.broadcast %17 : vector<64x1xf32> to vector<64x16xf32>
    %19 = arith.divf %3, %18 : vector<64x16xf32>
    %cst_8 = arith.constant dense<0.000000e+00> : vector<64x64xf32>
    %20 = tpu.matmul %11, %19, %cst_8 {dimension_numbers = #tpu.dot_dimension_numbers<[1], [1], [0], [0], [0, 0, 1, 0], [], []>} : vector<64x16xf32>, vector<64x16xf32>, vector<64x64xf32> -> vector<64x64xf32>
    %cst_9 = arith.constant 1.000000e+00 : f32
    %21 = vector.broadcast %cst_9 : f32 to vector<64x64xf32>
    %22 = arith.subf %21, %20 : vector<64x64xf32>
    %cst_10 = arith.constant 0.000000e+00 : f32
    %23 = vector.broadcast %cst_10 : f32 to vector<64x64xf32>
    %24 = arith.maximumf %22, %23 : vector<64x64xf32>
    %cst_11 = arith.constant 0x4B800000 : f32
    %25 = vector.broadcast %cst_11 : f32 to vector<64x64xf32>
    %26 = arith.mulf %24, %25 : vector<64x64xf32>
    %27 = arith.fptosi %26 : vector<64x64xf32> to vector<64x64xi32>
    %c33554431_i32 = arith.constant 33554431 : i32
    %28 = vector.broadcast %c33554431_i32 : i32 to vector<64x64xi32>
    %29 = arith.minsi %27, %28 : vector<64x64xi32>
    %30 = tpu.iota {dimensions = array<i32: 1>} : vector<64x64xi32>
    %c64_i32 = arith.constant 64 : i32
    %31 = vector.broadcast %c64_i32 : i32 to vector<64x64xi32>
    %32 = arith.muli %29, %31 : vector<64x64xi32>
    %33 = arith.addi %32, %30 : vector<64x64xi32>
    %c2147483647_i32 = arith.constant 2147483647 : i32
    %c0_i32 = arith.constant 0 : i32
    %cst_12 = arith.constant dense<2147483647> : vector<64xi32>
    %34 = vector.multi_reduction <minsi>, %33, %cst_12 [1] : vector<64x64xi32> to vector<64xi32>
    %35 = vector.shape_cast %34 : vector<64xi32> to vector<64x1xi32>
    %c63_i32 = arith.constant 63 : i32
    %36 = vector.broadcast %c63_i32 : i32 to vector<64x1xi32>
    %37 = arith.andi %35, %36 : vector<64x1xi32>
    %38 = vector.broadcast %37 : vector<64x1xi32> to vector<64x64xi32>
    %39 = arith.cmpi eq, %30, %38 : vector<64x64xi32>
    %40 = arith.extui %39 : vector<64x64xi1> to vector<64x64xi32>
    %41 = arith.sitofp %40 : vector<64x64xi32> to vector<64x64xf32>
    %42 = arith.index_cast %c0_i32 : i32 to index
    %c0_13 = arith.constant 0 : index
    %c0_14 = arith.constant 0 : index
    %43 = vector.load %arg8[%42, %c0_13, %c0_14] : memref<9x64x64xf32, #tpu.memory_space<vmem>>, vector<1x64x64xf32>
    %44 = vector.shape_cast %43 : vector<1x64x64xf32> to vector<64x64xf32>
    %45 = vector.shape_cast %41 : vector<64x64xf32> to vector<1x64x64xf32>
    tpu.vector_store %arg8[%42, %c0_13, %c0_14], %45 {strides = array<i32>} : memref<9x64x64xf32, #tpu.memory_space<vmem>>, vector<1x64x64xf32>,
    %46 = vector.broadcast %c2147483647_i32 : i32 to vector<64x64xi32>
    %47 = arith.select %39, %46, %33 : vector<64x64xi1>, vector<64x64xi32>
    %c1_i32 = arith.constant 1 : i32
    %cst_15 = arith.constant dense<2147483647> : vector<64xi32>
    %48 = vector.multi_reduction <minsi>, %47, %cst_15 [1] : vector<64x64xi32> to vector<64xi32>
    %49 = vector.shape_cast %48 : vector<64xi32> to vector<64x1xi32>
    %c63_i32_16 = arith.constant 63 : i32
    %50 = vector.broadcast %c63_i32_16 : i32 to vector<64x1xi32>
    %51 = arith.andi %49, %50 : vector<64x1xi32>
    %52 = vector.broadcast %51 : vector<64x1xi32> to vector<64x64xi32>
    %53 = arith.cmpi eq, %30, %52 : vector<64x64xi32>
    %54 = arith.extui %53 : vector<64x64xi1> to vector<64x64xi32>
    %55 = arith.sitofp %54 : vector<64x64xi32> to vector<64x64xf32>
    %56 = arith.index_cast %c1_i32 : i32 to index
    %c0_17 = arith.constant 0 : index
    %c0_18 = arith.constant 0 : index
    %57 = vector.load %arg8[%56, %c0_17, %c0_18] : memref<9x64x64xf32, #tpu.memory_space<vmem>>, vector<1x64x64xf32>
    %58 = vector.shape_cast %57 : vector<1x64x64xf32> to vector<64x64xf32>
    %59 = vector.shape_cast %55 : vector<64x64xf32> to vector<1x64x64xf32>
    tpu.vector_store %arg8[%56, %c0_17, %c0_18], %59 {strides = array<i32>} : memref<9x64x64xf32, #tpu.memory_space<vmem>>, vector<1x64x64xf32>,
    %60 = vector.broadcast %c2147483647_i32 : i32 to vector<64x64xi32>
    %61 = arith.select %53, %60, %47 : vector<64x64xi1>, vector<64x64xi32>
    %c2_i32 = arith.constant 2 : i32
    %cst_19 = arith.constant dense<2147483647> : vector<64xi32>
    %62 = vector.multi_reduction <minsi>, %61, %cst_19 [1] : vector<64x64xi32> to vector<64xi32>
    %63 = vector.shape_cast %62 : vector<64xi32> to vector<64x1xi32>
    %c63_i32_20 = arith.constant 63 : i32
    %64 = vector.broadcast %c63_i32_20 : i32 to vector<64x1xi32>
    %65 = arith.andi %63, %64 : vector<64x1xi32>
    %66 = vector.broadcast %65 : vector<64x1xi32> to vector<64x64xi32>
    %67 = arith.cmpi eq, %30, %66 : vector<64x64xi32>
    %68 = arith.extui %67 : vector<64x64xi1> to vector<64x64xi32>
    %69 = arith.sitofp %68 : vector<64x64xi32> to vector<64x64xf32>
    %70 = arith.index_cast %c2_i32 : i32 to index
    %c0_21 = arith.constant 0 : index
    %c0_22 = arith.constant 0 : index
    %71 = vector.load %arg8[%70, %c0_21, %c0_22] : memref<9x64x64xf32, #tpu.memory_space<vmem>>, vector<1x64x64xf32>
    %72 = vector.shape_cast %71 : vector<1x64x64xf32> to vector<64x64xf32>
    %73 = vector.shape_cast %69 : vector<64x64xf32> to vector<1x64x64xf32>
    tpu.vector_store %arg8[%70, %c0_21, %c0_22], %73 {strides = array<i32>} : memref<9x64x64xf32, #tpu.memory_space<vmem>>, vector<1x64x64xf32>,
    %74 = vector.broadcast %c2147483647_i32 : i32 to vector<64x64xi32>
    %75 = arith.select %67, %74, %61 : vector<64x64xi1>, vector<64x64xi32>
    %c3_i32 = arith.constant 3 : i32
    %cst_23 = arith.constant dense<2147483647> : vector<64xi32>
    %76 = vector.multi_reduction <minsi>, %75, %cst_23 [1] : vector<64x64xi32> to vector<64xi32>
    %77 = vector.shape_cast %76 : vector<64xi32> to vector<64x1xi32>
    %c63_i32_24 = arith.constant 63 : i32
    %78 = vector.broadcast %c63_i32_24 : i32 to vector<64x1xi32>
    %79 = arith.andi %77, %78 : vector<64x1xi32>
    %80 = vector.broadcast %79 : vector<64x1xi32> to vector<64x64xi32>
    %81 = arith.cmpi eq, %30, %80 : vector<64x64xi32>
    %82 = arith.extui %81 : vector<64x64xi1> to vector<64x64xi32>
    %83 = arith.sitofp %82 : vector<64x64xi32> to vector<64x64xf32>
    %84 = arith.index_cast %c3_i32 : i32 to index
    %c0_25 = arith.constant 0 : index
    %c0_26 = arith.constant 0 : index
    %85 = vector.load %arg8[%84, %c0_25, %c0_26] : memref<9x64x64xf32, #tpu.memory_space<vmem>>, vector<1x64x64xf32>
    %86 = vector.shape_cast %85 : vector<1x64x64xf32> to vector<64x64xf32>
    %87 = vector.shape_cast %83 : vector<64x64xf32> to vector<1x64x64xf32>
    tpu.vector_store %arg8[%84, %c0_25, %c0_26], %87 {strides = array<i32>} : memref<9x64x64xf32, #tpu.memory_space<vmem>>, vector<1x64x64xf32>,
    %88 = vector.broadcast %c2147483647_i32 : i32 to vector<64x64xi32>
    %89 = arith.select %81, %88, %75 : vector<64x64xi1>, vector<64x64xi32>
    %c4_i32 = arith.constant 4 : i32
    %cst_27 = arith.constant dense<2147483647> : vector<64xi32>
    %90 = vector.multi_reduction <minsi>, %89, %cst_27 [1] : vector<64x64xi32> to vector<64xi32>
    %91 = vector.shape_cast %90 : vector<64xi32> to vector<64x1xi32>
    %c63_i32_28 = arith.constant 63 : i32
    %92 = vector.broadcast %c63_i32_28 : i32 to vector<64x1xi32>
    %93 = arith.andi %91, %92 : vector<64x1xi32>
    %94 = vector.broadcast %93 : vector<64x1xi32> to vector<64x64xi32>
    %95 = arith.cmpi eq, %30, %94 : vector<64x64xi32>
    %96 = arith.extui %95 : vector<64x64xi1> to vector<64x64xi32>
    %97 = arith.sitofp %96 : vector<64x64xi32> to vector<64x64xf32>
    %98 = arith.index_cast %c4_i32 : i32 to index
    %c0_29 = arith.constant 0 : index
    %c0_30 = arith.constant 0 : index
    %99 = vector.load %arg8[%98, %c0_29, %c0_30] : memref<9x64x64xf32, #tpu.memory_space<vmem>>, vector<1x64x64xf32>
    %100 = vector.shape_cast %99 : vector<1x64x64xf32> to vector<64x64xf32>
    %101 = vector.shape_cast %97 : vector<64x64xf32> to vector<1x64x64xf32>
    tpu.vector_store %arg8[%98, %c0_29, %c0_30], %101 {strides = array<i32>} : memref<9x64x64xf32, #tpu.memory_space<vmem>>, vector<1x64x64xf32>,
    %102 = vector.broadcast %c2147483647_i32 : i32 to vector<64x64xi32>
    %103 = arith.select %95, %102, %89 : vector<64x64xi1>, vector<64x64xi32>
    %c5_i32 = arith.constant 5 : i32
    %cst_31 = arith.constant dense<2147483647> : vector<64xi32>
    %104 = vector.multi_reduction <minsi>, %103, %cst_31 [1] : vector<64x64xi32> to vector<64xi32>
    %105 = vector.shape_cast %104 : vector<64xi32> to vector<64x1xi32>
    %c63_i32_32 = arith.constant 63 : i32
    %106 = vector.broadcast %c63_i32_32 : i32 to vector<64x1xi32>
    %107 = arith.andi %105, %106 : vector<64x1xi32>
    %108 = vector.broadcast %107 : vector<64x1xi32> to vector<64x64xi32>
    %109 = arith.cmpi eq, %30, %108 : vector<64x64xi32>
    %110 = arith.extui %109 : vector<64x64xi1> to vector<64x64xi32>
    %111 = arith.sitofp %110 : vector<64x64xi32> to vector<64x64xf32>
    %112 = arith.index_cast %c5_i32 : i32 to index
    %c0_33 = arith.constant 0 : index
    %c0_34 = arith.constant 0 : index
    %113 = vector.load %arg8[%112, %c0_33, %c0_34] : memref<9x64x64xf32, #tpu.memory_space<vmem>>, vector<1x64x64xf32>
    %114 = vector.shape_cast %113 : vector<1x64x64xf32> to vector<64x64xf32>
    %115 = vector.shape_cast %111 : vector<64x64xf32> to vector<1x64x64xf32>
    tpu.vector_store %arg8[%112, %c0_33, %c0_34], %115 {strides = array<i32>} : memref<9x64x64xf32, #tpu.memory_space<vmem>>, vector<1x64x64xf32>,
    %116 = vector.broadcast %c2147483647_i32 : i32 to vector<64x64xi32>
    %117 = arith.select %109, %116, %103 : vector<64x64xi1>, vector<64x64xi32>
    %c6_i32 = arith.constant 6 : i32
    %cst_35 = arith.constant dense<2147483647> : vector<64xi32>
    %118 = vector.multi_reduction <minsi>, %117, %cst_35 [1] : vector<64x64xi32> to vector<64xi32>
    %119 = vector.shape_cast %118 : vector<64xi32> to vector<64x1xi32>
    %c63_i32_36 = arith.constant 63 : i32
    %120 = vector.broadcast %c63_i32_36 : i32 to vector<64x1xi32>
    %121 = arith.andi %119, %120 : vector<64x1xi32>
    %122 = vector.broadcast %121 : vector<64x1xi32> to vector<64x64xi32>
    %123 = arith.cmpi eq, %30, %122 : vector<64x64xi32>
    %124 = arith.extui %123 : vector<64x64xi1> to vector<64x64xi32>
    %125 = arith.sitofp %124 : vector<64x64xi32> to vector<64x64xf32>
    %126 = arith.index_cast %c6_i32 : i32 to index
    %c0_37 = arith.constant 0 : index
    %c0_38 = arith.constant 0 : index
    %127 = vector.load %arg8[%126, %c0_37, %c0_38] : memref<9x64x64xf32, #tpu.memory_space<vmem>>, vector<1x64x64xf32>
    %128 = vector.shape_cast %127 : vector<1x64x64xf32> to vector<64x64xf32>
    %129 = vector.shape_cast %125 : vector<64x64xf32> to vector<1x64x64xf32>
    tpu.vector_store %arg8[%126, %c0_37, %c0_38], %129 {strides = array<i32>} : memref<9x64x64xf32, #tpu.memory_space<vmem>>, vector<1x64x64xf32>,
    %130 = vector.broadcast %c2147483647_i32 : i32 to vector<64x64xi32>
    %131 = arith.select %123, %130, %117 : vector<64x64xi1>, vector<64x64xi32>
    %c7_i32 = arith.constant 7 : i32
    %cst_39 = arith.constant dense<2147483647> : vector<64xi32>
    %132 = vector.multi_reduction <minsi>, %131, %cst_39 [1] : vector<64x64xi32> to vector<64xi32>
    %133 = vector.shape_cast %132 : vector<64xi32> to vector<64x1xi32>
    %c63_i32_40 = arith.constant 63 : i32
    %134 = vector.broadcast %c63_i32_40 : i32 to vector<64x1xi32>
    %135 = arith.andi %133, %134 : vector<64x1xi32>
    %136 = vector.broadcast %135 : vector<64x1xi32> to vector<64x64xi32>
    %137 = arith.cmpi eq, %30, %136 : vector<64x64xi32>
    %138 = arith.extui %137 : vector<64x64xi1> to vector<64x64xi32>
    %139 = arith.sitofp %138 : vector<64x64xi32> to vector<64x64xf32>
    %140 = arith.index_cast %c7_i32 : i32 to index
    %c0_41 = arith.constant 0 : index
    %c0_42 = arith.constant 0 : index
    %141 = vector.load %arg8[%140, %c0_41, %c0_42] : memref<9x64x64xf32, #tpu.memory_space<vmem>>, vector<1x64x64xf32>
    %142 = vector.shape_cast %141 : vector<1x64x64xf32> to vector<64x64xf32>
    %143 = vector.shape_cast %139 : vector<64x64xf32> to vector<1x64x64xf32>
    tpu.vector_store %arg8[%140, %c0_41, %c0_42], %143 {strides = array<i32>} : memref<9x64x64xf32, #tpu.memory_space<vmem>>, vector<1x64x64xf32>,
    %144 = vector.broadcast %c2147483647_i32 : i32 to vector<64x64xi32>
    %145 = arith.select %137, %144, %131 : vector<64x64xi1>, vector<64x64xi32>
    %c8_i32 = arith.constant 8 : i32
    %cst_43 = arith.constant dense<2147483647> : vector<64xi32>
    %146 = vector.multi_reduction <minsi>, %145, %cst_43 [1] : vector<64x64xi32> to vector<64xi32>
    %147 = vector.shape_cast %146 : vector<64xi32> to vector<64x1xi32>
    %c63_i32_44 = arith.constant 63 : i32
    %148 = vector.broadcast %c63_i32_44 : i32 to vector<64x1xi32>
    %149 = arith.andi %147, %148 : vector<64x1xi32>
    %150 = vector.broadcast %149 : vector<64x1xi32> to vector<64x64xi32>
    %151 = arith.cmpi eq, %30, %150 : vector<64x64xi32>
    %152 = arith.extui %151 : vector<64x64xi1> to vector<64x64xi32>
    %153 = arith.sitofp %152 : vector<64x64xi32> to vector<64x64xf32>
    %154 = arith.index_cast %c8_i32 : i32 to index
    %c0_45 = arith.constant 0 : index
    %c0_46 = arith.constant 0 : index
    %155 = vector.load %arg8[%154, %c0_45, %c0_46] : memref<9x64x64xf32, #tpu.memory_space<vmem>>, vector<1x64x64xf32>
    %156 = vector.shape_cast %155 : vector<1x64x64xf32> to vector<64x64xf32>
    %157 = vector.shape_cast %153 : vector<64x64xf32> to vector<1x64x64xf32>
    tpu.vector_store %arg8[%154, %c0_45, %c0_46], %157 {strides = array<i32>} : memref<9x64x64xf32, #tpu.memory_space<vmem>>, vector<1x64x64xf32>,
    %158 = vector.broadcast %c2147483647_i32 : i32 to vector<64x64xi32>
    %159 = arith.select %151, %158, %145 : vector<64x64xi1>, vector<64x64xi32>
    %c9_i32 = arith.constant 9 : i32
    %c0_47 = arith.constant 0 : index
    %c0_48 = arith.constant 0 : index
    %160 = vector.load %arg4[%c0_47, %c0_48] : memref<16x128xf32, #tpu.memory_space<vmem>>, vector<16x128xf32>
    %cst_49 = arith.constant dense<0.000000e+00> : vector<64x128xf32>
    %161 = tpu.matmul %1, %160, %cst_49 {dimension_numbers = #tpu.dot_dimension_numbers<[1], [0], [0], [1], [0, 0, 1, 1], [], []>} : vector<64x16xf32>, vector<16x128xf32>, vector<64x128xf32> -> vector<64x128xf32>
    %c0_50 = arith.constant 0 : index
    %c0_51 = arith.constant 0 : index
    %162 = vector.load %arg6[%c0_50, %c0_51] : memref<1x128xf32, #tpu.memory_space<vmem>>, vector<1x128xf32>
    %163 = vector.broadcast %162 : vector<1x128xf32> to vector<64x128xf32>
    %164 = arith.addf %161, %163 : vector<64x128xf32>
    %c0_52 = arith.constant 0 : index
    %c0_53 = arith.constant 0 : index
    %165 = vector.load %arg5[%c0_52, %c0_53] : memref<16x128xf32, #tpu.memory_space<vmem>>, vector<16x128xf32>
    %cst_54 = arith.constant dense<0.000000e+00> : vector<64x128xf32>
    %166 = tpu.matmul %3, %165, %cst_54 {dimension_numbers = #tpu.dot_dimension_numbers<[1], [0], [0], [1], [0, 0, 1, 1], [], []>} : vector<64x16xf32>, vector<16x128xf32>, vector<64x128xf32> -> vector<64x128xf32>
    %c0_55 = arith.constant 0 : index
    %c0_56 = arith.constant 0 : index
    %c0_57 = arith.constant 0 : index
    %167 = vector.load %arg8[%c0_55, %c0_56, %c0_57] : memref<9x64x64xf32, #tpu.memory_space<vmem>>, vector<9x64x64xf32>
    %168 = vector.shape_cast %167 : vector<9x64x64xf32> to vector<576x64xf32>
    %cst_58 = arith.constant dense<0.000000e+00> : vector<576x128xf32>
    %169 = tpu.matmul %168, %166, %cst_58 {dimension_numbers = #tpu.dot_dimension_numbers<[1], [0], [0], [1], [0, 0, 1, 1], [], []>} : vector<576x64xf32>, vector<64x128xf32>, vector<576x128xf32> -> vector<576x128xf32>
    %170 = vector.shape_cast %169 : vector<576x128xf32> to vector<9x64x128xf32>
    %cst_59 = arith.constant dense<0xFF800000> : vector<64x128xf32>
    %171 = vector.multi_reduction <maximumf>, %170, %cst_59 [0] : vector<9x64x128xf32> to vector<64x128xf32>
    %172 = arith.addf %164, %171 : vector<64x128xf32>
    %cst_60 = arith.constant 0.000000e+00 : f32
    %173 = vector.broadcast %cst_60 : f32 to vector<64x128xf32>
    %174 = arith.maximumf %172, %173 : vector<64x128xf32>
    %c0_61 = arith.constant 0 : index
    %c0_62 = arith.constant 0 : index
    %c0_63 = arith.constant 0 : index
    %175 = vector.load %arg7[%c0_61, %c0_62, %c0_63] : memref<1x64x128xf32, #tpu.memory_space<vmem>>, vector<1x64x128xf32>
    %176 = vector.shape_cast %175 : vector<1x64x128xf32> to vector<64x128xf32>
    %177 = vector.shape_cast %174 : vector<64x128xf32> to vector<1x64x128xf32>
    tpu.vector_store %arg7[%c0_61, %c0_62, %c0_63], %177 {strides = array<i32>} : memref<1x64x128xf32, #tpu.memory_space<vmem>>, vector<1x64x128xf32>,
    return
  }
  func.func @transform_0(%arg0: i32, %arg1: i32) -> (i32, i32, i32) {
    %c0_i32 = arith.constant 0 : i32
    %c0_i32_0 = arith.constant 0 : i32
    return %arg0, %arg1, %c0_i32 : i32, i32, i32
  }
  func.func @transform_1(%arg0: i32, %arg1: i32) -> (i32, i32, i32) {
    %c0_i32 = arith.constant 0 : i32
    %c0_i32_0 = arith.constant 0 : i32
    %c0_i32_1 = arith.constant 0 : i32
    return %arg0, %c0_i32, %c0_i32_0 : i32, i32, i32
  }
  func.func @transform_2(%arg0: i32, %arg1: i32) -> (i32, i32) {
    %c0_i32 = arith.constant 0 : i32
    %c0_i32_0 = arith.constant 0 : i32
    %c0_i32_1 = arith.constant 0 : i32
    return %c0_i32, %c0_i32_0 : i32, i32
  }
  func.func @transform_3(%arg0: i32, %arg1: i32) -> (i32, i32) {
    %c0_i32 = arith.constant 0 : i32
    %c0_i32_0 = arith.constant 0 : i32
    %c0_i32_1 = arith.constant 0 : i32
    return %c0_i32, %c0_i32_0 : i32, i32
  }
  func.func @transform_4(%arg0: i32, %arg1: i32) -> (i32, i32) {
    %c0_i32 = arith.constant 0 : i32
    %c0_i32_0 = arith.constant 0 : i32
    %c0_i32_1 = arith.constant 0 : i32
    return %c0_i32, %c0_i32_0 : i32, i32
  }
  func.func @transform_5(%arg0: i32, %arg1: i32) -> (i32, i32, i32) {
    %c0_i32 = arith.constant 0 : i32
    %c0_i32_0 = arith.constant 0 : i32
    return %arg0, %arg1, %c0_i32 : i32, i32, i32
  }
}

</mosaic_0001>

<bundles_post_ra>
// kernel: tpu_custom_call.1
= control target key start
LH: loop header
LB: loop body
LE: loop exit
PB: predicated region body
PF: predicated region fallthrough
CT: control target
= control target key end

     0   :  { %10 = vsyncpa [#allocation4], 0  ;;  %s6065_s0 = inlined_call_operand.vmem [shape: f32[2,64,16], index: 0, kind: input, shape index: {}]   ;;  %s6066_s1 = inlined_call_operand.vmem [shape: f32[2,64,16], index: 1, kind: input, shape index: {}]   ;;  %s6067_s2 = inlined_call_operand.vmem [shape: f32[16,128], index: 2, kind: input, shape index: {}]   ;;  %s6068_s3 = inlined_call_operand.vmem [shape: f32[16,128], index: 3, kind: input, shape index: {}]   ;;  %s6069_s4 = inlined_call_operand.vmem [shape: f32[1,128], index: 4, kind: input, shape index: {}]   ;;  %s6070_s5 = inlined_call_operand.hbm [shape: f32[2,64,128], index: 5, kind: output, shape index: {}]  }
   0x1   :  { %12 = vsyncpa [#allocation4 + $0x1], 0  ;;  %s3837_s18 = smov 0   ;;  %s3839_s19 = smov 0  }
   0x2   :  { %s3841_s20 = smov 0   ;;  %s3843_s21 = smov 0  }
   0x3   :  { %s3845_s22 = smov 0   ;;  %s3847_s23 = smov 0  }
   0x4 LB: > { %s3327_s24 = sadd.s32 4294967295, %s3802_s23   ;;  %s3328_s25 = sadd.s32 4294967294, %s3802_s23   ;;  %s3802_s23 = sphi %s3847_s23, %s18_s23   ;;  %s3798_s22 = sphi %s3845_s22, %s6122_s22   ;;  %s3794_s21 = sphi %s3843_s21, %s6121_s21   ;;  %s3790_s20 = sphi %s3841_s20, %s6120_s20   ;;  %s3786_s19 = sphi %s3839_s19, %s6119_s19   ;;  %s3782_s18 = sphi %s3837_s18, %s6118_s18  }
   0x5   : > { %s30_s26 = sadd.s32 1, %s3798_s22  ;;  %s156_s27 = sadd.s32 1, %s3790_s20 }
   0x6   : > { %p32_p0 = scmp.ge.s32.totalorder %s30_s26, 2  ;;  %p166_p1 = scmp.ne.s32.totalorder %s3790_s20, %s3786_s19 }
   0x7   : > { %p167_p2 = scmp.eq.s32.totalorder %s3327_s24, 1  ;;  %p172_p3 = scmp.ne.s32.totalorder %s3786_s19, %s3782_s18 }
   0x8   : > { %s6124_s26 = smov (%p32_p0, %s30_s26), 0  ;;  %p173_p5 = scmp.eq.s32.totalorder %s3328_s25, 1 }
   0x9   : > { %p3877_p4 = por %p167_p2, %p166_p1  ;;  %s151_s29 = ssub.s32 %s3798_s22, %s6124_s26 }
   0xa   : > { %p3331_p6 = scmp.ge.s32.totalorder %s3802_s23, 1  ;;  %p154_p7 = scmp.eq.s32.totalorder %s151_s29, 0 }
   0xb   : > { %p3884_p8 = por %p173_p5, %p172_p3  ;;  %p221_p9 = scmp.lt.s32.totalorder %s3802_s23, 3 }
   0xc   : > { %s3890_s6 = scalar_select %p154_p7, %s3790_s20, %s156_s27  }
   0xd   : > { %p222_p10 = pnand %p3331_p6, %p221_p9 }
   0xf   : > { %225 = sbr.rel (%p222_p10) target bundleno = 2879 (0xb3f), region = 40 }
  0x14   : > { %p259_p11 = scmp.lt.s32.totalorder %s3794_s21, 1  ;;  %vm298_vm0 = vcmask 130048   ;;  %s255_s10 = sand.u32 1, %s3786_s19  }
  0x15   : > { %s3520_s13 = sshll.u32 %s3794_s21, 6 }
  0x16   : > { %s260_s7 = scalar_select %p259_p11, %s3794_s21, 1 }
  0x17   : > { %s3232_s16 = scalar_lea.hbm %s6070_s5, %s3520_s13  ;;  %s3219_s21 = scalar_lea.sflag [#allocation4], %s255_s10 }
  0x18   : > { %s3518_s8 = sshll.u32 %s260_s7, 6  ;;  %s3235_s24 = sshll.u32 %s3232_s16, 4  ;;  %s3236_s24 = int_to_ptr.hbm [resolvable:$true] %s3235_s24 }
  0x19   : > { %s3897_s11 = scalar_lea.vmem %s6066_s1, %s3518_s8  ;;  %s3935_s14 = scalar_lea.vmem %s6065_s0, %s3518_s8 }
  0x1a   : > { %v3900_v0 = vld [vmem:[%s3897_s11 + $0x38] sm:$0xff]  ;;  %v3903_v1 = vld [vmem:[%s3897_s11 + $0x28] sm:$0xff]  ;;  %v3915_v6 = vld [vmem:[%s3897_s11 + $0x30] sm:$0xff]  ;;  %s3738_s25 = sshra.s32 %s3236_s24, 4  ;;  %s3744_s8 = scalar_lea.hbm %s6070_s5, 128  ;;  %s3739_s25 = int_to_ptr.hbm [resolvable:$true] %s3738_s25 }
  0x1b   : > { %v3906_v2 = vld [vmem:[%s3897_s11 + $0x18] sm:$0xff]  ;;  %v554_v3 = vmul.f32 %v3900_v0, %v3900_v0  ;;  %v552_v4 = vmul.f32 %v3903_v1, %v3903_v1  ;;  %v3918_v7 = vld [vmem:[%s3897_s11 + $0x20] sm:$0xff]  ;;  %v3924_v11 = vld [vmem:[%s3897_s11 + $0x10] sm:$0xff]  ;;  %v553_v12 = vmul.f32 %v3915_v6, %v3915_v6  ;;  %s3740_s27 = scalar_lea.hbm %s3739_s25, 64  ;;  %p3745_p1 = scmp.lt.s32.totalorder %s3739_s25, %s6070_s5 }
  0x1c   : > { %v550_v5 = vmul.f32 %v3906_v2, %v3906_v2  ;;  %v551_v13 = vmul.f32 %v3918_v7, %v3918_v7  ;;  %v549_v14 = vmul.f32 %v3924_v11, %v3924_v11  ;;  %v3941_v18 = vld [vmem:[%s3897_s11 + $0x8] sm:$0xff]  ;;  %v3944_v19 = vld [vmem:[%s3897_s11] sm:$0xff]  ;;  %v3962_v28 = vld [vmem:[%s3935_s14 + $0x10] sm:$0xff]  ;;  %p3741_p12 = scmp.ne.s32.totalorder %s3739_s25, %s3740_s27  ;;  %p3746_p2 = scmp.lt.s32.totalorder %s3744_s8, %s3740_s27 }
  0x1d   : > { %v576_v8 = vsel %vm298_vm0, %v554_v3, 0.0  ;;  %v570_v9 = vsel %vm298_vm0, %v552_v4, 0.0  ;;  %v573_v15 = vsel %vm298_vm0, %v553_v12, 0.0  ;;  %v3947_v20 = vld [vmem:[%s3935_s14] sm:$0xff]  ;;  %v548_v21 = vmul.f32 %v3941_v18, %v3941_v18  ;;  %v3959_v27 = vld [vmem:[%s3935_s14 + $0x8] sm:$0xff]  ;;  %v3965_v29 = vld [vmem:[%s3935_s14 + $0x18] sm:$0xff] }
  0x1e   : > { %v564_v10 = vsel %vm298_vm0, %v550_v5, 0.0  ;;  %577 = vadd.xlane.f32.xlu0 %v576_v8  ;;  %571 = vadd.xlane.f32.xlu1 %v570_v9  ;;  %v567_v16 = vsel %vm298_vm0, %v551_v13, 0.0  ;;  %v561_v17 = vsel %vm298_vm0, %v549_v14, 0.0  ;;  %v547_v22 = vmul.f32 %v3944_v19, %v3944_v19  ;;  %v3977_v36 = vld [vmem:[%s3935_s14 + $0x20] sm:$0xff]  ;;  %v3980_v37 = vld [vmem:[%s3935_s14 + $0x28] sm:$0xff]  ;;  %v3983_v38 = vld [vmem:[%s3935_s14 + $0x30] sm:$0xff]  ;;  %p3742_p13 = pnand %p3741_p12, %p3877_p4  ;;  %p3747_p3 = por %p3746_p2, %p3745_p1 }
  0x1f   : > { %565 = vadd.xlane.f32.xlu2 %v564_v10  ;;  %v290_v23 = vmul.f32 %v3947_v20, %v3947_v20  ;;  %v558_v24 = vsel %vm298_vm0, %v548_v21, 0.0  ;;  %v291_v30 = vmul.f32 %v3959_v27, %v3959_v27  ;;  %v292_v31 = vmul.f32 %v3962_v28, %v3962_v28  ;;  %v281_v45 = vld [vmem:[%s3935_s14 + $0x38] sm:$0xff] }
  0x20   : > { %v555_v25 = vsel %vm298_vm0, %v547_v22, 0.0  ;;  %v293_v32 = vmul.f32 %v3965_v29, %v3965_v29  ;;  %v294_v39 = vmul.f32 %v3977_v36, %v3977_v36  ;;  %v295_v40 = vmul.f32 %v3980_v37, %v3980_v37  ;;  %p3743_p0 = pneg %p3742_p13 }
  0x21   : > { %v299_v26 = vsel %vm298_vm0, %v290_v23, 0.0  ;;  %v302_v33 = vsel %vm298_vm0, %v291_v30, 0.0  ;;  %v305_v34 = vsel %vm298_vm0, %v292_v31, 0.0  ;;  %v296_v41 = vmul.f32 %v3983_v38, %v3983_v38 }
  0x22   : > { %v308_v35 = vsel %vm298_vm0, %v293_v32, 0.0  ;;  %v311_v42 = vsel %vm298_vm0, %v294_v39, 0.0  ;;  %v314_v43 = vsel %vm298_vm0, %v295_v40, 0.0  ;;  %v297_v46 = vmul.f32 %v281_v45, %v281_v45  ;;  %p3748_p5 = pnand %p3747_p3, %p3743_p0 }
  0x23   : > { %v317_v44 = vsel %vm298_vm0, %v296_v41, 0.0 }
  0x24   : > { %v320_v47 = vsel %vm298_vm0, %v297_v46, 0.0 }
  0x26   : > { %574 = vadd.xlane.f32.xlu0 %v573_v15  ;;  %568 = vadd.xlane.f32.xlu1 %v567_v16 }
  0x27   : > { %562 = vadd.xlane.f32.xlu2 %v561_v17 }
  0x2e   : > { %559 = vadd.xlane.f32.xlu0 %v558_v24  ;;  %556 = vadd.xlane.f32.xlu1 %v555_v25 }
  0x2f   : > { %300 = vadd.xlane.f32.xlu2 %v299_v26 }
  0x36   : > { %303 = vadd.xlane.f32.xlu0 %v302_v33  ;;  %306 = vadd.xlane.f32.xlu1 %v305_v34 }
  0x37   : > { %309 = vadd.xlane.f32.xlu2 %v308_v35 }
  0x3e   : > { %312 = vadd.xlane.f32.xlu0 %v311_v42  ;;  %315 = vadd.xlane.f32.xlu1 %v314_v43 }
  0x3f   : > { %318 = vadd.xlane.f32.xlu2 %v317_v44 }
  0x46   : > { %321 = vadd.xlane.f32.xlu0 %v320_v47 }
  0x91   : > { %v578_v48 = vpop.xlane.xlu0 %577  ;;  %v3996_v49 = vpop.xlane.xlu1 %571 }
  0x92   : > { %3644 = vrsqrt.f32 %v578_v48  ;;  %v3998_v50 = vpop.xlane.xlu2 %565  ;;  %vm670_vm1 = vcmp.eq.f32.partialorder %v578_v48, inf  ;;  %vm672_vm2 = vcmp.eq.f32.partialorder %v578_v48, 0.0  ;;  %v673_v34 = vand.u32 2147483648, %v578_v48 }
  0x93   : > { %3646 = vrsqrt.f32 %v3996_v49  ;;  %vm646_vm4 = vcmp.eq.f32.partialorder %v3996_v49, inf  ;;  %vm648_vm5 = vcmp.eq.f32.partialorder %v3996_v49, 0.0  ;;  %vm622_vm7 = vcmp.eq.f32.partialorder %v3998_v50, inf }
  0x94   : > { %3648 = vrsqrt.f32 %v3998_v50  ;;  %vm624_vm13 = vcmp.eq.f32.partialorder %v3998_v50, 0.0 }
  0x98   : > { %v3645_v51 = vpop.eup %3644 }
  0x99   : > { %v3647_v52 = vpop.eup %3646  ;;  %v664_v53 = vmul.f32 %v3645_v51, %v578_v48  ;;  %v4002_v54 = vpop.xlane.xlu0 %574 }
  0x9a   : > { %v4004_v55 = vpop.xlane.xlu1 %568  ;;  %v3649_v56 = vpop.eup %3648  ;;  %v640_v57 = vmul.f32 %v3647_v52, %v3996_v49  ;;  %3650 = vrsqrt.f32 %v4002_v54  ;;  %vm658_vm3 = vcmp.eq.f32.partialorder %v4002_v54, inf  ;;  %vm660_vm6 = vcmp.eq.f32.partialorder %v4002_v54, 0.0 }
  0x9b   : > { %v4008_v58 = vpop.xlane.xlu2 %562  ;;  %v665_v59 = vmul.f32 %v3645_v51, %v664_v53  ;;  %3652 = vrsqrt.f32 %v4004_v55  ;;  %v616_v61 = vmul.f32 %v3649_v56, %v3998_v50  ;;  %vm634_vm8 = vcmp.eq.f32.partialorder %v4004_v55, inf }
  0x9c   : > { %3654 = vrsqrt.f32 %v4008_v58  ;;  %v641_v62 = vmul.f32 %v3647_v52, %v640_v57  ;;  %vm636_vm9 = vcmp.eq.f32.partialorder %v4004_v55, 0.0  ;;  %vm610_vm10 = vcmp.eq.f32.partialorder %v4008_v58, inf }
  0x9d   : > { %v666_v60 = vmul.f32 0.5, %v665_v59  ;;  %v617_v8 = vmul.f32 %v3649_v56, %v616_v61  ;;  %vm612_vm14 = vcmp.eq.f32.partialorder %v4008_v58, 0.0 }
  0x9e   : > { %v642_v12 = vmul.f32 0.5, %v641_v62 }
  0x9f   : > { %v667_v63 = vsub.f32 1.5, %v666_v60  ;;  %v618_v22 = vmul.f32 0.5, %v617_v8  ;;  %v661_v60 = vand.u32 2147483648, %v4002_v54 }
  0xa0   : > { %v3651_v3 = vpop.eup %3650  ;;  %v643_v25 = vsub.f32 1.5, %v642_v12 }
  0xa1   : > { %v3653_v4 = vpop.eup %3652  ;;  %v668_v5 = vmul.f32 %v3645_v51, %v667_v63  ;;  %v652_v9 = vmul.f32 %v3651_v3, %v4002_v54  ;;  %v4014_v10 = vpop.xlane.xlu0 %559  ;;  %v619_v35 = vsub.f32 1.5, %v618_v22 }
  0xa2   : > { %v628_v13 = vmul.f32 %v3653_v4, %v4004_v55  ;;  %3656 = vrsqrt.f32 %v4014_v10  ;;  %v4018_v14 = vpop.xlane.xlu1 %556  ;;  %v4020_v15 = vpop.eup %3654  ;;  %v644_v43 = vmul.f32 %v3647_v52, %v643_v25  ;;  %vm598_vm11 = vcmp.eq.f32.partialorder %v4014_v10, inf }
  0xa3   : > { %v669_v16 = vmul.f32 %v668_v5, %v578_v48  ;;  %v653_v17 = vmul.f32 %v3651_v3, %v652_v9  ;;  %v604_v24 = vmul.f32 %v4020_v15, %v4008_v58  ;;  %3658 = vrsqrt.f32 %v4018_v14  ;;  %v4025_v32 = vpop.xlane.xlu2 %300 }
  0xa4   : > { %v629_v21 = vmul.f32 %v3653_v4, %v628_v13  ;;  %3660 = vrsqrt.f32 %v4025_v32  ;;  %v620_v52 = vmul.f32 %v3649_v56, %v619_v35  ;;  %v645_v61 = vmul.f32 %v644_v43, %v3996_v49 }
  0xa5   : > { %v654_v23 = vmul.f32 0.5, %v653_v17  ;;  %v671_v30 = vsel %vm670_vm1, %v578_v48, %v669_v16  ;;  %v605_v40 = vmul.f32 %v4020_v15, %v604_v24  ;;  %v649_v5 = vand.u32 2147483648, %v3996_v49 }
  0xa6   : > { %v630_v26 = vmul.f32 0.5, %v629_v21  ;;  %v674_v45 = vsel %vm672_vm2, %v673_v34, %v671_v30  ;;  %v621_v13 = vmul.f32 %v620_v52, %v3998_v50  ;;  %v625_v16 = vand.u32 2147483648, %v3998_v50 }
  0xa7   : > { %v655_v31 = vsub.f32 1.5, %v654_v23  ;;  %v4039_v51 = vmax.f32 %v674_v45, 1e-12  ;;  %v606_v59 = vmul.f32 0.5, %v605_v40  ;;  %v613_v17 = vand.u32 2147483648, %v4008_v58 }
  0xa8   : > { %v4027_v33 = vpop.eup %3656  ;;  %v631_v44 = vsub.f32 1.5, %v630_v26  ;;  %v647_v23 = vsel %vm646_vm4, %v3996_v49, %v645_v61  ;;  %v4083_v35 = vsel %vm622_vm7, %v3998_v50, %v621_v13  ;;  %v601_v40 = vand.u32 2147483648, %v4014_v10 }
  0xa9   : > { %v656_v39 = vmul.f32 %v3651_v3, %v655_v31  ;;  %v592_v41 = vmul.f32 %v4027_v33, %v4014_v10  ;;  %v4032_v42 = vpop.xlane.xlu0 %303  ;;  %v4035_v46 = vpop.eup %3658  ;;  %v333_v43 = vand.u32 2147483648, %v4025_v32  ;;  %v797_v45 = vand.u32 2147483647, %v4039_v51 }
  0xaa   : > { %3662 = vrsqrt.f32 %v4032_v42  ;;  %v580_v53 = vmul.f32 %v4035_v46, %v4018_v14  ;;  %v632_v62 = vmul.f32 %v3653_v4, %v631_v44  ;;  %v4052_v3 = vpop.xlane.xlu1 %306  ;;  %v4054_v56 = vpop.eup %3660  ;;  %v637_v4 = vand.u32 2147483648, %v4004_v55 }
  0xab   : > { %v657_v47 = vmul.f32 %v656_v39, %v4002_v54  ;;  %v593_v48 = vmul.f32 %v4027_v33, %v592_v41  ;;  %3664 = vrcp.f32 %v4039_v51  ;;  %v324_v26 = vmul.f32 %v4054_v56, %v4025_v32 }
  0xac   : > { %v581_v8 = vmul.f32 %v4035_v46, %v580_v53  ;;  %3666 = vrsqrt.f32 %v4052_v3  ;;  %v633_v24 = vmul.f32 %v632_v62, %v4004_v55  ;;  %v589_v41 = vand.u32 2147483648, %v4018_v14 }
  0xad   : > { %v659_v57 = vsel %vm658_vm3, %v4002_v54, %v657_v47  ;;  %v594_v63 = vmul.f32 0.5, %v593_v48  ;;  %v607_v54 = vsub.f32 1.5, %v606_v59  ;;  %v799_v47 = vand.u32 2147483648, %v4039_v51 }
  0xae   : > { %v662_v9 = vsel %vm660_vm6, %v661_v60, %v659_v57  ;;  %v582_v30 = vmul.f32 0.5, %v581_v8  ;;  %v635_v48 = vsel %vm634_vm8, %v4004_v55, %v633_v24  ;;  %v650_v52 = vsel %vm648_vm5, %v649_v5, %v647_v23  ;;  %v4100_v57 = vpop.xlane.xlu2 %309 }
  0xaf   : > { %v4067_v21 = vmax.f32 %v662_v9, 1e-12  ;;  %v595_v25 = vsub.f32 1.5, %v594_v63  ;;  %v608_v39 = vmul.f32 %v4020_v15, %v607_v54  ;;  %v325_v15 = vmul.f32 %v4054_v56, %v324_v26 }
  0xb0   : > { %v4059_v12 = vpop.eup %3662  ;;  %v583_v60 = vsub.f32 1.5, %v582_v30  ;;  %vm793_vm15 = vweird.f32 %v4039_v51  ;;  %v4111_v63 = vmax.f32 %v650_v52, 1e-12  ;;  %vm798_vm1 = vcmp.eq.f32.partialorder %v797_v45, 8.507059e+37 }
  0xb1   : > { %v3665_v22 = vpop.eup %3664  ;;  %v336_v34 = vmul.f32 %v4059_v12, %v4032_v42  ;;  %3668 = vrcp.f32 %v4067_v21  ;;  %v596_v53 = vmul.f32 %v4027_v33, %v595_v25  ;;  %v609_v33 = vmul.f32 %v608_v39, %v4008_v58 }
  0xb2   : > { %v789_v31 = vmul.f32 %v3665_v22, %v4039_v51  ;;  %v4102_v59 = vpop.eup %3666  ;;  %vm794_vm12 = vweird.f32 %v3665_v22  ;;  %v800_v9 = vor.u32 1.1754944e-38, %v799_v47  ;;  %3670 = vrsqrt.f32 %v4100_v57 }
  0xb3   : > { %v337_v62 = vmul.f32 %v4059_v12, %v336_v34  ;;  %v348_v49 = vmul.f32 %v4102_v59, %v4052_v3  ;;  %v597_v13 = vmul.f32 %v596_v53, %v4014_v10  ;;  %v326_v54 = vmul.f32 0.5, %v325_v15  ;;  %vm795_vm2 = vmor %vm793_vm15, %vm794_vm12 }
  0xb4   : > { %v790_v44 = vsub.f32 1.0, %v789_v31  ;;  %v638_v51 = vsel %vm636_vm9, %v637_v4, %v635_v48  ;;  %v584_v24 = vmul.f32 %v4035_v46, %v583_v60  ;;  %3672 = vrcp.f32 %v4111_v63  ;;  %v4132_v48 = vpop.xlane.xlu0 %312 }
  0xb5   : > { %v338_v26 = vmul.f32 0.5, %v337_v62  ;;  %vm586_vm3 = vcmp.eq.f32.partialorder %v4018_v14, inf  ;;  %v784_v34 = vand.u32 2147483648, %v4067_v21  ;;  %v349_v39 = vmul.f32 %v4102_v59, %v348_v49 }
  0xb6   : > { %v791_v61 = vmul.f32 %v3665_v22, %v790_v44  ;;  %v611_v44 = vsel %vm610_vm10, %v4008_v58, %v609_v33  ;;  %v345_v46 = vand.u32 2147483648, %v4032_v42  ;;  %v4129_v4 = vmax.f32 %v638_v51, 1e-12 }
  0xb7   : > { %v3669_v5 = vpop.eup %3668  ;;  %v782_v47 = vand.u32 2147483647, %v4067_v21  ;;  %v4139_v15 = vsel %vm598_vm11, %v4014_v10, %v597_v13  ;;  %vm778_vm5 = vweird.f32 %v4067_v21  ;;  %v585_v52 = vmul.f32 %v584_v24, %v4018_v14 }
  0xb8   : > { %v792_v8 = vadd.f32 %v3665_v22, %v791_v61  ;;  %v774_v23 = vmul.f32 %v3669_v5, %v4067_v21  ;;  %vm779_vm4 = vweird.f32 %v3669_v5  ;;  %v4134_v53 = vpop.eup %3670  ;;  %3674 = vrcp.f32 %v4129_v4 }
  0xb9   : > { %vm330_vm6 = vcmp.eq.f32.partialorder %v4025_v32, inf  ;;  %vm342_vm7 = vcmp.eq.f32.partialorder %v4032_v42, inf  ;;  %v785_v61 = vor.u32 1.1754944e-38, %v784_v34  ;;  %v350_v62 = vmul.f32 0.5, %v349_v39  ;;  %vm780_vm8 = vmor %vm778_vm5, %vm779_vm4 }
  0xba   : > { %v796_v25 = vsel %vm795_vm2, %v3665_v22, %v792_v8  ;;  %v775_v31 = vsub.f32 1.0, %v774_v23  ;;  %v327_v22 = vsub.f32 1.5, %v326_v54  ;;  %v3673_v33 = vpop.eup %3672  ;;  %v360_v49 = vmul.f32 %v4134_v53, %v4100_v57 }
  0xbb   : > { %v801_v30 = vsel %vm798_vm1, %v800_v9, %v796_v25  ;;  %v626_v21 = vsel %vm624_vm13, %v625_v16, %v4083_v35  ;;  %v614_v8 = vsel %vm612_vm14, %v613_v17, %v611_v44  ;;  %3676 = vrsqrt.f32 %v4132_v48 }
  0xbc   : > { %v802_v55 = vmul.f32 %v801_v30, %v3900_v0  ;;  %v776_v45 = vmul.f32 %v3669_v5, %v775_v31  ;;  %v339_v0 = vsub.f32 1.5, %v338_v26  ;;  %v328_v9 = vmul.f32 %v4054_v56, %v327_v22 }
  0xbd   : > { %vm783_vm9 = vcmp.eq.f32.partialorder %v782_v47, 8.507059e+37  ;;  %v759_v54 = vmul.f32 %v3673_v33, %v4111_v63  ;;  %v357_v24 = vand.u32 2147483648, %v4052_v3  ;;  %v767_v50 = vand.u32 2147483647, %v4111_v63 }
  0xbe   : > { %3337 = vmatpush.xpose.msk.msra.mxu0 %vm298_vm0, %v802_v55  ;;  %v777_v60 = vadd.f32 %v3669_v5, %v776_v45  ;;  %v340_v23 = vmul.f32 %v4059_v12, %v339_v0  ;;  %vm600_vm10 = vcmp.eq.f32.partialorder %v4014_v10, 0.0  ;;  %v4167_v17 = vmax.f32 %v626_v21, 1e-12  ;;  %v3675_v56 = vpop.eup %3674 }
  0xbf   : > { %v760_v16 = vsub.f32 1.0, %v759_v54  ;;  %v4169_v35 = vmax.f32 %v614_v8, 1e-12  ;;  %v351_v12 = vsub.f32 1.5, %v350_v62  ;;  %v769_v25 = vand.u32 2147483648, %v4111_v63 }
  0xc0   : > { %v781_v13 = vsel %vm780_vm8, %v3669_v5, %v777_v60  ;;  %v587_v5 = vsel %vm586_vm3, %v4018_v14, %v585_v52  ;;  %v361_v26 = vmul.f32 %v4134_v53, %v360_v49  ;;  %vm588_vm11 = vcmp.eq.f32.partialorder %v4018_v14, 0.0 }
  0xc1   : > { %v786_v51 = vsel %vm783_vm9, %v785_v61, %v781_v13  ;;  %vm764_vm12 = vweird.f32 %v3673_v33  ;;  %v744_v30 = vmul.f32 %v3675_v56, %v4129_v4  ;;  %3678 = vrcp.f32 %v4167_v17  ;;  %v4180_v31 = vpop.eup %3676 }
  0xc2   : > { %v787_v58 = vmul.f32 %v786_v51, %v3915_v6  ;;  %v761_v6 = vmul.f32 %v3673_v33, %v760_v16  ;;  %v329_v34 = vmul.f32 %v328_v9, %v4025_v32  ;;  %v341_v39 = vmul.f32 %v340_v23, %v4032_v42 }
  0xc3   : > { %vm763_vm13 = vweird.f32 %v4111_v63  ;;  %vm4185_vm14 = vcmp.eq.f32.partialorder %v767_v50, 8.507059e+37  ;;  %v745_v22 = vsub.f32 1.0, %v744_v30  ;;  %v752_v45 = vand.u32 2147483647, %v4129_v4 }
  0xc4   : > { %3338 = vmatpush.xpose.msk.msra.mxu0 %vm298_vm0, %v787_v58  ;;  %v762_v55 = vadd.f32 %v3673_v33, %v761_v6  ;;  %3680 = vrcp.f32 %v4169_v35  ;;  %v352_v47 = vmul.f32 %v4102_v59, %v351_v12  ;;  %vm354_vm15 = vcmp.eq.f32.partialorder %v4052_v3, inf  ;;  %vm765_vm1 = vmor %vm763_vm13, %vm764_vm12 }
  0xc5   : > { %v770_v0 = vor.u32 1.1754944e-38, %v769_v25  ;;  %v754_v52 = vand.u32 2147483648, %v4129_v4  ;;  %v362_v60 = vmul.f32 0.5, %v361_v26  ;;  %v746_v61 = vmul.f32 %v3675_v56, %v745_v22 }
  0xc6   : > { %v766_v63 = vsel %vm765_vm1, %v3673_v33, %v762_v55  ;;  %vm749_vm2 = vweird.f32 %v3675_v56  ;;  %v372_v62 = vmul.f32 %v4180_v31, %v4132_v48  ;;  %v4199_v49 = vsel %vm330_vm6, %v4025_v32, %v329_v34 }
  0xc7   : > { %v4204_v59 = vsel %vm342_vm7, %v4032_v42, %v341_v39  ;;  %v771_v21 = vsel %vm4185_vm14, %v770_v0, %v766_v63  ;;  %v369_v33 = vand.u32 2147483648, %v4100_v57  ;;  %v3679_v8 = vpop.eup %3678  ;;  %v747_v13 = vadd.f32 %v3675_v56, %v746_v61 }
  0xc8   : > { %v772_v9 = vmul.f32 %v771_v21, %v3903_v1  ;;  %vm748_vm3 = vweird.f32 %v4129_v4  ;;  %vm753_vm4 = vcmp.eq.f32.partialorder %v752_v45, 8.507059e+37  ;;  %vm332_vm5 = vcmp.eq.f32.partialorder %v4025_v32, 0.0 }
  0xc9   : > { %v353_v54 = vmul.f32 %v352_v47, %v4052_v3  ;;  %vm750_vm6 = vmor %vm748_vm3, %vm749_vm2  ;;  %v755_v23 = vor.u32 1.1754944e-38, %v754_v52  ;;  %v729_v51 = vmul.f32 %v3679_v8, %v4167_v17  ;;  %v602_v50 = vsel %vm600_vm10, %v601_v40, %v4139_v15  ;;  %v4229_v40 = vpop.xlane.xlu1 %315 }
  0xca   : > { %v3681_v58 = vpop.eup %3680  ;;  %3339 = vmatpush.xpose.msk.msra.mxu0 %vm298_vm0, %v772_v9  ;;  %v751_v1 = vsel %vm750_vm6, %v3675_v56, %v747_v13  ;;  %v363_v4 = vsub.f32 1.5, %v362_v60  ;;  %v373_v16 = vmul.f32 %v4180_v31, %v372_v62  ;;  %v4221_v12 = vmax.f32 %v602_v50, 1e-12 }
  0xcb   : > { %vm344_vm7 = vcmp.eq.f32.partialorder %v4032_v42, 0.0  ;;  %v756_v25 = vsel %vm753_vm4, %v755_v23, %v751_v1  ;;  %v730_v26 = vsub.f32 1.0, %v729_v51  ;;  %v714_v6 = vmul.f32 %v3681_v58, %v4169_v35 }
  0xcc   : > { %v590_v10 = vsel %vm588_vm11, %v589_v41, %v587_v5  ;;  %v757_v15 = vmul.f32 %v756_v25, %v3918_v7  ;;  %v737_v56 = vand.u32 2147483647, %v4167_v17  ;;  %v739_v30 = vand.u32 2147483648, %v4167_v17 }
  0xcd   : > { %3682 = vrcp.f32 %v4221_v12  ;;  %v731_v34 = vmul.f32 %v3679_v8, %v730_v26  ;;  %vm734_vm8 = vweird.f32 %v3679_v8  ;;  %v715_v39 = vsub.f32 1.0, %v714_v6 }
  0xce   : > { %v722_v44 = vand.u32 2147483647, %v4169_v35  ;;  %3340 = vmatpush.xpose.msk.msra.mxu0 %vm298_vm0, %v757_v15  ;;  %v724_v14 = vand.u32 2147483648, %v4169_v35  ;;  %v374_v41 = vmul.f32 0.5, %v373_v16  ;;  %v4238_v5 = vmax.f32 %v590_v10, 1e-12 }
  0xcf   : > { %3684 = vrsqrt.f32 %v4229_v40  ;;  %vm356_vm9 = vcmp.eq.f32.partialorder %v4052_v3, 0.0  ;;  %v732_v7 = vadd.f32 %v3679_v8, %v731_v34  ;;  %vm733_vm10 = vweird.f32 %v4167_v17  ;;  %v4250_v17 = vpop.xlane.xlu2 %318 }
  0xd0   : > { %v716_v55 = vmul.f32 %v3681_v58, %v715_v39  ;;  %vm719_vm11 = vweird.f32 %v3681_v58  ;;  %v355_v22 = vsel %vm354_vm15, %v4052_v3, %v353_v54  ;;  %vm735_vm12 = vmor %vm733_vm10, %vm734_vm8  ;;  %v740_v45 = vor.u32 1.1754944e-38, %v739_v30 }
  0xd1   : > { %vm718_vm13 = vweird.f32 %v4169_v35  ;;  %3686 = vrcp.f32 %v4238_v5  ;;  %v364_v47 = vmul.f32 %v4134_v53, %v363_v4  ;;  %vm366_vm14 = vcmp.eq.f32.partialorder %v4100_v57, inf }
  0xd2   : > { %v736_v0 = vsel %vm735_vm12, %v3679_v8, %v732_v7  ;;  %vm738_vm1 = vcmp.eq.f32.partialorder %v737_v56, 8.507059e+37  ;;  %v717_v52 = vadd.f32 %v3681_v58, %v716_v55  ;;  %vm720_vm2 = vmor %vm718_vm13, %vm719_vm11  ;;  %vm723_vm3 = vcmp.eq.f32.partialorder %v722_v44, 8.507059e+37 }
  0xd3   : > { %v3683_v60 = vpop.eup %3682  ;;  %v741_v63 = vsel %vm738_vm1, %v740_v45, %v736_v0  ;;  %v725_v61 = vor.u32 1.1754944e-38, %v724_v14  ;;  %v375_v62 = vsub.f32 1.5, %v374_v41  ;;  %v707_v53 = vand.u32 2147483647, %v4221_v12 }
  0xd4   : > { %v742_v21 = vmul.f32 %v741_v63, %v3906_v2  ;;  %v721_v35 = vsel %vm720_vm2, %v3681_v58, %v717_v52  ;;  %v699_v9 = vmul.f32 %v3683_v60, %v4221_v12  ;;  %v709_v8 = vand.u32 2147483648, %v4221_v12 }
  0xd5   : > { %v3685_v13 = vpop.eup %3684  ;;  %v726_v54 = vsel %vm723_vm3, %v725_v61, %v721_v35  ;;  %v334_v23 = vsel %vm332_vm5, %v333_v43, %v4199_v49  ;;  %3688 = vrsqrt.f32 %v4250_v17  ;;  %v365_v51 = vmul.f32 %v364_v47, %v4100_v57 }
  0xd6   : > { %3341 = vmatpush.xpose.msk.msra.mxu0 %vm298_vm0, %v742_v21  ;;  %v700_v2 = vsub.f32 1.0, %v699_v9  ;;  %v384_v50 = vmul.f32 %v3685_v13, %v4229_v40  ;;  %v4265_v58 = vmax.f32 %v334_v23, 1e-12  ;;  %vm368_vm15 = vcmp.eq.f32.partialorder %v4100_v57, 0.0 }
  0xd7   : > { %v3687_v1 = vpop.eup %3686  ;;  %vm378_vm4 = vcmp.eq.f32.partialorder %v4132_v48, inf  ;;  %v381_v4 = vand.u32 2147483648, %v4132_v48  ;;  %vm703_vm5 = vweird.f32 %v4221_v12  ;;  %vm704_vm6 = vweird.f32 %v3683_v60 }
  0xd8   : > { %v346_v32 = vsel %vm344_vm7, %v345_v46, %v4204_v59  ;;  %v727_v43 = vmul.f32 %v726_v54, %v3924_v11  ;;  %v701_v49 = vmul.f32 %v3683_v60, %v700_v2  ;;  %v684_v16 = vmul.f32 %v3687_v1, %v4238_v5  ;;  %vm705_vm7 = vmor %vm703_vm5, %vm704_vm6 }
  0xd9   : > { %v385_v25 = vmul.f32 %v3685_v13, %v384_v50  ;;  %v376_v26 = vmul.f32 %v4180_v31, %v375_v62  ;;  %vm4279_vm8 = vcmp.eq.f32.partialorder %v707_v53, 8.507059e+37  ;;  %v710_v10 = vor.u32 1.1754944e-38, %v709_v8 }
  0xda   : > { %3690 = vrcp.f32 %v4265_v58  ;;  %3342 = vmatpush.xpose.msk.msra.mxu0 %vm298_vm0, %v727_v43  ;;  %v702_v15 = vadd.f32 %v3683_v60, %v701_v49  ;;  %v685_v42 = vsub.f32 1.0, %v684_v16  ;;  %v4285_v59 = vmax.f32 %v346_v32, 1e-12 }
  0xdb   : > { %v386_v46 = vmul.f32 0.5, %v385_v25  ;;  %v3689_v11 = vpop.eup %3688  ;;  %vm689_vm10 = vweird.f32 %v3687_v1  ;;  %v692_v31 = vand.u32 2147483647, %v4238_v5  ;;  %v694_v56 = vand.u32 2147483648, %v4238_v5 }
  0xdc   : > { %v358_v30 = vsel %vm356_vm9, %v357_v24, %v355_v22  ;;  %v706_v34 = vsel %vm705_vm7, %v3683_v60, %v702_v15  ;;  %v686_v39 = vmul.f32 %v3687_v1, %v685_v42  ;;  %v396_v14 = vmul.f32 %v3689_v11, %v4250_v17 }
  0xdd   : > { %v387_v44 = vsub.f32 1.5, %v386_v46  ;;  %v367_v12 = vsel %vm366_vm14, %v4100_v57, %v365_v51  ;;  %v377_v41 = vmul.f32 %v376_v26, %v4132_v48  ;;  %vm380_vm11 = vcmp.eq.f32.partialorder %v4132_v48, 0.0 }
  0xde   : > { %v711_v7 = vsel %vm4279_vm8, %v710_v10, %v706_v34  ;;  %3692 = vrcp.f32 %v4285_v59  ;;  %v687_v24 = vadd.f32 %v3687_v1, %v686_v39  ;;  %vm688_vm9 = vweird.f32 %v4238_v5 }
  0xdf   : > { %v712_v3 = vmul.f32 %v711_v7, %v3941_v18  ;;  %v397_v55 = vmul.f32 %v3689_v11, %v396_v14  ;;  %vm690_vm12 = vmor %vm688_vm9, %vm689_vm10  ;;  %v695_v45 = vor.u32 1.1754944e-38, %v694_v56  ;;  %v388_v47 = vmul.f32 %v3685_v13, %v387_v44 }
  0xe0   : > { %v3691_v22 = vpop.eup %3690  ;;  %vm390_vm13 = vcmp.eq.f32.partialorder %v4229_v40, inf  ;;  %v4309_v0 = vmax.f32 %v358_v30, 1e-12  ;;  %v691_v52 = vsel %vm690_vm12, %v3687_v1, %v687_v24  ;;  %vm693_vm14 = vcmp.eq.f32.partialorder %v692_v31, 8.507059e+37 }
  0xe1   : > { %3343 = vmatpush.xpose.msk.msra.mxu0 %vm298_vm0, %v712_v3  ;;  %vm392_vm1 = vcmp.eq.f32.partialorder %v4229_v40, 0.0  ;;  %v428_v18 = vmul.f32 %v3691_v22, %v4265_v58  ;;  %v696_v60 = vsel %vm693_vm14, %v695_v45, %v691_v52  ;;  %v436_v5 = vand.u32 2147483647, %v4265_v58 }
  0xe2   : > { %v398_v63 = vmul.f32 0.5, %v397_v55  ;;  %3694 = vrcp.f32 %v4309_v0  ;;  %v379_v61 = vsel %vm378_vm4, %v4132_v48, %v377_v41  ;;  %v697_v62 = vmul.f32 %v696_v60, %v3944_v19 }
  0xe3   : > { %v429_v21 = vsub.f32 1.0, %v428_v18  ;;  %v370_v35 = vsel %vm368_vm15, %v369_v33, %v367_v12  ;;  %v389_v53 = vmul.f32 %v388_v47, %v4229_v40  ;;  %v393_v13 = vand.u32 2147483648, %v4229_v40 }
  0xe4   : > { %v3693_v9 = vpop.eup %3692  ;;  %v438_v54 = vand.u32 2147483648, %v4265_v58  ;;  %v399_v8 = vsub.f32 1.5, %v398_v63  ;;  %vm432_vm2 = vweird.f32 %v4265_v58  ;;  %vm433_vm3 = vweird.f32 %v3691_v22 }
  0xe5   : > { %3344 = vmatpush.xpose.msk.msra.mxu0 %vm298_vm0, %v697_v62  ;;  %v430_v23 = vmul.f32 %v3691_v22, %v429_v21  ;;  %v443_v19 = vmul.f32 %v3693_v9, %v4285_v59  ;;  %vm4330_vm4 = vcmp.eq.f32.partialorder %v436_v5, 8.507059e+37  ;;  %v451_v57 = vand.u32 2147483647, %v4285_v59  ;;  %vm434_vm6 = vmor %vm432_vm2, %vm433_vm3 }
  0xe6   : > { %v453_v33 = vand.u32 2147483648, %v4285_v59  ;;  %v4336_v2 = vmax.f32 %v370_v35, 1e-12  ;;  %vm447_vm15 = vweird.f32 %v4285_v59  ;;  %vm448_vm5 = vweird.f32 %v3693_v9 }
  0xe7   : > { %v431_v50 = vadd.f32 %v3691_v22, %v430_v23  ;;  %v444_v1 = vsub.f32 1.0, %v443_v19  ;;  %v391_v58 = vsel %vm390_vm13, %v4229_v40, %v389_v53  ;;  %v439_v43 = vor.u32 1.1754944e-38, %v438_v54  ;;  %vm4350_vm8 = vmor %vm447_vm15, %vm448_vm5 }
  0xe8   : > { %v3695_v32 = vpop.eup %3694  ;;  %v400_v49 = vmul.f32 %v3689_v11, %v399_v8  ;;  %3696 = vrcp.f32 %v4336_v2  ;;  %v382_v6 = vsel %vm380_vm11, %v381_v4, %v379_v61  ;;  %vm4354_vm7 = vcmp.eq.f32.partialorder %v451_v57, 8.507059e+37  ;;  %v322_v8 = vpop.xlane.xlu0 %321 }
  0xe9   : > { %v435_v16 = vsel %vm434_vm6, %v3691_v22, %v431_v50  ;;  %v445_v25 = vmul.f32 %v3693_v9, %v444_v1  ;;  %v458_v26 = vmul.f32 %v3695_v32, %v4309_v0  ;;  %v454_v46 = vor.u32 1.1754944e-38, %v453_v33 }
  0xea   : > { %v440_v10 = vsel %vm4330_vm4, %v439_v43, %v435_v16  ;;  %v394_v59 = vsel %vm392_vm1, %v393_v13, %v391_v58  ;;  %v401_v4 = vmul.f32 %v400_v49, %v4250_v17  ;;  %vm402_vm10 = vcmp.eq.f32.partialorder %v4250_v17, inf }
  0xeb   : > { %v441_v11 = vmul.f32 %v440_v10, %v3947_v20  ;;  %v446_v31 = vadd.f32 %v3693_v9, %v445_v25  ;;  %v459_v48 = vsub.f32 1.0, %v458_v26  ;;  %v423_v56 = vmax.f32 %v382_v6, 1e-12 }
  0xec   : > { %vm462_vm11 = vweird.f32 %v4309_v0  ;;  %vm463_vm9 = vweird.f32 %v3695_v32  ;;  %v4367_v39 = vmax.f32 %v394_v59, 1e-12  ;;  %v468_v44 = vand.u32 2147483648, %v4309_v0 }
  0xed   : > { %3345 = vmatmul.msk.f32.vlgmr.msra.gmra.mxu0 %vm298_vm0, %v441_v11  ;;  %v450_v30 = vsel %vm4350_vm8, %v3693_v9, %v446_v31  ;;  %v460_v34 = vmul.f32 %v3695_v32, %v459_v48  ;;  %v405_v14 = vand.u32 2147483648, %v4250_v17  ;;  %v466_v41 = vand.u32 2147483647, %v4309_v0  ;;  %vm4377_vm13 = vmor %vm462_vm11, %vm463_vm9 }
  0xee   : > { %v3697_v40 = vpop.eup %3696  ;;  %v455_v20 = vsel %vm4354_vm7, %v454_v46, %v450_v30  ;;  %v403_v3 = vsel %vm402_vm10, %v4250_v17, %v401_v4  ;;  %vm404_vm12 = vcmp.eq.f32.partialorder %v4250_v17, 0.0  ;;  %3698 = vrcp.f32 %v423_v56 }
  0xef   : > { %v461_v12 = vadd.f32 %v3695_v32, %v460_v34  ;;  %v473_v7 = vmul.f32 %v3697_v40, %v4336_v2  ;;  %v456_v55 = vmul.f32 %v455_v20, %v3959_v27  ;;  %3700 = vrcp.f32 %v4367_v39 }
  0xf0   : > { %v469_v45 = vor.u32 1.1754944e-38, %v468_v44  ;;  %v406_v47 = vsel %vm404_vm12, %v405_v14, %v403_v3  ;;  %vm467_vm14 = vcmp.eq.f32.partialorder %v466_v41, 8.507059e+37  ;;  %vm477_vm1 = vweird.f32 %v4336_v2 }
  0xf1   : > { %v474_v22 = vsub.f32 1.0, %v473_v7  ;;  %v465_v0 = vsel %vm4377_vm13, %v3695_v32, %v461_v12  ;;  %vm478_vm2 = vweird.f32 %v3697_v40  ;;  %v4387_v18 = vmax.f32 %v406_v47, 1e-12 }
  0xf2   : > { %v470_v60 = vsel %vm467_vm14, %v469_v45, %v465_v0  ;;  %v483_v27 = vand.u32 2147483648, %v4336_v2  ;;  %v481_v63 = vand.u32 2147483647, %v4336_v2  ;;  %vm479_vm3 = vmor %vm477_vm1, %vm478_vm2  ;;  %vm492_vm15 = vweird.f32 %v423_v56 }
  0xf3   : > { %v475_v52 = vmul.f32 %v3697_v40, %v474_v22  ;;  %v471_v21 = vmul.f32 %v470_v60, %v3962_v28  ;;  %3702 = vrcp.f32 %v4387_v18  ;;  %v498_v19 = vand.u32 2147483648, %v423_v56  ;;  %v4411_v60 = vld [vmem:[%s3935_s14 + $0x38] sm:$0xff] }
  0xf4   : > { %v3699_v17 = vpop.eup %3698  ;;  %v484_v9 = vor.u32 1.1754944e-38, %v483_v27  ;;  %vm482_vm4 = vcmp.eq.f32.partialorder %v481_v63, 8.507059e+37  ;;  %3704 = vrsqrt.f32 %v322_v8  ;;  %v496_v57 = vand.u32 2147483647, %v423_v56 }
  0xf5   : > { %3346 = vmatmul.msk.f32.gmra.mxu0 %vm298_vm0, %v456_v55  ;;  %v476_v5 = vadd.f32 %v3697_v40, %v475_v52  ;;  %v488_v61 = vmul.f32 %v3699_v17, %v423_v56  ;;  %v3701_v62 = vpop.eup %3700  ;;  %vm493_vm5 = vweird.f32 %v3699_v17  ;;  %v499_v50 = vor.u32 1.1754944e-38, %v498_v19 }
  0xf6   : > { %v503_v54 = vmul.f32 %v3701_v62, %v4367_v39  ;;  %vm494_vm6 = vmor %vm492_vm15, %vm493_vm5  ;;  %vm497_vm8 = vcmp.eq.f32.partialorder %v496_v57, 8.507059e+37  ;;  %vm507_vm7 = vweird.f32 %v4367_v39  ;;  %vm508_vm10 = vweird.f32 %v3701_v62 }
  0xf7   : > { %v489_v35 = vsub.f32 1.0, %v488_v61  ;;  %v480_v53 = vsel %vm479_vm3, %v3697_v40, %v476_v5  ;;  %v513_v25 = vand.u32 2147483648, %v4367_v39  ;;  %v511_v6 = vand.u32 2147483647, %v4367_v39  ;;  %vm509_vm11 = vmor %vm507_vm7, %vm508_vm10 }
  0xf8   : > { %v485_v23 = vsel %vm482_vm4, %v484_v9, %v480_v53  ;;  %v504_v28 = vsub.f32 1.0, %v503_v54  ;;  %vm522_vm12 = vweird.f32 %v4387_v18  ;;  %v528_v56 = vand.u32 2147483648, %v4387_v18 }
  0xf9   : > { %v490_v13 = vmul.f32 %v3699_v17, %v489_v35  ;;  %v3703_v33 = vpop.eup %3702  ;;  %v486_v2 = vmul.f32 %v485_v23, %v3965_v29  ;;  %v514_v46 = vor.u32 1.1754944e-38, %v513_v25  ;;  %vm512_vm9 = vcmp.eq.f32.partialorder %v511_v6, 8.507059e+37 }
  0xfa   : > { %v505_v32 = vmul.f32 %v3701_v62, %v504_v28  ;;  %v518_v58 = vmul.f32 %v3703_v33, %v4387_v18  ;;  %v3705_v43 = vpop.eup %3704  ;;  %vm523_vm13 = vweird.f32 %v3703_v33  ;;  %vm414_vm14 = vcmp.eq.f32.partialorder %v322_v8, inf }
  0xfb   : > { %v491_v51 = vadd.f32 %v3699_v17, %v490_v13  ;;  %v408_v49 = vmul.f32 %v3705_v43, %v322_v8  ;;  %v417_v30 = vand.u32 2147483648, %v322_v8  ;;  %vm416_vm1 = vcmp.eq.f32.partialorder %v322_v8, 0.0  ;;  %vm524_vm2 = vmor %vm522_vm12, %vm523_vm13 }
  0xfc   : > { %v506_v26 = vadd.f32 %v3701_v62, %v505_v32  ;;  %v519_v29 = vsub.f32 1.0, %v518_v58  ;;  %v529_v44 = vor.u32 1.1754944e-38, %v528_v56  ;;  %v940_v9 = vlaneseq }
  0xfd   : > { %3347 = vmatmul.msk.f32.gmra.mxu0 %vm298_vm0, %v471_v21  ;;  %v495_v1 = vsel %vm494_vm6, %v3699_v17, %v491_v51  ;;  %v409_v10 = vmul.f32 %v3705_v43, %v408_v49 }
  0xfe   : > { %v500_v16 = vsel %vm497_vm8, %v499_v50, %v495_v1  ;;  %v510_v59 = vsel %vm509_vm11, %v3701_v62, %v506_v26  ;;  %v520_v11 = vmul.f32 %v3703_v33, %v519_v29  ;;  %v4415_v23 = vand.u32 127, %v940_v9 }
  0xff   : > { %v501_v15 = vmul.f32 %v500_v16, %v3977_v36  ;;  %v410_v42 = vmul.f32 0.5, %v409_v10  ;;  %v515_v4 = vsel %vm512_vm9, %v514_v46, %v510_v59  ;;  %v526_v36 = vand.u32 2147483647, %v4387_v18 }
 0x100   : > { %v521_v34 = vadd.f32 %v3703_v33, %v520_v11  ;;  %v516_v39 = vmul.f32 %v515_v4, %v3980_v37  ;;  %vm958_vm11 = vcmask 523264  }
 0x101   : > { %v411_v31 = vsub.f32 1.5, %v410_v42  ;;  %vm527_vm3 = vcmp.eq.f32.partialorder %v526_v36, 8.507059e+37 }
 0x102   : > { %v525_v12 = vsel %vm524_vm2, %v3703_v33, %v521_v34 }
 0x103   : > { %v412_v48 = vmul.f32 %v3705_v43, %v411_v31  ;;  %v530_v7 = vsel %vm527_vm3, %v529_v44, %v525_v12  ;;  %v2543_v44 = vld [vmem:[%s6068_s3 + $0x8] sm:$0xff] }
 0x104   : > { %v531_v3 = vmul.f32 %v530_v7, %v3983_v38  ;;  %2582 = vmatpush.msra.mxu2 %v2543_v44 }
 0x105   : > { %3348 = vmatmul.msk.f32.gmra.mxu0 %vm298_vm0, %v486_v2  ;;  %v413_v40 = vmul.f32 %v412_v48, %v322_v8 }
 0x107   : > { %v415_v20 = vsel %vm414_vm14, %v322_v8, %v413_v40 }
 0x108   : > { %v418_v14 = vsel %vm416_vm1, %v417_v30, %v415_v20 }
 0x109   : > { %v426_v41 = vmax.f32 %v418_v14, 1e-12  ;;  %v2542_v14 = vld [vmem:[%s6068_s3] sm:$0xff] }
 0x10a   : > { %2583 = vmatpush.msra.mxu2 %v2542_v14 }
 0x10b   : > { %3706 = vrcp.f32 %v426_v41  ;;  %v543_v22 = vand.u32 2147483648, %v426_v41  ;;  %vm537_vm4 = vweird.f32 %v426_v41  ;;  %v541_v37 = vand.u32 2147483647, %v426_v41 }
 0x10d   : > { %3349 = vmatmul.msk.f32.gmra.mxu0 %vm298_vm0, %v501_v15  ;;  %v544_v0 = vor.u32 1.1754944e-38, %v543_v22  ;;  %vm542_vm6 = vcmp.eq.f32.partialorder %v541_v37, 8.507059e+37  ;;  %v3709_v37 = vld [vmem:[%s3897_s11] sm:$0xff] }
 0x10e   : > { %3433 = vmatmul.msk.f32.vlgmr.msra.gmra.mxu2 %vm298_vm0, %v3709_v37 }
 0x111   : > { %v3707_v24 = vpop.eup %3706 }
 0x112   : > { %v533_v55 = vmul.f32 %v3707_v24, %v426_v41  ;;  %vm538_vm15 = vweird.f32 %v3707_v24 }
 0x113   : > { %vm539_vm5 = vmor %vm537_vm4, %vm538_vm15 }
 0x114   : > { %v534_v45 = vsub.f32 1.0, %v533_v55 }
 0x115   : > { %3350 = vmatmul.msk.f32.gmra.mxu0 %vm298_vm0, %v516_v39 }
 0x116   : > { %v535_v47 = vmul.f32 %v3707_v24, %v534_v45 }
 0x118   : > { %v536_v52 = vadd.f32 %v3707_v24, %v535_v47 }
 0x11a   : > { %v540_v17 = vsel %vm539_vm5, %v3707_v24, %v536_v52 }
 0x11b   : > { %v545_v18 = vsel %vm542_vm6, %v544_v0, %v540_v17 }
 0x11c   : > { %v546_v38 = vmul.f32 %v4411_v60, %v545_v18 }
 0x11d   : > { %3351 = vmatmul.msk.f32.gmra.mxu0 %vm298_vm0, %v531_v3 }
 0x125   : > { %3352 = vmatmul.msk.f32.gmra.mxu0 %vm298_vm0, %v546_v38 }
 0x16a   : > { %v868_v27 = vpop.f32.mrf.mxu0 }
 0x16b   : > { %v892_v5 = vsub.f32 1.0, %v868_v27 }
 0x16d   : > { %v900_v63 = vmax.f32 %v892_v5, 0.0 }
 0x16f   : > { %v908_v61 = vmul.f32 16777216.0, %v900_v63 }
 0x171   : > { %vm3545_vm8 = vcmp.lt.s32.totalorder %v908_v61, 0  ;;  %v3546_v62 = vceil.f32 %v908_v61  ;;  %v3547_v21 = vfloor.f32 %v908_v61 }
 0x172   : > { %v871_v35 = vpop.f32.mrf.mxu0 }
 0x173   : > { %v3548_v53 = vsel %vm3545_vm8, %v3546_v62, %v3547_v21  ;;  %v893_v13 = vsub.f32 1.0, %v871_v35 }
 0x174   : > { %v3549_v54 = vcvt.f32.s32 %v3548_v53  ;;  %v3710_v53 = vld [vmem:[%s3897_s11 + $0x8] sm:$0xff] }
 0x175   : > { %v901_v8 = vmax.f32 %v893_v13, 0.0  ;;  %3434 = vmatmul.msk.f32.gmra.mxu2 %vm298_vm0, %v3710_v53 }
 0x176   : > { %vm924_vm7 = vcmp.lt.s32.totalorder %v3549_v54, 33554431 }
 0x177   : > { %v909_v19 = vmul.f32 16777216.0, %v901_v8  ;;  %v925_v51 = vsel %vm924_vm7, %v3549_v54, 33554431 }
 0x178   : > { %v942_v57 = vmul.u32 64, %v925_v51 }
 0x179   : > { %vm3550_vm10 = vcmp.lt.s32.totalorder %v909_v19, 0  ;;  %v3551_v28 = vceil.f32 %v909_v19  ;;  %v3552_v33 = vfloor.f32 %v909_v19 }
 0x17a   : > { %v874_v2 = vpop.f32.mrf.mxu0  ;;  %v4418_v50 = vadd.s32 %v942_v57, %v4415_v23 }
 0x17b   : > { %v3553_v1 = vsel %vm3550_vm10, %v3551_v28, %v3552_v33  ;;  %v894_v32 = vsub.f32 1.0, %v874_v2 }
 0x17c   : > { %v3554_v58 = vcvt.f32.s32 %v3553_v1  ;;  %v4422_v43 = vsel %vm958_vm11, %v4418_v50, 2147483647 }
 0x17d   : > { %v902_v49 = vmax.f32 %v894_v32, 0.0  ;;  %v961_v16 = vshra.s32 %v4422_v43, 16 }
 0x17e   : > { %vm926_vm9 = vcmp.lt.s32.totalorder %v3554_v58, 33554431 }
 0x17f   : > { %v910_v25 = vmul.f32 16777216.0, %v902_v49  ;;  %v4425_v26 = vcvt.s32.f32 %v961_v16  ;;  %v927_v6 = vsel %vm926_vm9, %v3554_v58, 33554431 }
 0x180   : > { %v943_v29 = vmul.u32 64, %v927_v6 }
 0x181   : > { %vm3555_vm12 = vcmp.lt.s32.totalorder %v910_v25, 0  ;;  %v3556_v10 = vceil.f32 %v910_v25  ;;  %v3557_v15 = vfloor.f32 %v910_v25  ;;  %964 = vmin.xlane.f32.xlu1 %v4425_v26  ;;  %v3711_v25 = vld [vmem:[%s3897_s11 + $0x10] sm:$0xff] }
 0x182   : > { %v877_v42 = vpop.f32.mrf.mxu0  ;;  %v4429_v46 = vadd.s32 %v943_v29, %v4415_v23  ;;  %3435 = vmatmul.msk.f32.gmra.mxu2 %vm298_vm0, %v3711_v25 }
 0x183   : > { %v3558_v59 = vsel %vm3555_vm12, %v3556_v10, %v3557_v15  ;;  %v895_v11 = vsub.f32 1.0, %v877_v42 }
 0x184   : > { %v3559_v31 = vcvt.f32.s32 %v3558_v59  ;;  %v4433_v48 = vsel %vm958_vm11, %v4429_v46, 2147483647 }
 0x185   : > { %v903_v4 = vmax.f32 %v895_v11, 0.0  ;;  %v976_v56 = vshra.s32 %v4433_v48, 16 }
 0x186   : > { %vm928_vm13 = vcmp.lt.s32.totalorder %v3559_v31, 33554431 }
 0x187   : > { %v911_v30 = vmul.f32 16777216.0, %v903_v4  ;;  %v4436_v34 = vcvt.s32.f32 %v976_v56  ;;  %v929_v36 = vsel %vm928_vm13, %v3559_v31, 33554431 }
 0x188   : > { %v944_v40 = vmul.u32 64, %v929_v36  ;;  %v3712_v36 = vld [vmem:[%s3897_s11 + $0x18] sm:$0xff] }
 0x189   : > { %vm3560_vm14 = vcmp.lt.s32.totalorder %v911_v30, 0  ;;  %v3561_v39 = vceil.f32 %v911_v30  ;;  %v3562_v20 = vfloor.f32 %v911_v30  ;;  %979 = vmin.xlane.f32.xlu2 %v4436_v34 }
 0x18a   : > { %v880_v12 = vpop.f32.mrf.mxu0  ;;  %v4446_v41 = vadd.s32 %v944_v40, %v4415_v23  ;;  %3436 = vmatmul.msk.f32.gmra.mxu2 %vm298_vm0, %v3712_v36 }
 0x18b   : > { %v3563_v7 = vsel %vm3560_vm14, %v3561_v39, %v3562_v20  ;;  %v896_v3 = vsub.f32 1.0, %v880_v12 }
 0x18c   : > { %v3564_v24 = vcvt.f32.s32 %v3563_v7  ;;  %v4450_v55 = vsel %vm958_vm11, %v4446_v41, 2147483647  ;;  %v3713_v7 = vld [vmem:[%s3897_s11 + $0x20] sm:$0xff] }
 0x18d   : > { %v904_v22 = vmax.f32 %v896_v3, 0.0  ;;  %v991_v45 = vshra.s32 %v4450_v55, 16 }
 0x18e   : > { %vm930_vm1 = vcmp.lt.s32.totalorder %v3564_v24, 33554431 }
 0x18f   : > { %v912_v47 = vmul.f32 16777216.0, %v904_v22  ;;  %v4455_v0 = vcvt.s32.f32 %v991_v45  ;;  %v931_v52 = vsel %vm930_vm1, %v3564_v24, 33554431  ;;  %v3714_v24 = vld [vmem:[%s3897_s11 + $0x28] sm:$0xff]  ;;  %v3715_v22 = vld [vmem:[%s3897_s11 + $0x30] sm:$0xff]  ;;  %v3716_v45 = vld [vmem:[%s3897_s11 + $0x38] sm:$0xff] }
 0x190   : > { %v945_v17 = vmul.u32 64, %v931_v52  ;;  %s3332_s11 = sshll.u32 %s255_s10, 6 }
 0x191   : > { %vm3565_vm2 = vcmp.lt.s32.totalorder %v912_v47, 0  ;;  %v3566_v18 = vceil.f32 %v912_v47  ;;  %v3567_v38 = vfloor.f32 %v912_v47  ;;  %994 = vmin.xlane.f32.xlu0 %v4455_v0  ;;  %s5984_s12 = scalar_lea.vmem [#allocation3], %s3332_s11 }
 0x192   : > { %v883_v27 = vpop.f32.mrf.mxu0  ;;  %v4459_v5 = vadd.s32 %v945_v17, %v4415_v23  ;;  %3437 = vmatmul.msk.f32.gmra.mxu2 %vm298_vm0, %v3713_v7  ;;  %s3233_s17 = sshll.u32 %s5984_s12, 4  ;;  %s3234_s17 = int_to_ptr.vmem [resolvable:$true] %s3233_s17 }
 0x193   : > { %v3568_v63 = vsel %vm3565_vm2, %v3566_v18, %v3567_v38  ;;  %v897_v61 = vsub.f32 1.0, %v883_v27 }
 0x194   : > { %v3569_v62 = vcvt.f32.s32 %v3568_v63  ;;  %v4463_v21 = vsel %vm958_vm11, %v4459_v5, 2147483647 }
 0x195   : > { %v905_v35 = vmax.f32 %v897_v61, 0.0  ;;  %v1006_v9 = vshra.s32 %v4463_v21, 16 }
 0x196   : > { %vm932_vm3 = vcmp.lt.s32.totalorder %v3569_v62, 33554431 }
 0x197   : > { %v913_v13 = vmul.f32 16777216.0, %v905_v35  ;;  %v4468_v54 = vcvt.s32.f32 %v1006_v9  ;;  %v933_v8 = vsel %vm932_vm3, %v3569_v62, 33554431  ;;  %v960_v35 = vand.u32 65535, %v4422_v43 }
 0x198   : > { %v946_v19 = vmul.u32 64, %v933_v8 }
 0x199   : > { %vm3570_vm4 = vcmp.lt.s32.totalorder %v913_v13, 0  ;;  %v3571_v51 = vceil.f32 %v913_v13  ;;  %v3572_v57 = vfloor.f32 %v913_v13  ;;  %1009 = vmin.xlane.f32.xlu1 %v4468_v54  ;;  %v962_v13 = vcvt.s32.f32 %v960_v35 }
 0x19a   : > { %v886_v28 = vpop.f32.mrf.mxu0  ;;  %v4472_v33 = vadd.s32 %v946_v19, %v4415_v23  ;;  %3438 = vmatmul.msk.f32.gmra.mxu2 %vm298_vm0, %v3714_v24 }
 0x19b   : > { %v3573_v2 = vsel %vm3570_vm4, %v3571_v51, %v3572_v57  ;;  %v898_v1 = vsub.f32 1.0, %v886_v28  ;;  %v975_v51 = vand.u32 65535, %v4433_v48 }
 0x19c   : > { %v3574_v32 = vcvt.f32.s32 %v3573_v2  ;;  %v4476_v58 = vsel %vm958_vm11, %v4472_v33, 2147483647 }
 0x19d   : > { %v906_v49 = vmax.f32 %v898_v1, 0.0  ;;  %v1021_v16 = vshra.s32 %v4476_v58, 16  ;;  %v977_v28 = vcvt.s32.f32 %v975_v51 }
 0x19e   : > { %vm934_vm15 = vcmp.lt.s32.totalorder %v3574_v32, 33554431 }
 0x19f   : > { %v914_v6 = vmul.f32 16777216.0, %v906_v49  ;;  %v4481_v29 = vcvt.s32.f32 %v1021_v16  ;;  %v935_v10 = vsel %vm934_vm15, %v3574_v32, 33554431  ;;  %v1005_v16 = vand.u32 65535, %v4463_v21 }
 0x1a0   : > { %v947_v15 = vmul.u32 64, %v935_v10  ;;  %v4548_v10 = vpop.f32.mrf.mxu2 }
 0x1a1   : > { %vm3575_vm5 = vcmp.lt.s32.totalorder %v914_v6, 0  ;;  %v3576_v42 = vceil.f32 %v914_v6  ;;  %v3577_v59 = vfloor.f32 %v914_v6  ;;  %1024 = vmin.xlane.f32.xlu2 %v4481_v29  ;;  %v1007_v6 = vcvt.s32.f32 %v1005_v16 }
 0x1a2   : > { %v4485_v11 = vadd.s32 %v947_v15, %v4415_v23  ;;  %3439 = vmatmul.msk.f32.gmra.mxu2 %vm298_vm0, %v3715_v22  ;;  %v889_v37 = vpop.f32.mrf.mxu0 }
 0x1a3   : > { %v3578_v31 = vsel %vm3575_vm5, %v3576_v42, %v3577_v59  ;;  %v899_v47 = vsub.f32 1.0, %v889_v37 }
 0x1a4   : > { %v3579_v4 = vcvt.f32.s32 %v3578_v31  ;;  %v4489_v56 = vsel %vm958_vm11, %v4485_v11, 2147483647 }
 0x1a5   : > { %v1036_v30 = vshra.s32 %v4489_v56, 16  ;;  %v907_v52 = vmax.f32 %v899_v47, 0.0  ;;  %v1035_v21 = vand.u32 65535, %v4489_v56 }
 0x1a6   : > { %vm936_vm6 = vcmp.lt.s32.totalorder %v3579_v4, 33554431 }
 0x1a7   : > { %v4494_v40 = vcvt.s32.f32 %v1036_v30  ;;  %v937_v39 = vsel %vm936_vm6, %v3579_v4, 33554431  ;;  %v915_v17 = vmul.f32 16777216.0, %v907_v52 }
 0x1a8   : > { %v948_v20 = vmul.u32 64, %v937_v39 }
 0x1a9   : > { %1039 = vmin.xlane.f32.xlu0 %v4494_v40  ;;  %v3581_v18 = vceil.f32 %v915_v17  ;;  %v3582_v38 = vfloor.f32 %v915_v17  ;;  %vm3580_vm8 = vcmp.lt.s32.totalorder %v915_v17, 0 }
 0x1aa   : > { %v4498_v44 = vadd.s32 %v948_v20, %v4415_v23  ;;  %3440 = vmatmul.msk.f32.gmra.mxu2 %vm298_vm0, %v3716_v45 }
 0x1ab   : > { %v3583_v27 = vsel %vm3580_vm8, %v3581_v18, %v3582_v38 }
 0x1ac   : > { %v4502_v14 = vsel %vm958_vm11, %v4498_v44, 2147483647  ;;  %v3584_v63 = vcvt.f32.s32 %v3583_v27  ;;  %v6071_v27 = vmov 0.0  }
 0x1ad   : > { %v1051_v12 = vshra.s32 %v4502_v14, 16  ;;  %v1050_v4 = vand.u32 65535, %v4502_v14 }
 0x1ae   : > { %vm938_vm7 = vcmp.lt.s32.totalorder %v3584_v63, 33554431 }
 0x1af   : > { %v4507_v3 = vcvt.s32.f32 %v1051_v12  ;;  %v939_v61 = vsel %vm938_vm7, %v3584_v63, 33554431 }
 0x1b0   : > { %v949_v62 = vmul.u32 64, %v939_v61 }
 0x1b1   : > { %1054 = vmin.xlane.f32.xlu2 %v4507_v3 }
 0x1b2   : > { %v4518_v9 = vadd.s32 %v949_v62, %v4415_v23 }
 0x1b4   : > { %v4526_v19 = vsel %vm958_vm11, %v4518_v9, 2147483647 }
 0x1b5   : > { %v1066_v57 = vshra.s32 %v4526_v19, 16  ;;  %v1065_v37 = vand.u32 65535, %v4526_v19 }
 0x1b7   : > { %v4532_v2 = vcvt.s32.f32 %v1066_v57  ;;  %v1067_v38 = vcvt.s32.f32 %v1065_v37 }
 0x1f4   : > { %v4520_v53 = vpop.xlane.xlu1 %964 }
 0x1f5   : > { %vm966_vm10 = vcmp.eq.f32.partialorder %v4425_v26, %v4520_v53  ;;  %v990_v26 = vand.u32 65535, %v4450_v55  ;;  %v1020_v55 = vand.u32 65535, %v4476_v58  ;;  %v971_v14 = vcvt.f32.s32 %v4520_v53 }
 0x1f6   : > { %v967_v8 = vsel %vm966_vm10, %v962_v13, inf }
 0x1f7   : > { %968 = vmin.xlane.f32.xlu1 %v967_v8  ;;  %v992_v49 = vcvt.s32.f32 %v990_v26  ;;  %v1022_v42 = vcvt.s32.f32 %v1020_v55  ;;  %v972_v24 = vshll.u32 %v971_v14, 16 }
 0x1f8   : > { %v4555_v59 = vpop.f32.mrf.mxu2 }
 0x1fc   : > { %v4530_v43 = vpop.xlane.xlu2 %979 }
 0x1fd   : > { %vm981_vm9 = vcmp.eq.f32.partialorder %v4436_v34, %v4530_v43  ;;  %v986_v47 = vcvt.f32.s32 %v4530_v43 }
 0x1fe   : > { %v982_v1 = vsel %vm981_vm9, %v977_v28, inf }
 0x1ff   : > { %1069 = vmin.xlane.f32.xlu1 %v4532_v2  ;;  %983 = vmin.xlane.f32.xlu0 %v982_v1  ;;  %v987_v62 = vshll.u32 %v986_v47, 16 }
 0x204   : > { %v4538_v32 = vpop.xlane.xlu0 %994 }
 0x205   : > { %vm996_vm12 = vcmp.eq.f32.partialorder %v4455_v0, %v4538_v32  ;;  %v4562_v30 = vpop.f32.mrf.mxu2 }
 0x206   : > { %v997_v48 = vsel %vm996_vm12, %v992_v49, inf }
 0x207   : > { %998 = vmin.xlane.f32.xlu2 %v997_v48 }
 0x20c   : > { %v4543_v25 = vpop.xlane.xlu1 %1009 }
 0x20d   : > { %vm1011_vm13 = vcmp.eq.f32.partialorder %v4468_v54, %v4543_v25  ;;  %v1037_v54 = vcvt.s32.f32 %v1035_v21  ;;  %v4568_v39 = vpop.f32.mrf.mxu2 }
 0x20e   : > { %v1012_v34 = vsel %vm1011_vm13, %v1007_v6, inf }
 0x20f   : > { %1013 = vmin.xlane.f32.xlu0 %v1012_v34  ;;  %v1016_v34 = vcvt.f32.s32 %v4543_v25 }
 0x214   : > { %v4550_v15 = vpop.xlane.xlu2 %1024 }
 0x215   : > { %vm1026_vm14 = vcmp.eq.f32.partialorder %v4481_v29, %v4550_v15  ;;  %v1052_v29 = vcvt.s32.f32 %v1050_v4  ;;  %v4570_v20 = vpop.f32.mrf.mxu2 }
 0x216   : > { %v1027_v0 = vsel %vm1026_vm14, %v1022_v42, inf }
 0x217   : > { %1028 = vmin.xlane.f32.xlu1 %v1027_v0 }
 0x21c   : > { %v4557_v31 = vpop.xlane.xlu0 %1039 }
 0x21d   : > { %vm1041_vm1 = vcmp.eq.f32.partialorder %v4494_v40, %v4557_v31  ;;  %v4572_v12 = vpop.f32.mrf.mxu2 }
 0x21e   : > { %v1042_v58 = vsel %vm1041_vm1, %v1037_v54, inf  ;;  %v1017_v54 = vshll.u32 %v1016_v34, 16 }
 0x21f   : > { %1043 = vmin.xlane.f32.xlu2 %v1042_v58 }
 0x224   : > { %v4564_v36 = vpop.xlane.xlu2 %1054 }
 0x225   : > { %vm1056_vm2 = vcmp.eq.f32.partialorder %v4507_v3, %v4564_v36  ;;  %v4574_v40 = vpop.f32.mrf.mxu2 }
 0x226   : > { %v1057_v56 = vsel %vm1056_vm2, %v1052_v29, inf }
 0x227   : > { %1058 = vmin.xlane.f32.xlu0 %v1057_v56 }
 0x22d   : > { %v4576_v7 = vpop.f32.mrf.mxu2 }
 0x22e   : > { %2905 = vmatpush.msrb.mxu0 %v4576_v7  ;;  %3522 = vmatpush.msrb.mxu2 %v4576_v7 }
 0x22f   : > { %3523 = vmatpush.msra.mxu3 %v4576_v7 }
 0x230   : > { %2906 = vmatpush.msrb.mxu0 %v4574_v40  ;;  %3525 = vmatpush.msrb.mxu2 %v4574_v40 }
 0x231   : > { %3526 = vmatpush.msra.mxu3 %v4574_v40 }
 0x232   : > { %2907 = vmatpush.msrb.mxu0 %v4572_v12  ;;  %3528 = vmatpush.msrb.mxu2 %v4572_v12 }
 0x233   : > { %3529 = vmatpush.msra.mxu3 %v4572_v12 }
 0x234   : > { %2908 = vmatpush.msrb.mxu0 %v4570_v20  ;;  %3531 = vmatpush.msrb.mxu2 %v4570_v20 }
 0x235   : > { %3532 = vmatpush.msra.mxu3 %v4570_v20 }
 0x236   : > { %2909 = vmatpush.msrb.mxu0 %v4568_v39  ;;  %3534 = vmatpush.msrb.mxu2 %v4568_v39 }
 0x237   : > { %3535 = vmatpush.msra.mxu3 %v4568_v39 }
 0x238   : > { %2910 = vmatpush.msrb.mxu0 %v4562_v30  ;;  %3537 = vmatpush.msrb.mxu2 %v4562_v30 }
 0x239   : > { %3538 = vmatpush.msra.mxu3 %v4562_v30 }
 0x23a   : > { %2911 = vmatpush.msrb.mxu0 %v4555_v59  ;;  %3540 = vmatpush.msrb.mxu2 %v4555_v59 }
 0x23b   : > { %3541 = vmatpush.msra.mxu3 %v4555_v59 }
 0x23c   : > { %2912 = vmatpush.msrb.mxu0 %v4548_v10  ;;  %3543 = vmatpush.msrb.mxu2 %v4548_v10 }
 0x23d   : > { %3544 = vmatpush.msra.mxu3 %v4548_v10 }
 0x26a   : > { %v969_v3 = vpop.xlane.xlu1 %968 }
 0x26b   : > { %v970_v22 = vcvt.f32.s32 %v969_v3 }
 0x26d   : > { %v973_v45 = vadd.s32 %v972_v24, %v970_v22 }
 0x26f   : > { %v1079_v52 = vand.u32 63, %v973_v45 }
 0x271   : > { %vm1087_vm3 = vcmp.eq.s32.totalorder %v4415_v23, %v1079_v52 }
 0x272   : > { %v4606_v17 = vpop.xlane.xlu1 %1069  ;;  %v984_v18 = vpop.xlane.xlu0 %983  ;;  %v3353_v63 = vsel %vm1087_vm3, 1.0, %v6071_v27  ;;  %v4610_v61 = vsel %vm1087_vm3, 2147483647, %v4418_v50  ;;  %v1001_v50 = vcvt.f32.s32 %v4538_v32 }
 0x273   : > { %v985_v35 = vcvt.f32.s32 %v984_v18  ;;  %vm1071_vm4 = vcmp.eq.f32.partialorder %v4532_v2, %v4606_v17  ;;  %1111 = vst.msk [vmem:[#allocation2] sm:$0xff] %vm958_vm11, %v3353_v63  ;;  %v4617_v53 = vsel %vm958_vm11, %v4610_v61, 2147483647 }
 0x274   : > { %v1072_v13 = vsel %vm1071_vm4, %v1067_v38, inf  ;;  %v1129_v8 = vshra.s32 %v4617_v53, 16  ;;  %v1002_v26 = vshll.u32 %v1001_v50, 16 }
 0x275   : > { %v988_v19 = vadd.s32 %v987_v62, %v985_v35  ;;  %1073 = vmin.xlane.f32.xlu2 %v1072_v13 }
 0x276   : > { %v4620_v51 = vcvt.s32.f32 %v1129_v8 }
 0x277   : > { %v1080_v57 = vand.u32 63, %v988_v19 }
 0x278   : > { %1132 = vmin.xlane.f32.xlu1 %v4620_v51 }
 0x279   : > { %vm1088_vm15 = vcmp.eq.s32.totalorder %v4415_v23, %v1080_v57 }
 0x27a   : > { %v999_v43 = vpop.xlane.xlu2 %998  ;;  %v2609_v28 = vld [vmem:[#allocation2] sm:$0xff]  ;;  %v3354_v2 = vsel %vm1088_vm15, 1.0, %v6071_v27  ;;  %v4627_v1 = vsel %vm1088_vm15, 2147483647, %v4429_v46 }
 0x27b   : > { %v1000_v49 = vcvt.f32.s32 %v999_v43  ;;  %3441 = vmatmul.msk.f32.vlgmr.msrb.gmra.mxu0 %vm958_vm11, %v2609_v28  ;;  %1112 = vst.msk [vmem:[#allocation2 + $0x8] sm:$0xff] %vm958_vm11, %v3354_v2  ;;  %v4633_v32 = vsel %vm958_vm11, %v4627_v1, 2147483647  ;;  %v1061_v2 = vcvt.f32.s32 %v4564_v36 }
 0x27c   : > { %v1144_v48 = vshra.s32 %v4633_v32, 16 }
 0x27d   : > { %v1003_v16 = vadd.s32 %v1002_v26, %v1000_v49  ;;  %v1062_v34 = vshll.u32 %v1061_v2, 16 }
 0x27e   : > { %v4636_v6 = vcvt.s32.f32 %v1144_v48 }
 0x27f   : > { %v1081_v55 = vand.u32 63, %v1003_v16 }
 0x280   : > { %1147 = vmin.xlane.f32.xlu0 %v4636_v6 }
 0x281   : > { %vm1089_vm5 = vcmp.eq.s32.totalorder %v4415_v23, %v1081_v55 }
 0x282   : > { %v1014_v46 = vpop.xlane.xlu0 %1013  ;;  %v2610_v42 = vld [vmem:[#allocation2 + $0x8] sm:$0xff]  ;;  %v4642_v0 = vsel %vm1089_vm5, 2147483647, %v4446_v41  ;;  %v3355_v21 = vsel %vm1089_vm5, 1.0, %v6071_v27  ;;  %v1031_v41 = vcvt.f32.s32 %v4550_v15 }
 0x283   : > { %v1015_v58 = vcvt.f32.s32 %v1014_v46  ;;  %3442 = vmatmul.msk.f32.gmra.mxu0 %vm958_vm11, %v2610_v42  ;;  %v4648_v4 = vsel %vm958_vm11, %v4642_v0, 2147483647  ;;  %1113 = vst.msk [vmem:[#allocation2 + $0x10] sm:$0xff] %vm958_vm11, %v3355_v21 }
 0x284   : > { %v1159_v25 = vshra.s32 %v4648_v4, 16  ;;  %v1032_v37 = vshll.u32 %v1031_v41, 16 }
 0x285   : > { %v1018_v29 = vadd.s32 %v1017_v54, %v1015_v58 }
 0x286   : > { %v4652_v56 = vcvt.s32.f32 %v1159_v25 }
 0x287   : > { %v1082_v14 = vand.u32 63, %v1018_v29 }
 0x288   : > { %1162 = vmin.xlane.f32.xlu1 %v4652_v56 }
 0x289   : > { %vm1090_vm6 = vcmp.eq.s32.totalorder %v4415_v23, %v1082_v14 }
 0x28a   : > { %v1029_v3 = vpop.xlane.xlu1 %1028  ;;  %v2611_v24 = vld [vmem:[#allocation2 + $0x10] sm:$0xff]  ;;  %v4658_v22 = vsel %vm1090_vm6, 2147483647, %v4459_v5  ;;  %v3356_v45 = vsel %vm1090_vm6, 1.0, %v6071_v27  ;;  %v1046_v5 = vcvt.f32.s32 %v4557_v31 }
 0x28b   : > { %v1030_v47 = vcvt.f32.s32 %v1029_v3  ;;  %3443 = vmatmul.msk.f32.gmra.mxu0 %vm958_vm11, %v2611_v24  ;;  %v4664_v52 = vsel %vm958_vm11, %v4658_v22, 2147483647  ;;  %1114 = vst.msk [vmem:[#allocation2 + $0x18] sm:$0xff] %vm958_vm11, %v3356_v45  ;;  %v1128_v24 = vand.u32 65535, %v4617_v53 }
 0x28c   : > { %v1174_v15 = vshra.s32 %v4664_v52, 16  ;;  %v1047_v19 = vshll.u32 %v1046_v5, 16 }
 0x28d   : > { %v1033_v18 = vadd.s32 %v1032_v37, %v1030_v47  ;;  %v1130_v5 = vcvt.s32.f32 %v1128_v24 }
 0x28e   : > { %v4668_v38 = vcvt.s32.f32 %v1174_v15 }
 0x28f   : > { %v1083_v63 = vand.u32 63, %v1033_v18 }
 0x290   : > { %1177 = vmin.xlane.f32.xlu2 %v4668_v38 }
 0x291   : > { %vm1091_vm8 = vcmp.eq.s32.totalorder %v4415_v23, %v1083_v63 }
 0x292   : > { %v1044_v62 = vpop.xlane.xlu2 %1043  ;;  %v2612_v35 = vld [vmem:[#allocation2 + $0x18] sm:$0xff]  ;;  %v3357_v13 = vsel %vm1091_vm8, 1.0, %v6071_v27  ;;  %v4675_v8 = vsel %vm1091_vm8, 2147483647, %v4472_v33 }
 0x293   : > { %v1045_v50 = vcvt.f32.s32 %v1044_v62  ;;  %3444 = vmatmul.msk.f32.gmra.mxu0 %vm958_vm11, %v2612_v35  ;;  %1115 = vst.msk [vmem:[#allocation2 + $0x20] sm:$0xff] %vm958_vm11, %v3357_v13  ;;  %v4681_v31 = vsel %vm958_vm11, %v4675_v8, 2147483647  ;;  %v1143_v35 = vand.u32 65535, %v4633_v32 }
 0x294   : > { %v1189_v57 = vshra.s32 %v4681_v31, 16 }
 0x295   : > { %v1048_v43 = vadd.s32 %v1047_v19, %v1045_v50  ;;  %v1145_v50 = vcvt.s32.f32 %v1143_v35 }
 0x296   : > { %v4684_v28 = vcvt.s32.f32 %v1189_v57  ;;  %v1158_v57 = vand.u32 65535, %v4648_v4 }
 0x297   : > { %v1084_v26 = vand.u32 63, %v1048_v43 }
 0x298   : > { %1192 = vmin.xlane.f32.xlu0 %v4684_v28 }
 0x299   : > { %vm1092_vm7 = vcmp.eq.s32.totalorder %v4415_v23, %v1084_v26  ;;  %v1160_v26 = vcvt.s32.f32 %v1158_v57 }
 0x29a   : > { %v1059_v33 = vpop.xlane.xlu0 %1058  ;;  %v2613_v49 = vld [vmem:[#allocation2 + $0x20] sm:$0xff]  ;;  %v4690_v48 = vsel %vm1092_vm7, 2147483647, %v4485_v11  ;;  %v3358_v16 = vsel %vm1092_vm7, 1.0, %v6071_v27 }
 0x29b   : > { %v1060_v55 = vcvt.f32.s32 %v1059_v33  ;;  %3445 = vmatmul.msk.f32.gmra.mxu0 %vm958_vm11, %v2613_v49  ;;  %v4696_v46 = vsel %vm958_vm11, %v4690_v48, 2147483647  ;;  %1116 = vst.msk [vmem:[#allocation2 + $0x28] sm:$0xff] %vm958_vm11, %v3358_v16 }
 0x29c   : > { %v1204_v36 = vshra.s32 %v4696_v46, 16 }
 0x29d   : > { %v1063_v42 = vadd.s32 %v1062_v34, %v1060_v55  ;;  %v1188_v34 = vand.u32 65535, %v4681_v31  ;;  %v2472_v55 = vld [vmem:[%s6067_s2 + $0x8] sm:$0xff] }
 0x29e   : > { %v4700_v21 = vcvt.s32.f32 %v1204_v36  ;;  %2515 = vmatpush.msra.mxu1 %v2472_v55 }
 0x29f   : > { %v1085_v54 = vand.u32 63, %v1063_v42  ;;  %v1190_v36 = vcvt.s32.f32 %v1188_v34  ;;  %v1203_v42 = vand.u32 65535, %v4696_v46  ;;  %v3719_v46 = vld [vmem:[%s3935_s14 + $0x10] sm:$0xff] }
 0x2a0   : > { %1207 = vmin.xlane.f32.xlu1 %v4700_v21 }
 0x2a1   : > { %vm1093_vm10 = vcmp.eq.s32.totalorder %v4415_v23, %v1085_v54 }
 0x2a2   : > { %v2614_v11 = vld [vmem:[#allocation2 + $0x28] sm:$0xff]  ;;  %v4705_v58 = vsel %vm1093_vm10, 2147483647, %v4498_v44  ;;  %v3359_v25 = vsel %vm1093_vm10, 1.0, %v6071_v27  ;;  %v1076_v44 = vcvt.f32.s32 %v4606_v17 }
 0x2a3   : > { %3446 = vmatmul.msk.f32.gmra.mxu0 %vm958_vm11, %v2614_v11  ;;  %v4711_v29 = vsel %vm958_vm11, %v4705_v58, 2147483647  ;;  %1117 = vst.msk [vmem:[#allocation2 + $0x30] sm:$0xff] %vm958_vm11, %v3359_v25  ;;  %v1205_v11 = vcvt.s32.f32 %v1203_v42  ;;  %v3723_v25 = vld [vmem:[%s3935_s14 + $0x30] sm:$0xff] }
 0x2a4   : > { %v1219_v41 = vshra.s32 %v4711_v29, 16  ;;  %v1077_v37 = vshll.u32 %v1076_v44, 16 }
 0x2a6   : > { %v4715_v14 = vcvt.s32.f32 %v1219_v41 }
 0x2a8   : > { %1222 = vmin.xlane.f32.xlu0 %v4715_v14 }
 0x2aa   : > { %v2615_v3 = vld [vmem:[#allocation2 + $0x30] sm:$0xff] }
 0x2ab   : > { %3447 = vmatmul.msk.f32.gmra.mxu0 %vm958_vm11, %v2615_v3 }
 0x2e8   : > { %v1074_v45 = vpop.xlane.xlu2 %1073 }
 0x2e9   : > { %v1075_v47 = vcvt.f32.s32 %v1074_v45 }
 0x2eb   : > { %v1078_v15 = vadd.s32 %v1077_v37, %v1075_v47  ;;  %v4721_v18 = vpop.xlane.xlu1 %1132 }
 0x2ec   : > { %vm1134_vm9 = vcmp.eq.f32.partialorder %v4620_v51, %v4721_v18 }
 0x2ed   : > { %v1086_v63 = vand.u32 63, %v1078_v15  ;;  %v1135_v62 = vsel %vm1134_vm9, %v1130_v5, inf }
 0x2ee   : > { %1136 = vmin.xlane.f32.xlu2 %v1135_v62 }
 0x2ef   : > { %vm1094_vm12 = vcmp.eq.s32.totalorder %v4415_v23, %v1086_v63 }
 0x2f0   : > { %v4728_v17 = vsel %vm1094_vm12, 2147483647, %v4518_v9  ;;  %v3360_v53 = vsel %vm1094_vm12, 1.0, %v6071_v27 }
 0x2f1   : > { %v4733_v13 = vsel %vm958_vm11, %v4728_v17, 2147483647  ;;  %1118 = vst.msk [vmem:[#allocation2 + $0x38] sm:$0xff] %vm958_vm11, %v3360_v53 }
 0x2f2   : > { %v1234_v51 = vshra.s32 %v4733_v13, 16  ;;  %v1233_v44 = vand.u32 65535, %v4733_v13 }
 0x2f3   : > { %v4737_v19 = vpop.xlane.xlu0 %1147 }
 0x2f4   : > { %vm1149_vm13 = vcmp.eq.f32.partialorder %v4636_v6, %v4737_v19  ;;  %v4741_v32 = vcvt.s32.f32 %v1234_v51  ;;  %v1173_v6 = vand.u32 65535, %v4664_v52  ;;  %v1154_v24 = vcvt.f32.s32 %v4737_v19 }
 0x2f5   : > { %v1150_v9 = vsel %vm1149_vm13, %v1145_v50, inf  ;;  %v1235_v15 = vcvt.s32.f32 %v1233_v44 }
 0x2f6   : > { %1151 = vmin.xlane.f32.xlu1 %v1150_v9  ;;  %1237 = vmin.xlane.f32.xlu2 %v4741_v32  ;;  %v1175_v16 = vcvt.s32.f32 %v1173_v6 }
 0x2f8   : > { %v2616_v43 = vld [vmem:[#allocation2 + $0x38] sm:$0xff] }
 0x2f9   : > { %3448 = vmatmul.msk.f32.gmra.mxu0 %vm958_vm11, %v2616_v43 }
 0x2fb   : > { %v4746_v2 = vpop.xlane.xlu1 %1162 }
 0x2fc   : > { %vm1164_vm14 = vcmp.eq.f32.partialorder %v4652_v56, %v4746_v2  ;;  %v2471_v56 = vld [vmem:[%s6067_s2] sm:$0xff]  ;;  %v1169_v51 = vcvt.f32.s32 %v4746_v2 }
 0x2fd   : > { %v1165_v33 = vsel %vm1164_vm14, %v1160_v26, inf  ;;  %2516 = vmatpush.msra.mxu1 %v2471_v56 }
 0x2fe   : > { %1166 = vmin.xlane.f32.xlu0 %v1165_v33  ;;  %v1170_v43 = vshll.u32 %v1169_v51, 16 }
 0x2ff   : > { %3521 = vmatpush.msrb.mxu1 %v4576_v7 }
 0x301   : > { %3524 = vmatpush.msrb.mxu1 %v4574_v40 }
 0x303   : > { %v4751_v49 = vpop.xlane.xlu2 %1177  ;;  %3527 = vmatpush.msrb.mxu1 %v4572_v12  ;;  %v1218_v12 = vand.u32 65535, %v4711_v29 }
 0x304   : > { %vm1179_vm1 = vcmp.eq.f32.partialorder %v4668_v38, %v4751_v49  ;;  %v3717_v38 = vld [vmem:[%s3935_s14] sm:$0xff] }
 0x305   : > { %v1180_v4 = vsel %vm1179_vm1, %v1175_v16, inf  ;;  %3425 = vmatmul.msk.f32.vlgmr.msra.gmra.mxu1 %vm298_vm0, %v3717_v38  ;;  %v1220_v40 = vcvt.s32.f32 %v1218_v12 }
 0x306   : > { %1181 = vmin.xlane.f32.xlu1 %v1180_v4  ;;  %3530 = vmatpush.msrb.mxu1 %v4570_v20  ;;  %v1184_v4 = vcvt.f32.s32 %v4751_v49 }
 0x308   : > { %3533 = vmatpush.msrb.mxu1 %v4568_v39  ;;  %v1185_v38 = vshll.u32 %v1184_v4, 16 }
 0x30a   : > { %3536 = vmatpush.msrb.mxu1 %v4562_v30  ;;  %v3721_v30 = vld [vmem:[%s3935_s14 + $0x20] sm:$0xff] }
 0x30b   : > { %v4762_v52 = vpop.xlane.xlu0 %1192 }
 0x30c   : > { %vm1194_vm2 = vcmp.eq.f32.partialorder %v4684_v28, %v4762_v52  ;;  %v3718_v28 = vld [vmem:[%s3935_s14 + $0x8] sm:$0xff]  ;;  %3539 = vmatpush.msrb.mxu1 %v4555_v59 }
 0x30d   : > { %v1195_v31 = vsel %vm1194_vm2, %v1190_v36, inf  ;;  %3426 = vmatmul.msk.f32.gmra.mxu1 %vm298_vm0, %v3718_v28  ;;  %v3722_v59 = vld [vmem:[%s3935_s14 + $0x28] sm:$0xff] }
 0x30e   : > { %1196 = vmin.xlane.f32.xlu2 %v1195_v31  ;;  %3542 = vmatpush.msrb.mxu1 %v4548_v10  ;;  %v1139_v10 = vcvt.f32.s32 %v4721_v18  ;;  %v1155_v18 = vshll.u32 %v1154_v24, 16 }
 0x310   : > { %v1140_v41 = vshll.u32 %v1139_v10, 16 }
 0x313   : > { %v4772_v54 = vpop.xlane.xlu1 %1207 }
 0x314   : > { %vm1209_vm3 = vcmp.eq.f32.partialorder %v4700_v21, %v4772_v54  ;;  %v3720_v21 = vld [vmem:[%s3935_s14 + $0x18] sm:$0xff] }
 0x315   : > { %v1210_v7 = vsel %vm1209_vm3, %v1205_v11, inf  ;;  %3427 = vmatmul.msk.f32.gmra.mxu1 %vm298_vm0, %v3719_v46 }
 0x316   : > { %1211 = vmin.xlane.f32.xlu0 %v1210_v7  ;;  %v1199_v7 = vcvt.f32.s32 %v4762_v52 }
 0x31b   : > { %v4783_v20 = vpop.xlane.xlu0 %1222 }
 0x31c   : > { %vm1224_vm4 = vcmp.eq.f32.partialorder %v4715_v14, %v4783_v20 }
 0x31d   : > { %v1225_v39 = vsel %vm1224_vm4, %v1220_v40, inf  ;;  %3428 = vmatmul.msk.f32.gmra.mxu1 %vm298_vm0, %v3720_v21  ;;  %v1200_v21 = vshll.u32 %v1199_v7, 16 }
 0x31e   : > { %1226 = vmin.xlane.f32.xlu1 %v1225_v39 }
 0x325   : > { %3429 = vmatmul.msk.f32.gmra.mxu1 %vm298_vm0, %v3721_v30 }
 0x32d   : > { %3430 = vmatmul.msk.f32.gmra.mxu1 %vm298_vm0, %v3722_v59 }
 0x335   : > { %3431 = vmatmul.msk.f32.gmra.mxu1 %vm298_vm0, %v3723_v25 }
 0x33d   : > { %3432 = vmatmul.msk.f32.gmra.mxu1 %vm298_vm0, %v4411_v60 }
 0x361   : > { %v1137_v29 = vpop.xlane.xlu2 %1136 }
 0x362   : > { %v1138_v14 = vcvt.f32.s32 %v1137_v29  ;;  %v1214_v29 = vcvt.f32.s32 %v4772_v54 }
 0x364   : > { %v1141_v3 = vadd.s32 %v1140_v41, %v1138_v14  ;;  %v1215_v24 = vshll.u32 %v1214_v29, 16 }
 0x366   : > { %v1247_v45 = vand.u32 63, %v1141_v3 }
 0x368   : > { %vm1255_vm15 = vcmp.eq.s32.totalorder %v4415_v23, %v1247_v45 }
 0x369   : > { %v1152_v37 = vpop.xlane.xlu1 %1151  ;;  %v4804_v47 = vpop.xlane.xlu2 %1237  ;;  %v4807_v5 = vsel %vm1255_vm15, 2147483647, %v4610_v61  ;;  %v3361_v60 = vsel %vm1255_vm15, 1.0, %v6071_v27 }
 0x36a   : > { %v1153_v63 = vcvt.f32.s32 %v1152_v37  ;;  %vm1239_vm0 = vcmp.eq.f32.partialorder %v4741_v32, %v4804_v47  ;;  %v4814_v62 = vsel %vm958_vm11, %v4807_v5, 2147483647  ;;  %1280 = vst.msk [vmem:[#allocation2 + $0x40] sm:$0xff] %vm958_vm11, %v3361_v60 }
 0x36b   : > { %v1240_v35 = vsel %vm1239_vm0, %v1235_v15, inf  ;;  %v1298_v53 = vshra.s32 %v4814_v62, 16 }
 0x36c   : > { %v1156_v13 = vadd.s32 %v1155_v18, %v1153_v63  ;;  %1241 = vmin.xlane.f32.xlu0 %v1240_v35 }
 0x36d   : > { %v4818_v61 = vcvt.s32.f32 %v1298_v53 }
 0x36e   : > { %v1248_v19 = vand.u32 63, %v1156_v13 }
 0x36f   : > { %1301 = vmin.xlane.f32.xlu2 %v4818_v61 }
 0x370   : > { %vm1256_vm5 = vcmp.eq.s32.totalorder %v4415_v23, %v1248_v19 }
 0x371   : > { %v1167_v50 = vpop.xlane.xlu0 %1166  ;;  %v2617_v32 = vld [vmem:[#allocation2 + $0x40] sm:$0xff]  ;;  %v3362_v9 = vsel %vm1256_vm5, 1.0, %v6071_v27  ;;  %v4825_v57 = vsel %vm1256_vm5, 2147483647, %v4627_v1 }
 0x372   : > { %v1168_v26 = vcvt.f32.s32 %v1167_v50  ;;  %3449 = vmatmul.msk.f32.gmra.mxu0 %vm958_vm11, %v2617_v32  ;;  %1281 = vst.msk [vmem:[#allocation2 + $0x48] sm:$0xff] %vm958_vm11, %v3362_v9  ;;  %v4831_v2 = vsel %vm958_vm11, %v4825_v57, 2147483647 }
 0x373   : > { %v1313_v33 = vshra.s32 %v4831_v2, 16 }
 0x374   : > { %v1171_v6 = vadd.s32 %v1170_v43, %v1168_v26 }
 0x375   : > { %v4834_v16 = vcvt.s32.f32 %v1313_v33 }
 0x376   : > { %v1249_v34 = vand.u32 63, %v1171_v6 }
 0x377   : > { %1316 = vmin.xlane.f32.xlu1 %v4834_v16 }
 0x378   : > { %vm1257_vm6 = vcmp.eq.s32.totalorder %v4415_v23, %v1249_v34 }
 0x379   : > { %v1182_v1 = vpop.xlane.xlu1 %1181  ;;  %v2618_v55 = vld [vmem:[#allocation2 + $0x48] sm:$0xff]  ;;  %v3363_v56 = vsel %vm1257_vm6, 1.0, %v6071_v27  ;;  %v4841_v36 = vsel %vm1257_vm6, 2147483647, %v4642_v0 }
 0x37a   : > { %v1183_v31 = vcvt.f32.s32 %v1182_v1  ;;  %3450 = vmatmul.msk.f32.gmra.mxu0 %vm958_vm11, %v2618_v55  ;;  %1282 = vst.msk [vmem:[#allocation2 + $0x50] sm:$0xff] %vm958_vm11, %v3363_v56  ;;  %v4847_v49 = vsel %vm958_vm11, %v4841_v36, 2147483647 }
 0x37b   : > { %v1328_v42 = vshra.s32 %v4847_v49, 16 }
 0x37c   : > { %v1186_v11 = vadd.s32 %v1185_v38, %v1183_v31  ;;  %v1244_v38 = vcvt.f32.s32 %v4804_v47  ;;  %v1312_v47 = vand.u32 65535, %v4831_v2 }
 0x37d   : > { %v4850_v28 = vcvt.s32.f32 %v1328_v42  ;;  %v1297_v42 = vand.u32 65535, %v4814_v62 }
 0x37e   : > { %v1250_v12 = vand.u32 63, %v1186_v11  ;;  %v1245_v7 = vshll.u32 %v1244_v38, 16  ;;  %v1314_v2 = vcvt.s32.f32 %v1312_v47 }
 0x37f   : > { %1331 = vmin.xlane.f32.xlu2 %v4850_v28 }
 0x380   : > { %vm1258_vm8 = vcmp.eq.s32.totalorder %v4415_v23, %v1250_v12 }
 0x381   : > { %v1197_v0 = vpop.xlane.xlu2 %1196  ;;  %v2619_v40 = vld [vmem:[#allocation2 + $0x50] sm:$0xff]  ;;  %v3364_v46 = vsel %vm1258_vm8, 1.0, %v6071_v27  ;;  %v4857_v39 = vsel %vm1258_vm8, 2147483647, %v4658_v22 }
 0x382   : > { %v1198_v30 = vcvt.f32.s32 %v1197_v0  ;;  %3451 = vmatmul.msk.f32.gmra.mxu0 %vm958_vm11, %v2619_v40  ;;  %1283 = vst.msk [vmem:[#allocation2 + $0x58] sm:$0xff] %vm958_vm11, %v3364_v46  ;;  %v4863_v52 = vsel %vm958_vm11, %v4857_v39, 2147483647  ;;  %v4917_v55 = vpop.f32.mrf.mxu1  ;;  %v1299_v46 = vcvt.s32.f32 %v1297_v42 }
 0x383   : > { %v1343_v59 = vshra.s32 %v4863_v52, 16 }
 0x384   : > { %v1201_v25 = vadd.s32 %v1200_v21, %v1198_v30 }
 0x385   : > { %v4866_v10 = vcvt.s32.f32 %v1343_v59  ;;  %v4931_v59 = vpop.f32.mrf.mxu0 }
 0x386   : > { %v1251_v41 = vand.u32 63, %v1201_v25 }
 0x387   : > { %1346 = vmin.xlane.f32.xlu0 %v4866_v10 }
 0x388   : > { %vm1259_vm7 = vcmp.eq.s32.totalorder %v4415_v23, %v1251_v41 }
 0x389   : > { %v1212_v22 = vpop.xlane.xlu0 %1211  ;;  %v2620_v14 = vld [vmem:[#allocation2 + $0x58] sm:$0xff]  ;;  %v4872_v3 = vsel %vm1259_vm7, 2147483647, %v4675_v8  ;;  %v3365_v44 = vsel %vm1259_vm7, 1.0, %v6071_v27  ;;  %v1229_v8 = vcvt.f32.s32 %v4783_v20 }
 0x38a   : > { %v1213_v45 = vcvt.f32.s32 %v1212_v22  ;;  %3452 = vmatmul.msk.f32.gmra.mxu0 %vm958_vm11, %v2620_v14  ;;  %v4878_v37 = vsel %vm958_vm11, %v4872_v3, 2147483647  ;;  %1284 = vst.msk [vmem:[#allocation2 + $0x60] sm:$0xff] %vm958_vm11, %v3365_v44  ;;  %v1327_v44 = vand.u32 65535, %v4847_v49 }
 0x38b   : > { %v1358_v54 = vshra.s32 %v4878_v37, 16  ;;  %v1230_v51 = vshll.u32 %v1229_v8, 16 }
 0x38c   : > { %v1216_v15 = vadd.s32 %v1215_v24, %v1213_v45  ;;  %v1329_v8 = vcvt.s32.f32 %v1327_v44 }
 0x38d   : > { %v4882_v60 = vcvt.s32.f32 %v1358_v54  ;;  %v4955_v24 = vpop.f32.mrf.mxu0 }
 0x38e   : > { %v1252_v18 = vand.u32 63, %v1216_v15 }
 0x38f   : > { %1361 = vmin.xlane.f32.xlu1 %v4882_v60 }
 0x390   : > { %vm1260_vm10 = vcmp.eq.s32.totalorder %v4415_v23, %v1252_v18  ;;  %v1342_v18 = vand.u32 65535, %v4863_v52 }
 0x391   : > { %v1227_v63 = vpop.xlane.xlu1 %1226  ;;  %v2621_v35 = vld [vmem:[#allocation2 + $0x60] sm:$0xff]  ;;  %v3366_v53 = vsel %vm1260_vm10, 1.0, %v6071_v27  ;;  %v4889_v13 = vsel %vm1260_vm10, 2147483647, %v4690_v48 }
 0x392   : > { %v1228_v19 = vcvt.f32.s32 %v1227_v63  ;;  %3453 = vmatmul.msk.f32.vlgmr.msrb.gmra.mxu1 %vm958_vm11, %v2621_v35  ;;  %1285 = vst.msk [vmem:[#allocation2 + $0x68] sm:$0xff] %vm958_vm11, %v3366_v53  ;;  %v4895_v20 = vsel %vm958_vm11, %v4889_v13, 2147483647  ;;  %v1344_v35 = vcvt.s32.f32 %v1342_v18 }
 0x393   : > { %v1373_v50 = vshra.s32 %v4895_v20, 16 }
 0x394   : > { %v1231_v32 = vadd.s32 %v1230_v51, %v1228_v19  ;;  %v1357_v19 = vand.u32 65535, %v4878_v37 }
 0x395   : > { %v4898_v9 = vcvt.s32.f32 %v1373_v50  ;;  %v4965_v63 = vpop.f32.mrf.mxu0 }
 0x396   : > { %v1253_v43 = vand.u32 63, %v1231_v32 }
 0x397   : > { %1376 = vmin.xlane.f32.xlu2 %v4898_v9 }
 0x398   : > { %vm1261_vm9 = vcmp.eq.s32.totalorder %v4415_v23, %v1253_v43 }
 0x399   : > { %v2622_v48 = vld [vmem:[#allocation2 + $0x68] sm:$0xff]  ;;  %v3367_v26 = vsel %vm1261_vm9, 1.0, %v6071_v27  ;;  %v4904_v33 = vsel %vm1261_vm9, 2147483647, %v4705_v58  ;;  %v4919_v58 = vpop.f32.mrf.mxu1 }
 0x39a   : > { %3454 = vmatmul.msk.f32.gmra.mxu1 %vm958_vm11, %v2622_v48  ;;  %1286 = vst.msk [vmem:[#allocation2 + $0x70] sm:$0xff] %vm958_vm11, %v3367_v26  ;;  %v4910_v6 = vsel %vm958_vm11, %v4904_v33, 2147483647 }
 0x39b   : > { %v1388_v4 = vshra.s32 %v4910_v6, 16 }
 0x39d   : > { %v4913_v34 = vcvt.s32.f32 %v1388_v4  ;;  %v4976_v32 = vpop.f32.mrf.mxu0 }
 0x39f   : > { %1391 = vmin.xlane.f32.xlu1 %v4913_v34 }
 0x3a1   : > { %v2623_v1 = vld [vmem:[#allocation2 + $0x70] sm:$0xff]  ;;  %v4921_v56 = vpop.f32.mrf.mxu1 }
 0x3a2   : > { %3455 = vmatmul.msk.f32.gmra.mxu1 %vm958_vm11, %v2623_v1  ;;  %v1387_v1 = vand.u32 65535, %v4910_v6 }
 0x3a5   : > { %v4987_v4 = vpop.f32.mrf.mxu0 }
 0x3a9   : > { %v4924_v31 = vpop.f32.mrf.mxu1 }
 0x3b1   : > { %v4939_v29 = vpop.f32.mrf.mxu1 }
 0x3b2   : > { %6087 = vst [vmem:[#allocation6_spill] sm:$0xff] %v4939_v29 }
 0x3b9   : > { %v4958_v54 = vpop.f32.mrf.mxu1 }
 0x3ba   : > { %6088 = vst [vmem:[#allocation7_spill] sm:$0xff] %v4958_v54 }
 0x3c1   : > { %v4971_v53 = vpop.f32.mrf.mxu1 }
 0x3c2   : > { %6089 = vst [vmem:[#allocation8_spill] sm:$0xff] %v4971_v53 }
 0x3c9   : > { %v4980_v43 = vpop.f32.mrf.mxu1 }
 0x3ca   : > { %6090 = vst [vmem:[#allocation9_spill] sm:$0xff] %v4980_v43 }
 0x3df   : > { %v1242_v11 = vpop.xlane.xlu0 %1241 }
 0x3e0   : > { %v1243_v12 = vcvt.f32.s32 %v1242_v11 }
 0x3e2   : > { %v1246_v0 = vadd.s32 %v1245_v7, %v1243_v12  ;;  %v4927_v40 = vpop.xlane.xlu2 %1301 }
 0x3e3   : > { %vm1303_vm12 = vcmp.eq.f32.partialorder %v4818_v61, %v4927_v40  ;;  %v1308_v12 = vcvt.f32.s32 %v4927_v40 }
 0x3e4   : > { %v1254_v21 = vand.u32 63, %v1246_v0  ;;  %v1304_v30 = vsel %vm1303_vm12, %v1299_v46, inf }
 0x3e5   : > { %1305 = vmin.xlane.f32.xlu0 %v1304_v30  ;;  %v1309_v46 = vshll.u32 %v1308_v12, 16 }
 0x3e6   : > { %vm1262_vm13 = vcmp.eq.s32.totalorder %v4415_v23, %v1254_v21 }
 0x3e7   : > { %v3368_v62 = vsel %vm1262_vm13, 1.0, %v6071_v27  ;;  %v4937_v25 = vsel %vm1262_vm13, 2147483647, %v4728_v17 }
 0x3e8   : > { %1287 = vst.msk [vmem:[#allocation2 + $0x78] sm:$0xff] %vm958_vm11, %v3368_v62  ;;  %v4944_v61 = vsel %vm958_vm11, %v4937_v25, 2147483647 }
 0x3e9   : > { %v1403_v41 = vshra.s32 %v4944_v61, 16  ;;  %v1402_v47 = vand.u32 65535, %v4944_v61 }
 0x3ea   : > { %v4947_v22 = vpop.xlane.xlu1 %1316 }
 0x3eb   : > { %vm1318_vm14 = vcmp.eq.f32.partialorder %v4834_v16, %v4947_v22  ;;  %v4951_v14 = vcvt.s32.f32 %v1403_v41  ;;  %v1323_v62 = vcvt.f32.s32 %v4947_v22 }
 0x3ec   : > { %v1319_v17 = vsel %vm1318_vm14, %v1314_v2, inf }
 0x3ed   : > { %1320 = vmin.xlane.f32.xlu2 %v1319_v17  ;;  %1406 = vmin.xlane.f32.xlu0 %v4951_v14  ;;  %v1404_v17 = vcvt.s32.f32 %v1402_v47 }
 0x3ef   : > { %v2624_v45 = vld [vmem:[#allocation2 + $0x78] sm:$0xff] }
 0x3f0   : > { %3456 = vmatmul.msk.f32.gmra.mxu1 %vm958_vm11, %v2624_v45  ;;  %v1324_v45 = vshll.u32 %v1323_v62, 16 }
 0x3f2   : > { %v4960_v15 = vpop.xlane.xlu2 %1331 }
 0x3f3   : > { %vm1333_vm1 = vcmp.eq.f32.partialorder %v4850_v28, %v4960_v15  ;;  %v1359_v28 = vcvt.s32.f32 %v1357_v19 }
 0x3f4   : > { %v1334_v16 = vsel %vm1333_vm1, %v1329_v8, inf }
 0x3f5   : > { %1335 = vmin.xlane.f32.xlu1 %v1334_v16 }
 0x3fa   : > { %v4967_v49 = vpop.xlane.xlu0 %1346 }
 0x3fb   : > { %vm1348_vm2 = vcmp.eq.f32.partialorder %v4866_v10, %v4967_v49  ;;  %v1372_v10 = vand.u32 65535, %v4895_v20  ;;  %v1389_v20 = vcvt.s32.f32 %v1387_v1 }
 0x3fc   : > { %v1349_v51 = vsel %vm1348_vm2, %v1344_v35, inf  ;;  %v1338_v35 = vcvt.f32.s32 %v4960_v15 }
 0x3fd   : > { %1350 = vmin.xlane.f32.xlu2 %v1349_v51  ;;  %v1374_v26 = vcvt.s32.f32 %v1372_v10 }
 0x3fe   : > { %v1339_v10 = vshll.u32 %v1338_v35, 16 }
 0x402   : > { %v4974_v50 = vpop.xlane.xlu1 %1361 }
 0x403   : > { %vm1363_vm3 = vcmp.eq.f32.partialorder %v4882_v60, %v4974_v50 }
 0x404   : > { %v1364_v52 = vsel %vm1363_vm3, %v1359_v28, inf }
 0x405   : > { %1365 = vmin.xlane.f32.xlu0 %v1364_v52 }
 0x40a   : > { %v4983_v48 = vpop.xlane.xlu2 %1376 }
 0x40b   : > { %vm1378_vm4 = vcmp.eq.f32.partialorder %v4898_v9, %v4983_v48  ;;  %v4998_v9 = vpop.f32.mrf.mxu0 }
 0x40c   : > { %v1379_v37 = vsel %vm1378_vm4, %v1374_v26, inf }
 0x40d   : > { %1380 = vmin.xlane.f32.xlu1 %v1379_v37 }
 0x40f   : > { %v4990_v38 = vpop.f32.mrf.mxu1 }
 0x412   : > { %v4994_v42 = vpop.xlane.xlu1 %1391 }
 0x413   : > { %vm1393_vm15 = vcmp.eq.f32.partialorder %v4913_v34, %v4994_v42 }
 0x414   : > { %v1394_v11 = vsel %vm1393_vm15, %v1389_v20, inf }
 0x415   : > { %1395 = vmin.xlane.f32.xlu2 %v1394_v11 }
 0x417   : > { %v5000_v7 = vpop.f32.mrf.mxu1 }
 0x458   : > { %v1306_v0 = vpop.xlane.xlu0 %1305 }
 0x459   : > { %v1307_v21 = vcvt.f32.s32 %v1306_v0 }
 0x45b   : > { %v1310_v30 = vadd.s32 %v1309_v46, %v1307_v21 }
 0x45d   : > { %v1416_v34 = vand.u32 63, %v1310_v30 }
 0x45f   : > { %vm1424_vm0 = vcmp.eq.s32.totalorder %v4415_v23, %v1416_v34 }
 0x460   : > { %v5008_v41 = vpop.xlane.xlu0 %1406  ;;  %v1321_v2 = vpop.xlane.xlu2 %1320  ;;  %v5011_v44 = vsel %vm1424_vm0, 2147483647, %v4807_v5  ;;  %v3369_v40 = vsel %vm1424_vm0, 1.0, %v6071_v27 }
 0x461   : > { %v1322_v8 = vcvt.f32.s32 %v1321_v2  ;;  %vm1408_vm5 = vcmp.eq.f32.partialorder %v4951_v14, %v5008_v41  ;;  %v5018_v61 = vsel %vm958_vm11, %v5011_v44, 2147483647  ;;  %1449 = vst.msk [vmem:[#allocation2 + $0x80] sm:$0xff] %vm958_vm11, %v3369_v40 }
 0x462   : > { %v1409_v22 = vsel %vm1408_vm5, %v1404_v17, inf  ;;  %v1467_v16 = vshra.s32 %v5018_v61, 16 }
 0x463   : > { %v1325_v18 = vadd.s32 %v1324_v45, %v1322_v8  ;;  %1410 = vmin.xlane.f32.xlu1 %v1409_v22 }
 0x464   : > { %v5022_v5 = vcvt.s32.f32 %v1467_v16 }
 0x465   : > { %v1417_v51 = vand.u32 63, %v1325_v18 }
 0x466   : > { %1470 = vmin.xlane.f32.xlu0 %v5022_v5 }
 0x467   : > { %vm1425_vm6 = vcmp.eq.s32.totalorder %v4415_v23, %v1417_v51 }
 0x468   : > { %v1336_v14 = vpop.xlane.xlu1 %1335  ;;  %v2625_v19 = vld [vmem:[#allocation2 + $0x80] sm:$0xff]  ;;  %v5028_v28 = vsel %vm1425_vm6, 2147483647, %v4825_v57  ;;  %v3370_v52 = vsel %vm1425_vm6, 1.0, %v6071_v27  ;;  %v1353_v57 = vcvt.f32.s32 %v4967_v49 }
 0x469   : > { %v1337_v26 = vcvt.f32.s32 %v1336_v14  ;;  %3457 = vmatmul.msk.f32.gmra.mxu1 %vm958_vm11, %v2625_v19  ;;  %v5034_v37 = vsel %vm958_vm11, %v5028_v28, 2147483647  ;;  %1450 = vst.msk [vmem:[#allocation2 + $0x88] sm:$0xff] %vm958_vm11, %v3370_v52 }
 0x46a   : > { %v1482_v15 = vshra.s32 %v5034_v37, 16  ;;  %v1354_v30 = vshll.u32 %v1353_v57, 16 }
 0x46b   : > { %v1340_v1 = vadd.s32 %v1339_v10, %v1337_v26 }
 0x46c   : > { %v5038_v20 = vcvt.s32.f32 %v1482_v15 }
 0x46d   : > { %v1418_v11 = vand.u32 63, %v1340_v1 }
 0x46e   : > { %1485 = vmin.xlane.f32.xlu2 %v5038_v20 }
 0x46f   : > { %vm1426_vm8 = vcmp.eq.s32.totalorder %v4415_v23, %v1418_v11 }
 0x470   : > { %v1351_v12 = vpop.xlane.xlu2 %1350  ;;  %v2626_v0 = vld [vmem:[#allocation2 + $0x88] sm:$0xff]  ;;  %v5044_v46 = vsel %vm1426_vm8, 2147483647, %v4841_v36  ;;  %v3371_v21 = vsel %vm1426_vm8, 1.0, %v6071_v27  ;;  %v1368_v36 = vcvt.f32.s32 %v4974_v50 }
 0x471   : > { %v1352_v47 = vcvt.f32.s32 %v1351_v12  ;;  %3458 = vmatmul.msk.f32.gmra.mxu1 %vm958_vm11, %v2626_v0  ;;  %v5050_v62 = vsel %vm958_vm11, %v5044_v46, 2147483647  ;;  %1451 = vst.msk [vmem:[#allocation2 + $0x90] sm:$0xff] %vm958_vm11, %v3371_v21  ;;  %v1398_v21 = vcvt.f32.s32 %v4994_v42 }
 0x472   : > { %v1497_v49 = vshra.s32 %v5050_v62, 16  ;;  %v1369_v16 = vshll.u32 %v1368_v36, 16 }
 0x473   : > { %v1355_v34 = vadd.s32 %v1354_v30, %v1352_v47  ;;  %v1399_v36 = vshll.u32 %v1398_v21, 16 }
 0x474   : > { %v5054_v2 = vcvt.s32.f32 %v1497_v49 }
 0x475   : > { %v1419_v17 = vand.u32 63, %v1355_v34 }
 0x476   : > { %1500 = vmin.xlane.f32.xlu0 %v5054_v2 }
 0x477   : > { %vm1427_vm7 = vcmp.eq.s32.totalorder %v4415_v23, %v1419_v17 }
 0x478   : > { %v1366_v40 = vpop.xlane.xlu0 %1365  ;;  %v2627_v45 = vld [vmem:[#allocation2 + $0x90] sm:$0xff]  ;;  %v5060_v8 = vsel %vm1427_vm7, 2147483647, %v4857_v39  ;;  %v3372_v22 = vsel %vm1427_vm7, 1.0, %v6071_v27  ;;  %v1383_v39 = vcvt.f32.s32 %v4983_v48 }
 0x479   : > { %v1367_v18 = vcvt.f32.s32 %v1366_v40  ;;  %3459 = vmatmul.msk.f32.gmra.mxu1 %vm958_vm11, %v2627_v45  ;;  %v5066_v35 = vsel %vm958_vm11, %v5060_v8, 2147483647  ;;  %1452 = vst.msk [vmem:[#allocation2 + $0x98] sm:$0xff] %vm958_vm11, %v3372_v22 }
 0x47a   : > { %v1512_v50 = vshra.s32 %v5066_v35, 16  ;;  %v1384_v1 = vshll.u32 %v1383_v39, 16 }
 0x47b   : > { %v1370_v51 = vadd.s32 %v1369_v16, %v1367_v18 }
 0x47c   : > { %v5070_v14 = vcvt.s32.f32 %v1512_v50 }
 0x47d   : > { %v1420_v19 = vand.u32 63, %v1370_v51 }
 0x47e   : > { %1515 = vmin.xlane.f32.xlu1 %v5070_v14 }
 0x47f   : > { %vm1428_vm10 = vcmp.eq.s32.totalorder %v4415_v23, %v1420_v19 }
 0x480   : > { %v1381_v52 = vpop.xlane.xlu1 %1380  ;;  %v2628_v10 = vld [vmem:[#allocation2 + $0x98] sm:$0xff]  ;;  %v3373_v26 = vsel %vm1428_vm10, 1.0, %v6071_v27  ;;  %v5077_v15 = vsel %vm1428_vm10, 2147483647, %v4872_v3 }
 0x481   : > { %v1382_v57 = vcvt.f32.s32 %v1381_v52  ;;  %3460 = vmatmul.msk.f32.gmra.mxu1 %vm958_vm11, %v2628_v10  ;;  %1453 = vst.msk [vmem:[#allocation2 + $0xa0] sm:$0xff] %vm958_vm11, %v3373_v26  ;;  %v5083_v48 = vsel %vm958_vm11, %v5077_v15, 2147483647  ;;  %v1413_v10 = vcvt.f32.s32 %v5008_v41 }
 0x482   : > { %v1527_v11 = vshra.s32 %v5083_v48, 16 }
 0x483   : > { %v1385_v12 = vadd.s32 %v1384_v1, %v1382_v57  ;;  %v1414_v1 = vshll.u32 %v1413_v10, 16 }
 0x484   : > { %v5086_v0 = vcvt.s32.f32 %v1527_v11 }
 0x485   : > { %v1421_v30 = vand.u32 63, %v1385_v12 }
 0x486   : > { %1530 = vmin.xlane.f32.xlu2 %v5086_v0 }
 0x487   : > { %vm1429_vm9 = vcmp.eq.s32.totalorder %v4415_v23, %v1421_v30 }
 0x488   : > { %v1396_v3 = vpop.xlane.xlu2 %1395  ;;  %v2629_v47 = vld [vmem:[#allocation2 + $0xa0] sm:$0xff]  ;;  %v5092_v49 = vsel %vm1429_vm9, 2147483647, %v4889_v13  ;;  %v3374_v34 = vsel %vm1429_vm9, 1.0, %v6071_v27 }
 0x489   : > { %v1397_v17 = vcvt.f32.s32 %v1396_v3  ;;  %3461 = vmatmul.msk.f32.gmra.mxu1 %vm958_vm11, %v2629_v47  ;;  %v5098_v40 = vsel %vm958_vm11, %v5092_v49, 2147483647  ;;  %1454 = vst.msk [vmem:[#allocation2 + $0xa8] sm:$0xff] %vm958_vm11, %v3374_v34  ;;  %v1481_v47 = vand.u32 65535, %v5034_v37  ;;  %v1496_v37 = vand.u32 65535, %v5050_v62 }
 0x48a   : > { %v1542_v42 = vshra.s32 %v5098_v40, 16  ;;  %v1526_v62 = vand.u32 65535, %v5083_v48 }
 0x48b   : > { %v1400_v45 = vadd.s32 %v1399_v36, %v1397_v17 }
 0x48c   : > { %v5102_v22 = vcvt.s32.f32 %v1542_v42 }
 0x48d   : > { %v1422_v16 = vand.u32 63, %v1400_v45 }
 0x48e   : > { %1545 = vmin.xlane.f32.xlu0 %v5102_v22 }
 0x48f   : > { %vm1430_vm12 = vcmp.eq.s32.totalorder %v4415_v23, %v1422_v16 }
 0x490   : > { %v2630_v13 = vld [vmem:[#allocation2 + $0xa8] sm:$0xff]  ;;  %v5107_v18 = vsel %vm1430_vm12, 2147483647, %v4904_v33  ;;  %v3375_v50 = vsel %vm1430_vm12, 1.0, %v6071_v27  ;;  %v1466_v33 = vand.u32 65535, %v5018_v61 }
 0x491   : > { %3462 = vmatmul.msk.f32.gmra.mxu1 %vm958_vm11, %v2630_v13  ;;  %v1555_v51 = vsel %vm958_vm11, %v5107_v18, 2147483647  ;;  %1455 = vst.msk [vmem:[#allocation2 + $0xb0] sm:$0xff] %vm958_vm11, %v3375_v50  ;;  %v1498_v13 = vcvt.s32.f32 %v1496_v37 }
 0x492   : > { %v1557_v39 = vshra.s32 %v1555_v51, 16  ;;  %v1468_v21 = vcvt.s32.f32 %v1466_v33 }
 0x494   : > { %v1559_v19 = vcvt.s32.f32 %v1557_v39  ;;  %v1511_v39 = vand.u32 65535, %v5066_v35  ;;  %v1541_v35 = vand.u32 65535, %v5098_v40 }
 0x496   : > { %1560 = vmin.xlane.f32.xlu2 %v1559_v19  ;;  %v1513_v10 = vcvt.s32.f32 %v1511_v39 }
 0x498   : > { %v2631_v52 = vld [vmem:[#allocation2 + $0xb0] sm:$0xff] }
 0x499   : > { %3463 = vmatmul.msk.f32.gmra.mxu1 %vm958_vm11, %v2631_v52 }
 0x4d6   : > { %v1411_v26 = vpop.xlane.xlu1 %1410 }
 0x4d7   : > { %v1412_v57 = vcvt.f32.s32 %v1411_v26  ;;  %v1528_v26 = vcvt.s32.f32 %v1526_v62 }
 0x4d9   : > { %v1415_v11 = vadd.s32 %v1414_v1, %v1412_v57  ;;  %v1471_v12 = vpop.xlane.xlu0 %1470  ;;  %v1543_v57 = vcvt.s32.f32 %v1541_v35 }
 0x4da   : > { %vm1472_vm13 = vcmp.eq.f32.partialorder %v5022_v5, %v1471_v12  ;;  %v1483_v5 = vcvt.s32.f32 %v1481_v47 }
 0x4db   : > { %v1423_v30 = vand.u32 63, %v1415_v11  ;;  %v1473_v3 = vsel %vm1472_vm13, %v1468_v21, inf  ;;  %v1556_v11 = vand.u32 65535, %v1555_v51 }
 0x4dc   : > { %1474 = vmin.xlane.f32.xlu1 %v1473_v3 }
 0x4dd   : > { %vm1431_vm14 = vcmp.eq.s32.totalorder %v4415_v23, %v1423_v30  ;;  %v1558_v21 = vcvt.s32.f32 %v1556_v11 }
 0x4de   : > { %v3376_v34 = vsel %vm1431_vm14, 1.0, %v6071_v27  ;;  %v5122_v41 = vsel %vm1431_vm14, 2147483647, %v4937_v25 }
 0x4df   : > { %1456 = vst.msk [vmem:[#allocation2 + $0xb8] sm:$0xff] %vm958_vm11, %v3376_v34  ;;  %v1570_v61 = vsel %vm958_vm11, %v5122_v41, 2147483647 }
 0x4e0   : > { %v1572_v36 = vshra.s32 %v1570_v61, 16 }
 0x4e1   : > { %v1486_v17 = vpop.xlane.xlu2 %1485 }
 0x4e2   : > { %v1574_v42 = vcvt.s32.f32 %v1572_v36  ;;  %vm1487_vm1 = vcmp.eq.f32.partialorder %v5038_v20, %v1486_v17  ;;  %v1571_v36 = vand.u32 65535, %v1570_v61 }
 0x4e3   : > { %v1488_v45 = vsel %vm1487_vm1, %v1483_v5, inf  ;;  %v1492_v5 = vcvt.f32.s32 %v1486_v17 }
 0x4e4   : > { %1575 = vmin.xlane.f32.xlu1 %v1574_v42  ;;  %1489 = vmin.xlane.f32.xlu0 %v1488_v45  ;;  %v1573_v37 = vcvt.s32.f32 %v1571_v36 }
 0x4e6   : > { %v2632_v16 = vld [vmem:[#allocation2 + $0xb8] sm:$0xff] }
 0x4e7   : > { %3464 = vmatmul.msk.f32.gmra.mxu1 %vm958_vm11, %v2632_v16 }
 0x4e9   : > { %v1501_v25 = vpop.xlane.xlu0 %1500 }
 0x4ea   : > { %vm1502_vm2 = vcmp.eq.f32.partialorder %v5054_v2, %v1501_v25 }
 0x4eb   : > { %v1503_v50 = vsel %vm1502_vm2, %v1498_v13, inf  ;;  %v1493_v13 = vshll.u32 %v1492_v5, 16 }
 0x4ec   : > { %1504 = vmin.xlane.f32.xlu2 %v1503_v50 }
 0x4f1   : > { %v5132_v52 = vpop.xlane.xlu1 %1515 }
 0x4f2   : > { %vm1517_vm3 = vcmp.eq.f32.partialorder %v5070_v14, %v5132_v52 }
 0x4f3   : > { %v1518_v20 = vsel %vm1517_vm3, %v1513_v10, inf }
 0x4f4   : > { %1519 = vmin.xlane.f32.xlu0 %v1518_v20  ;;  %v1507_v20 = vcvt.f32.s32 %v1501_v25 }
 0x4f6   : > { %v1508_v35 = vshll.u32 %v1507_v20, 16 }
 0x4f9   : > { %v5137_v33 = vpop.xlane.xlu2 %1530 }
 0x4fa   : > { %vm1532_vm4 = vcmp.eq.f32.partialorder %v5086_v0, %v5137_v33  ;;  %v1477_v0 = vcvt.f32.s32 %v1471_v12 }
 0x4fb   : > { %v1533_v2 = vsel %vm1532_vm4, %v1528_v26, inf }
 0x4fc   : > { %1534 = vmin.xlane.f32.xlu1 %v1533_v2  ;;  %v1478_v47 = vshll.u32 %v1477_v0, 16 }
 0x501   : > { %v5142_v1 = vpop.xlane.xlu0 %1545 }
 0x502   : > { %vm1547_vm15 = vcmp.eq.f32.partialorder %v5102_v22, %v5142_v1 }
 0x503   : > { %v1548_v14 = vsel %vm1547_vm15, %v1543_v57, inf }
 0x504   : > { %1549 = vmin.xlane.f32.xlu2 %v1548_v14 }
 0x509   : > { %v5146_v48 = vpop.xlane.xlu2 %1560 }
 0x50a   : > { %vm1562_vm0 = vcmp.eq.f32.partialorder %v1559_v19, %v5146_v48 }
 0x50b   : > { %v1563_v30 = vsel %vm1562_vm0, %v1558_v21, inf }
 0x50c   : > { %1564 = vmin.xlane.f32.xlu0 %v1563_v30  ;;  %v1522_v30 = vcvt.f32.s32 %v5132_v52 }
 0x54f   : > { %v1475_v3 = vpop.xlane.xlu1 %1474 }
 0x550   : > { %v1476_v40 = vcvt.f32.s32 %v1475_v3 }
 0x552   : > { %v1479_v34 = vadd.s32 %v1478_v47, %v1476_v40 }
 0x554   : > { %v1585_v45 = vand.u32 63, %v1479_v34  ;;  %v1523_v34 = vshll.u32 %v1522_v30, 16 }
 0x556   : > { %vm1593_vm5 = vcmp.eq.s32.totalorder %v4415_v23, %v1585_v45 }
 0x557   : > { %v5150_v22 = vpop.xlane.xlu1 %1575  ;;  %v1490_v51 = vpop.xlane.xlu0 %1489  ;;  %v3377_v16 = vsel %vm1593_vm5, 1.0, %v6071_v27  ;;  %v5154_v19 = vsel %vm1593_vm5, 2147483647, %v5011_v44 }
 0x558   : > { %v1491_v12 = vcvt.f32.s32 %v1490_v51  ;;  %vm1577_vm6 = vcmp.eq.f32.partialorder %v1574_v42, %v5150_v22  ;;  %1618 = vst.msk [vmem:[#allocation2 + $0xc0] sm:$0xff] %vm958_vm11, %v3377_v16  ;;  %v5160_v61 = vsel %vm958_vm11, %v5154_v19, 2147483647 }
 0x559   : > { %v1578_v17 = vsel %vm1577_vm6, %v1573_v37, inf  ;;  %v1636_v50 = vshra.s32 %v5160_v61, 16 }
 0x55a   : > { %v1494_v39 = vadd.s32 %v1493_v13, %v1491_v12  ;;  %1579 = vmin.xlane.f32.xlu2 %v1578_v17 }
 0x55b   : > { %v5163_v10 = vcvt.s32.f32 %v1636_v50 }
 0x55c   : > { %v1586_v44 = vand.u32 63, %v1494_v39 }
 0x55d   : > { %1639 = vmin.xlane.f32.xlu1 %v5163_v10 }
 0x55e   : > { %vm1594_vm8 = vcmp.eq.s32.totalorder %v4415_v23, %v1586_v44 }
 0x55f   : > { %v1505_v42 = vpop.xlane.xlu2 %1504  ;;  %v2633_v62 = vld [vmem:[#allocation2 + $0xc0] sm:$0xff]  ;;  %v3378_v26 = vsel %vm1594_vm8, 1.0, %v6071_v27  ;;  %v5169_v2 = vsel %vm1594_vm8, 2147483647, %v5028_v28 }
 0x560   : > { %v1506_v57 = vcvt.f32.s32 %v1505_v42  ;;  %3465 = vmatmul.msk.f32.gmra.mxu1 %vm958_vm11, %v2633_v62  ;;  %1619 = vst.msk [vmem:[#allocation2 + $0xc8] sm:$0xff] %vm958_vm11, %v3378_v26  ;;  %v5175_v25 = vsel %vm958_vm11, %v5169_v2, 2147483647 }
 0x561   : > { %v1651_v14 = vshra.s32 %v5175_v25, 16 }
 0x562   : > { %v1509_v11 = vadd.s32 %v1508_v35, %v1506_v57 }
 0x563   : > { %v5178_v21 = vcvt.s32.f32 %v1651_v14 }
 0x564   : > { %v1587_v0 = vand.u32 63, %v1509_v11 }
 0x565   : > { %1654 = vmin.xlane.f32.xlu0 %v5178_v21 }
 0x566   : > { %vm1595_vm7 = vcmp.eq.s32.totalorder %v4415_v23, %v1587_v0 }
 0x567   : > { %v1520_v28 = vpop.xlane.xlu0 %1519  ;;  %v2634_v3 = vld [vmem:[#allocation2 + $0xc8] sm:$0xff]  ;;  %v5184_v47 = vsel %vm1595_vm7, 2147483647, %v5044_v46  ;;  %v3379_v40 = vsel %vm1595_vm7, 1.0, %v6071_v27  ;;  %v1537_v46 = vcvt.f32.s32 %v5137_v33 }
 0x568   : > { %v1521_v36 = vcvt.f32.s32 %v1520_v28  ;;  %3466 = vmatmul.msk.f32.gmra.mxu1 %vm958_vm11, %v2634_v3  ;;  %v5190_v5 = vsel %vm958_vm11, %v5184_v47, 2147483647  ;;  %1620 = vst.msk [vmem:[#allocation2 + $0xd0] sm:$0xff] %vm958_vm11, %v3379_v40  ;;  %v1567_v40 = vcvt.f32.s32 %v5146_v48 }
 0x569   : > { %v1666_v52 = vshra.s32 %v5190_v5, 16  ;;  %v1538_v50 = vshll.u32 %v1537_v46, 16 }
 0x56a   : > { %v1524_v45 = vadd.s32 %v1523_v34, %v1521_v36  ;;  %v1568_v46 = vshll.u32 %v1567_v40, 16 }
 0x56b   : > { %v5194_v51 = vcvt.s32.f32 %v1666_v52 }
 0x56c   : > { %v1588_v37 = vand.u32 63, %v1524_v45 }
 0x56d   : > { %1669 = vmin.xlane.f32.xlu1 %v5194_v51 }
 0x56e   : > { %vm1596_vm10 = vcmp.eq.s32.totalorder %v4415_v23, %v1588_v37 }
 0x56f   : > { %v1535_v16 = vpop.xlane.xlu1 %1534  ;;  %v2635_v13 = vld [vmem:[#allocation2 + $0xd0] sm:$0xff]  ;;  %v5200_v12 = vsel %vm1596_vm10, 2147483647, %v5060_v8  ;;  %v3380_v17 = vsel %vm1596_vm10, 1.0, %v6071_v27  ;;  %v1552_v8 = vcvt.f32.s32 %v5142_v1 }
 0x570   : > { %v1536_v39 = vcvt.f32.s32 %v1535_v16  ;;  %3467 = vmatmul.msk.f32.gmra.mxu1 %vm958_vm11, %v2635_v13  ;;  %v5206_v20 = vsel %vm958_vm11, %v5200_v12, 2147483647  ;;  %1621 = vst.msk [vmem:[#allocation2 + $0xd8] sm:$0xff] %vm958_vm11, %v3380_v17 }
 0x571   : > { %v1681_v33 = vshra.s32 %v5206_v20, 16  ;;  %v1553_v11 = vshll.u32 %v1552_v8, 16 }
 0x572   : > { %v1539_v44 = vadd.s32 %v1538_v50, %v1536_v39 }
 0x573   : > { %v5210_v42 = vcvt.s32.f32 %v1681_v33 }
 0x574   : > { %v1589_v62 = vand.u32 63, %v1539_v44 }
 0x575   : > { %1684 = vmin.xlane.f32.xlu2 %v5210_v42 }
 0x576   : > { %vm1597_vm9 = vcmp.eq.s32.totalorder %v4415_v23, %v1589_v62 }
 0x577   : > { %v1550_v26 = vpop.xlane.xlu2 %1549  ;;  %v2636_v35 = vld [vmem:[#allocation2 + $0xd8] sm:$0xff]  ;;  %v3381_v57 = vsel %vm1597_vm9, 1.0, %v6071_v27  ;;  %v5217_v14 = vsel %vm1597_vm9, 2147483647, %v5077_v15 }
 0x578   : > { %v1551_v30 = vcvt.f32.s32 %v1550_v26  ;;  %3468 = vmatmul.msk.f32.gmra.mxu1 %vm958_vm11, %v2636_v35  ;;  %1622 = vst.msk [vmem:[#allocation2 + $0xe0] sm:$0xff] %vm958_vm11, %v3381_v57  ;;  %v5223_v1 = vsel %vm958_vm11, %v5217_v14, 2147483647  ;;  %v1582_v35 = vcvt.f32.s32 %v5150_v22 }
 0x579   : > { %v1696_v0 = vshra.s32 %v5223_v1, 16 }
 0x57a   : > { %v1554_v28 = vadd.s32 %v1553_v11, %v1551_v30  ;;  %v1583_v11 = vshll.u32 %v1582_v35, 16 }
 0x57b   : > { %v5226_v3 = vcvt.s32.f32 %v1696_v0 }
 0x57c   : > { %v1590_v34 = vand.u32 63, %v1554_v28 }
 0x57d   : > { %1699 = vmin.xlane.f32.xlu0 %v5226_v3 }
 0x57e   : > { %vm1598_vm12 = vcmp.eq.s32.totalorder %v4415_v23, %v1590_v34 }
 0x57f   : > { %v1565_v15 = vpop.xlane.xlu0 %1564  ;;  %v2637_v36 = vld [vmem:[#allocation2 + $0xe0] sm:$0xff]  ;;  %v5232_v52 = vsel %vm1598_vm12, 2147483647, %v5092_v49  ;;  %v3382_v45 = vsel %vm1598_vm12, 1.0, %v6071_v27 }
 0x580   : > { %v1566_v37 = vcvt.f32.s32 %v1565_v15  ;;  %3469 = vmatmul.msk.f32.gmra.mxu1 %vm958_vm11, %v2637_v36  ;;  %v5238_v16 = vsel %vm958_vm11, %v5232_v52, 2147483647  ;;  %1623 = vst.msk [vmem:[#allocation2 + $0xe8] sm:$0xff] %vm958_vm11, %v3382_v45  ;;  %v1650_v36 = vand.u32 65535, %v5175_v25  ;;  %v1665_v25 = vand.u32 65535, %v5190_v5 }
 0x581   : > { %v1711_v48 = vshra.s32 %v5238_v16, 16  ;;  %v1695_v5 = vand.u32 65535, %v5223_v1 }
 0x582   : > { %v1569_v13 = vadd.s32 %v1568_v46, %v1566_v37 }
 0x583   : > { %v5242_v17 = vcvt.s32.f32 %v1711_v48 }
 0x584   : > { %v1591_v50 = vand.u32 63, %v1569_v13 }
 0x585   : > { %1714 = vmin.xlane.f32.xlu1 %v5242_v17 }
 0x586   : > { %vm1599_vm13 = vcmp.eq.s32.totalorder %v4415_v23, %v1591_v50 }
 0x587   : > { %v2638_v49 = vld [vmem:[#allocation2 + $0xe8] sm:$0xff]  ;;  %v5247_v39 = vsel %vm1599_vm13, 2147483647, %v5107_v18  ;;  %v3383_v33 = vsel %vm1599_vm13, 1.0, %v6071_v27  ;;  %v1635_v18 = vand.u32 65535, %v5160_v61 }
 0x588   : > { %3470 = vmatmul.msk.f32.gmra.mxu1 %vm958_vm11, %v2638_v49  ;;  %v1724_v44 = vsel %vm958_vm11, %v5247_v39, 2147483647  ;;  %1624 = vst.msk [vmem:[#allocation2 + $0xf0] sm:$0xff] %vm958_vm11, %v3383_v33  ;;  %v1667_v49 = vcvt.s32.f32 %v1665_v25 }
 0x589   : > { %v1726_v8 = vshra.s32 %v1724_v44, 16  ;;  %v1637_v40 = vcvt.s32.f32 %v1635_v18 }
 0x58b   : > { %v1728_v62 = vcvt.s32.f32 %v1726_v8  ;;  %v1680_v8 = vand.u32 65535, %v5206_v20  ;;  %v1710_v20 = vand.u32 65535, %v5238_v16 }
 0x58d   : > { %1729 = vmin.xlane.f32.xlu0 %v1728_v62 }
 0x58f   : > { %v2639_v26 = vld [vmem:[#allocation2 + $0xf0] sm:$0xff] }
 0x590   : > { %3471 = vmatmul.msk.f32.vlgmr.msrb.gmra.mxu2 %vm958_vm11, %v2639_v26 }
 0x5cd   : > { %v1580_v57 = vpop.xlane.xlu2 %1579 }
 0x5ce   : > { %v1581_v30 = vcvt.f32.s32 %v1580_v57  ;;  %v1697_v57 = vcvt.s32.f32 %v1695_v5 }
 0x5d0   : > { %v1584_v0 = vadd.s32 %v1583_v11, %v1581_v30  ;;  %v1640_v28 = vpop.xlane.xlu1 %1639  ;;  %v1712_v30 = vcvt.s32.f32 %v1710_v20 }
 0x5d1   : > { %vm1641_vm14 = vcmp.eq.f32.partialorder %v5163_v10, %v1640_v28  ;;  %v1652_v10 = vcvt.s32.f32 %v1650_v36 }
 0x5d2   : > { %v1592_v34 = vand.u32 63, %v1584_v0  ;;  %v1642_v15 = vsel %vm1641_vm14, %v1637_v40, inf  ;;  %v1725_v0 = vand.u32 65535, %v1724_v44 }
 0x5d3   : > { %1643 = vmin.xlane.f32.xlu2 %v1642_v15 }
 0x5d4   : > { %vm1600_vm1 = vcmp.eq.s32.totalorder %v4415_v23, %v1592_v34  ;;  %v1727_v40 = vcvt.s32.f32 %v1725_v0 }
 0x5d5   : > { %v5261_v45 = vsel %vm1600_vm1, 2147483647, %v5122_v41  ;;  %v3384_v22 = vsel %vm1600_vm1, 1.0, %v6071_v27 }
 0x5d6   : > { %v1739_v61 = vsel %vm958_vm11, %v5261_v45, 2147483647  ;;  %1625 = vst.msk [vmem:[#allocation2 + $0xf8] sm:$0xff] %vm958_vm11, %v3384_v22 }
 0x5d7   : > { %v1741_v46 = vshra.s32 %v1739_v61, 16 }
 0x5d8   : > { %v1655_v37 = vpop.xlane.xlu0 %1654 }
 0x5d9   : > { %vm1656_vm2 = vcmp.eq.f32.partialorder %v5178_v21, %v1655_v37  ;;  %v1743_v48 = vcvt.s32.f32 %v1741_v46  ;;  %v1682_v21 = vcvt.s32.f32 %v1680_v8  ;;  %v1740_v46 = vand.u32 65535, %v1739_v61 }
 0x5da   : > { %v1657_v13 = vsel %vm1656_vm2, %v1652_v10, inf  ;;  %v1661_v10 = vcvt.f32.s32 %v1655_v37 }
 0x5db   : > { %1658 = vmin.xlane.f32.xlu1 %v1657_v13  ;;  %1744 = vmin.xlane.f32.xlu2 %v1743_v48  ;;  %v1742_v44 = vcvt.s32.f32 %v1740_v46 }
 0x5dd   : > { %v2640_v41 = vld [vmem:[#allocation2 + $0xf8] sm:$0xff] }
 0x5de   : > { %3472 = vmatmul.msk.f32.gmra.mxu2 %vm958_vm11, %v2640_v41 }
 0x5e0   : > { %v1670_v50 = vpop.xlane.xlu1 %1669 }
 0x5e1   : > { %vm1671_vm3 = vcmp.eq.f32.partialorder %v5194_v51, %v1670_v50 }
 0x5e2   : > { %v1672_v33 = vsel %vm1671_vm3, %v1667_v49, inf  ;;  %v1662_v49 = vshll.u32 %v1661_v10, 16 }
 0x5e3   : > { %1673 = vmin.xlane.f32.xlu0 %v1672_v33 }
 0x5e8   : > { %v5272_v26 = vpop.xlane.xlu2 %1684 }
 0x5e9   : > { %vm1686_vm4 = vcmp.eq.f32.partialorder %v5210_v42, %v5272_v26 }
 0x5ea   : > { %v1687_v35 = vsel %vm1686_vm4, %v1682_v21, inf }
 0x5eb   : > { %1688 = vmin.xlane.f32.xlu1 %v1687_v35 }
 0x5f0   : > { %v5277_v18 = vpop.xlane.xlu0 %1699 }
 0x5f1   : > { %vm1701_vm15 = vcmp.eq.f32.partialorder %v5226_v3, %v5277_v18  ;;  %v1646_v3 = vcvt.f32.s32 %v1640_v28 }
 0x5f2   : > { %v1702_v51 = vsel %vm1701_vm15, %v1697_v57, inf }
 0x5f3   : > { %1703 = vmin.xlane.f32.xlu2 %v1702_v51  ;;  %v1647_v36 = vshll.u32 %v1646_v3, 16 }
 0x5f8   : > { %v5282_v11 = vpop.xlane.xlu1 %1714 }
 0x5f9   : > { %vm1716_vm0 = vcmp.eq.f32.partialorder %v5242_v17, %v5282_v11 }
 0x5fa   : > { %v1717_v42 = vsel %vm1716_vm0, %v1712_v30, inf }
 0x5fb   : > { %1718 = vmin.xlane.f32.xlu0 %v1717_v42 }
 0x600   : > { %v5286_v1 = vpop.xlane.xlu0 %1729 }
 0x601   : > { %vm1731_vm5 = vcmp.eq.f32.partialorder %v1728_v62, %v5286_v1 }
 0x602   : > { %v1732_v34 = vsel %vm1731_vm5, %v1727_v40, inf }
 0x603   : > { %1733 = vmin.xlane.f32.xlu1 %v1732_v34  ;;  %v1691_v34 = vcvt.f32.s32 %v5272_v26 }
 0x646   : > { %v1644_v15 = vpop.xlane.xlu2 %1643 }
 0x647   : > { %v1645_v16 = vcvt.f32.s32 %v1644_v15 }
 0x649   : > { %v1648_v22 = vadd.s32 %v1647_v36, %v1645_v16 }
 0x64b   : > { %v1754_v13 = vand.u32 63, %v1648_v22  ;;  %v1692_v22 = vshll.u32 %v1691_v34, 16 }
 0x64d   : > { %vm1762_vm6 = vcmp.eq.s32.totalorder %v4415_v23, %v1754_v13 }
 0x64e   : > { %v1659_v17 = vpop.xlane.xlu1 %1658  ;;  %v5290_v25 = vpop.xlane.xlu2 %1744  ;;  %v5293_v41 = vsel %vm1762_vm6, 2147483647, %v5154_v19  ;;  %v3385_v62 = vsel %vm1762_vm6, 1.0, %v6071_v27  ;;  %v1676_v19 = vcvt.f32.s32 %v1670_v50 }
 0x64f   : > { %v1660_v28 = vcvt.f32.s32 %v1659_v17  ;;  %vm1746_vm8 = vcmp.eq.f32.partialorder %v1743_v48, %v5290_v25  ;;  %v5299_v61 = vsel %vm958_vm11, %v5293_v41, 2147483647  ;;  %1787 = vst.msk [vmem:[#allocation2 + $0x100] sm:$0xff] %vm958_vm11, %v3385_v62 }
 0x650   : > { %v1747_v37 = vsel %vm1746_vm8, %v1742_v44, inf  ;;  %v1805_v33 = vshra.s32 %v5299_v61, 16  ;;  %v1677_v20 = vshll.u32 %v1676_v19, 16  ;;  %v1706_v44 = vcvt.f32.s32 %v5277_v18 }
 0x651   : > { %v1663_v8 = vadd.s32 %v1662_v49, %v1660_v28  ;;  %1748 = vmin.xlane.f32.xlu0 %v1747_v37 }
 0x652   : > { %v5303_v21 = vcvt.s32.f32 %v1805_v33  ;;  %v1707_v33 = vshll.u32 %v1706_v44, 16 }
 0x653   : > { %v1755_v35 = vand.u32 63, %v1663_v8 }
 0x654   : > { %1808 = vmin.xlane.f32.xlu2 %v5303_v21 }
 0x655   : > { %vm1763_vm7 = vcmp.eq.s32.totalorder %v4415_v23, %v1755_v35 }
 0x656   : > { %v1674_v48 = vpop.xlane.xlu0 %1673  ;;  %v2641_v5 = vld [vmem:[#allocation2 + $0x100] sm:$0xff]  ;;  %v3386_v57 = vsel %vm1763_vm7, 1.0, %v6071_v27  ;;  %v5309_v51 = vsel %vm1763_vm7, 2147483647, %v5169_v2 }
 0x657   : > { %v1675_v30 = vcvt.f32.s32 %v1674_v48  ;;  %3473 = vmatmul.msk.f32.gmra.mxu2 %vm958_vm11, %v2641_v5  ;;  %1788 = vst.msk [vmem:[#allocation2 + $0x108] sm:$0xff] %vm958_vm11, %v3386_v57  ;;  %v5315_v50 = vsel %vm958_vm11, %v5309_v51, 2147483647  ;;  %v1721_v5 = vcvt.f32.s32 %v5282_v11 }
 0x658   : > { %v1820_v42 = vshra.s32 %v5315_v50, 16 }
 0x659   : > { %v1678_v0 = vadd.s32 %v1677_v20, %v1675_v30 }
 0x65a   : > { %v5318_v40 = vcvt.s32.f32 %v1820_v42 }
 0x65b   : > { %v1756_v3 = vand.u32 63, %v1678_v0  ;;  %v1722_v0 = vshll.u32 %v1721_v5, 16 }
 0x65c   : > { %1823 = vmin.xlane.f32.xlu1 %v5318_v40 }
 0x65d   : > { %vm1764_vm10 = vcmp.eq.s32.totalorder %v4415_v23, %v1756_v3 }
 0x65e   : > { %v1689_v2 = vpop.xlane.xlu1 %1688  ;;  %v2642_v15 = vld [vmem:[#allocation2 + $0x108] sm:$0xff]  ;;  %v3387_v36 = vsel %vm1764_vm10, 1.0, %v6071_v27  ;;  %v5325_v16 = vsel %vm1764_vm10, 2147483647, %v5184_v47 }
 0x65f   : > { %v1690_v46 = vcvt.f32.s32 %v1689_v2  ;;  %3474 = vmatmul.msk.f32.gmra.mxu2 %vm958_vm11, %v2642_v15  ;;  %1789 = vst.msk [vmem:[#allocation2 + $0x110] sm:$0xff] %vm958_vm11, %v3387_v36  ;;  %v5331_v26 = vsel %vm958_vm11, %v5325_v16, 2147483647 }
 0x660   : > { %v1835_v10 = vshra.s32 %v5331_v26, 16 }
 0x661   : > { %v1693_v13 = vadd.s32 %v1692_v22, %v1690_v46 }
 0x662   : > { %v5334_v17 = vcvt.s32.f32 %v1835_v10 }
 0x663   : > { %v1757_v62 = vand.u32 63, %v1693_v13 }
 0x664   : > { %1838 = vmin.xlane.f32.xlu2 %v5334_v17 }
 0x665   : > { %vm1765_vm9 = vcmp.eq.s32.totalorder %v4415_v23, %v1757_v62 }
 0x666   : > { %v1704_v47 = vpop.xlane.xlu2 %1703  ;;  %v2643_v49 = vld [vmem:[#allocation2 + $0x110] sm:$0xff]  ;;  %v3388_v28 = vsel %vm1765_vm9, 1.0, %v6071_v27  ;;  %v5341_v37 = vsel %vm1765_vm9, 2147483647, %v5200_v12 }
 0x667   : > { %v1705_v8 = vcvt.f32.s32 %v1704_v47  ;;  %3475 = vmatmul.msk.f32.gmra.mxu2 %vm958_vm11, %v2643_v49  ;;  %1790 = vst.msk [vmem:[#allocation2 + $0x118] sm:$0xff] %vm958_vm11, %v3388_v28  ;;  %v5347_v18 = vsel %vm958_vm11, %v5341_v37, 2147483647 }
 0x668   : > { %v1850_v19 = vshra.s32 %v5347_v18, 16 }
 0x669   : > { %v1708_v35 = vadd.s32 %v1707_v33, %v1705_v8 }
 0x66a   : > { %v5350_v48 = vcvt.s32.f32 %v1850_v19 }
 0x66b   : > { %v1758_v57 = vand.u32 63, %v1708_v35 }
 0x66c   : > { %1853 = vmin.xlane.f32.xlu0 %v5350_v48 }
 0x66d   : > { %vm1766_vm12 = vcmp.eq.s32.totalorder %v4415_v23, %v1758_v57 }
 0x66e   : > { %v1719_v12 = vpop.xlane.xlu0 %1718  ;;  %v2644_v20 = vld [vmem:[#allocation2 + $0x118] sm:$0xff]  ;;  %v5356_v30 = vsel %vm1766_vm12, 2147483647, %v5217_v14  ;;  %v3389_v42 = vsel %vm1766_vm12, 1.0, %v6071_v27  ;;  %v1736_v14 = vcvt.f32.s32 %v5286_v1 }
 0x66f   : > { %v1720_v34 = vcvt.f32.s32 %v1719_v12  ;;  %3476 = vmatmul.msk.f32.gmra.mxu2 %vm958_vm11, %v2644_v20  ;;  %v5362_v3 = vsel %vm958_vm11, %v5356_v30, 2147483647  ;;  %1791 = vst.msk [vmem:[#allocation2 + $0x120] sm:$0xff] %vm958_vm11, %v3389_v42  ;;  %v1751_v20 = vcvt.f32.s32 %v5290_v25  ;;  %v1804_v42 = vand.u32 65535, %v5299_v61 }
 0x670   : > { %v1865_v11 = vshra.s32 %v5362_v3, 16  ;;  %v1737_v44 = vshll.u32 %v1736_v14, 16 }
 0x671   : > { %v1723_v2 = vadd.s32 %v1722_v0, %v1720_v34  ;;  %v1806_v14 = vcvt.s32.f32 %v1804_v42 }
 0x672   : > { %v5366_v15 = vcvt.s32.f32 %v1865_v11 }
 0x673   : > { %v1759_v36 = vand.u32 63, %v1723_v2 }
 0x674   : > { %1868 = vmin.xlane.f32.xlu1 %v5366_v15 }
 0x675   : > { %vm1767_vm13 = vcmp.eq.s32.totalorder %v4415_v23, %v1759_v36 }
 0x676   : > { %v1734_v22 = vpop.xlane.xlu1 %1733  ;;  %v2645_v46 = vld [vmem:[#allocation2 + $0x120] sm:$0xff]  ;;  %v3390_v10 = vsel %vm1767_vm13, 1.0, %v6071_v27  ;;  %v5373_v13 = vsel %vm1767_vm13, 2147483647, %v5232_v52 }
 0x677   : > { %v1735_v62 = vcvt.f32.s32 %v1734_v22  ;;  %3477 = vmatmul.msk.f32.gmra.mxu2 %vm958_vm11, %v2645_v46  ;;  %1792 = vst.msk [vmem:[#allocation2 + $0x128] sm:$0xff] %vm958_vm11, %v3390_v10  ;;  %v5379_v1 = vsel %vm958_vm11, %v5373_v13, 2147483647  ;;  %v1819_v46 = vand.u32 65535, %v5315_v50  ;;  %v1834_v50 = vand.u32 65535, %v5331_v26 }
 0x678   : > { %v1880_v47 = vshra.s32 %v5379_v1, 16  ;;  %v1864_v26 = vand.u32 65535, %v5362_v3 }
 0x679   : > { %v1738_v49 = vadd.s32 %v1737_v44, %v1735_v62 }
 0x67a   : > { %v5382_v28 = vcvt.s32.f32 %v1880_v47 }
 0x67b   : > { %v1760_v33 = vand.u32 63, %v1738_v49 }
 0x67c   : > { %1883 = vmin.xlane.f32.xlu2 %v5382_v28 }
 0x67d   : > { %vm1768_vm14 = vcmp.eq.s32.totalorder %v4415_v23, %v1760_v33 }
 0x67e   : > { %v2646_v52 = vld [vmem:[#allocation2 + $0x128] sm:$0xff]  ;;  %v3391_v8 = vsel %vm1768_vm14, 1.0, %v6071_v27  ;;  %v5388_v19 = vsel %vm1768_vm14, 2147483647, %v5247_v39  ;;  %v1752_v39 = vshll.u32 %v1751_v20, 16 }
 0x67f   : > { %3478 = vmatmul.msk.f32.gmra.mxu2 %vm958_vm11, %v2646_v52  ;;  %1793 = vst.msk [vmem:[#allocation2 + $0x130] sm:$0xff] %vm958_vm11, %v3391_v8  ;;  %v1893_v35 = vsel %vm958_vm11, %v5388_v19, 2147483647  ;;  %v1836_v52 = vcvt.s32.f32 %v1834_v50 }
 0x680   : > { %v1895_v5 = vshra.s32 %v1893_v35, 16 }
 0x682   : > { %v1897_v57 = vcvt.s32.f32 %v1895_v5  ;;  %v1849_v5 = vand.u32 65535, %v5347_v18  ;;  %v1879_v18 = vand.u32 65535, %v5379_v1 }
 0x684   : > { %1898 = vmin.xlane.f32.xlu1 %v1897_v57 }
 0x686   : > { %v2647_v12 = vld [vmem:[#allocation2 + $0x130] sm:$0xff] }
 0x687   : > { %3479 = vmatmul.msk.f32.gmra.mxu2 %vm958_vm11, %v2647_v12 }
 0x6c4   : > { %v1749_v0 = vpop.xlane.xlu0 %1748 }
 0x6c5   : > { %v1750_v34 = vcvt.f32.s32 %v1749_v0  ;;  %v1866_v0 = vcvt.s32.f32 %v1864_v26 }
 0x6c7   : > { %v1753_v11 = vadd.s32 %v1752_v39, %v1750_v34  ;;  %v1809_v2 = vpop.xlane.xlu2 %1808  ;;  %v1881_v34 = vcvt.s32.f32 %v1879_v18 }
 0x6c8   : > { %vm1810_vm1 = vcmp.eq.f32.partialorder %v5303_v21, %v1809_v2  ;;  %v1821_v21 = vcvt.s32.f32 %v1819_v46 }
 0x6c9   : > { %v1761_v36 = vand.u32 63, %v1753_v11  ;;  %v1811_v22 = vsel %vm1810_vm1, %v1806_v14, inf  ;;  %v1894_v11 = vand.u32 65535, %v1893_v35 }
 0x6ca   : > { %1812 = vmin.xlane.f32.xlu0 %v1811_v22 }
 0x6cb   : > { %vm1769_vm2 = vcmp.eq.s32.totalorder %v4415_v23, %v1761_v36  ;;  %v1896_v14 = vcvt.s32.f32 %v1894_v11 }
 0x6cc   : > { %v3392_v10 = vsel %vm1769_vm2, 1.0, %v6071_v27  ;;  %v5402_v25 = vsel %vm1769_vm2, 2147483647, %v5261_v45 }
 0x6cd   : > { %1794 = vst.msk [vmem:[#allocation2 + $0x138] sm:$0xff] %vm958_vm11, %v3392_v10  ;;  %v1908_v61 = vsel %vm958_vm11, %v5402_v25, 2147483647 }
 0x6ce   : > { %v1910_v44 = vshra.s32 %v1908_v61, 16 }
 0x6cf   : > { %v1824_v62 = vpop.xlane.xlu1 %1823 }
 0x6d0   : > { %vm1825_vm3 = vcmp.eq.f32.partialorder %v5318_v40, %v1824_v62  ;;  %v1912_v47 = vcvt.s32.f32 %v1910_v44  ;;  %v1851_v40 = vcvt.s32.f32 %v1849_v5  ;;  %v1909_v44 = vand.u32 65535, %v1908_v61 }
 0x6d1   : > { %v1826_v49 = vsel %vm1825_vm3, %v1821_v21, inf  ;;  %v1830_v21 = vcvt.f32.s32 %v1824_v62 }
 0x6d2   : > { %1827 = vmin.xlane.f32.xlu2 %v1826_v49  ;;  %1913 = vmin.xlane.f32.xlu0 %v1912_v47  ;;  %v1911_v50 = vcvt.s32.f32 %v1909_v44 }
 0x6d4   : > { %v2648_v33 = vld [vmem:[#allocation2 + $0x138] sm:$0xff] }
 0x6d5   : > { %3480 = vmatmul.msk.f32.gmra.mxu2 %vm958_vm11, %v2648_v33 }
 0x6d7   : > { %v1839_v45 = vpop.xlane.xlu2 %1838 }
 0x6d8   : > { %vm1840_vm4 = vcmp.eq.f32.partialorder %v5334_v17, %v1839_v45 }
 0x6d9   : > { %v1841_v8 = vsel %vm1840_vm4, %v1836_v52, inf  ;;  %v1831_v52 = vshll.u32 %v1830_v21, 16 }
 0x6da   : > { %1842 = vmin.xlane.f32.xlu1 %v1841_v8 }
 0x6df   : > { %v5412_v12 = vpop.xlane.xlu0 %1853 }
 0x6e0   : > { %vm1855_vm15 = vcmp.eq.f32.partialorder %v5350_v48, %v5412_v12 }
 0x6e1   : > { %v1856_v20 = vsel %vm1855_vm15, %v1851_v40, inf }
 0x6e2   : > { %1857 = vmin.xlane.f32.xlu2 %v1856_v20 }
 0x6e7   : > { %v5417_v42 = vpop.xlane.xlu1 %1868 }
 0x6e8   : > { %vm1870_vm0 = vcmp.eq.f32.partialorder %v5366_v15, %v5417_v42  ;;  %v1815_v15 = vcvt.f32.s32 %v1809_v2 }
 0x6e9   : > { %v1871_v17 = vsel %vm1870_vm0, %v1866_v0, inf }
 0x6ea   : > { %1872 = vmin.xlane.f32.xlu0 %v1871_v17  ;;  %v1816_v46 = vshll.u32 %v1815_v15, 16 }
 0x6ef   : > { %v5422_v39 = vpop.xlane.xlu2 %1883 }
 0x6f0   : > { %vm1885_vm5 = vcmp.eq.f32.partialorder %v5382_v28, %v5422_v39 }
 0x6f1   : > { %v1886_v48 = vsel %vm1885_vm5, %v1881_v34, inf }
 0x6f2   : > { %1887 = vmin.xlane.f32.xlu1 %v1886_v48 }
 0x6f7   : > { %v5426_v3 = vpop.xlane.xlu1 %1898 }
 0x6f8   : > { %vm1900_vm6 = vcmp.eq.f32.partialorder %v1897_v57, %v5426_v3 }
 0x6f9   : > { %v1901_v36 = vsel %vm1900_vm6, %v1896_v14, inf }
 0x6fa   : > { %1902 = vmin.xlane.f32.xlu2 %v1901_v36 }
 0x73d   : > { %v1813_v22 = vpop.xlane.xlu0 %1812 }
 0x73e   : > { %v1814_v1 = vcvt.f32.s32 %v1813_v22 }
 0x740   : > { %v1817_v10 = vadd.s32 %v1816_v46, %v1814_v1 }
 0x742   : > { %v1923_v49 = vand.u32 63, %v1817_v10 }
 0x744   : > { %vm1931_vm8 = vcmp.eq.s32.totalorder %v4415_v23, %v1923_v49 }
 0x745   : > { %v5430_v28 = vpop.xlane.xlu0 %1913  ;;  %v1828_v35 = vpop.xlane.xlu2 %1827  ;;  %v5433_v33 = vsel %vm1931_vm8, 2147483647, %v5293_v41  ;;  %v3393_v57 = vsel %vm1931_vm8, 1.0, %v6071_v27  ;;  %v1845_v41 = vcvt.f32.s32 %v1839_v45 }
 0x746   : > { %v1829_v2 = vcvt.f32.s32 %v1828_v35  ;;  %vm1915_vm7 = vcmp.eq.f32.partialorder %v1912_v47, %v5430_v28  ;;  %v5439_v61 = vsel %vm958_vm11, %v5433_v33, 2147483647  ;;  %1956 = vst.msk [vmem:[#allocation2 + $0x140] sm:$0xff] %vm958_vm11, %v3393_v57 }
 0x747   : > { %v1916_v62 = vsel %vm1915_vm7, %v1911_v50, inf  ;;  %v1974_v8 = vshra.s32 %v5439_v61, 16  ;;  %v1846_v18 = vshll.u32 %v1845_v41, 16 }
 0x748   : > { %v1832_v5 = vadd.s32 %v1831_v52, %v1829_v2  ;;  %1917 = vmin.xlane.f32.xlu1 %v1916_v62 }
 0x749   : > { %v5443_v40 = vcvt.s32.f32 %v1974_v8 }
 0x74a   : > { %v1924_v20 = vand.u32 63, %v1832_v5 }
 0x74b   : > { %1977 = vmin.xlane.f32.xlu0 %v5443_v40 }
 0x74c   : > { %vm1932_vm10 = vcmp.eq.s32.totalorder %v4415_v23, %v1924_v20 }
 0x74d   : > { %v1843_v47 = vpop.xlane.xlu1 %1842  ;;  %v2649_v26 = vld [vmem:[#allocation2 + $0x140] sm:$0xff]  ;;  %v5448_v0 = vsel %vm1932_vm10, 2147483647, %v5309_v51  ;;  %v3394_v17 = vsel %vm1932_vm10, 1.0, %v6071_v27  ;;  %v1860_v51 = vcvt.f32.s32 %v5412_v12 }
 0x74e   : > { %v1844_v34 = vcvt.f32.s32 %v1843_v47  ;;  %3481 = vmatmul.msk.f32.gmra.mxu2 %vm958_vm11, %v2649_v26  ;;  %v5454_v48 = vsel %vm958_vm11, %v5448_v0, 2147483647  ;;  %1957 = vst.msk [vmem:[#allocation2 + $0x148] sm:$0xff] %vm958_vm11, %v3394_v17 }
 0x74f   : > { %v1989_v45 = vshra.s32 %v5454_v48, 16  ;;  %v1861_v10 = vshll.u32 %v1860_v51, 16 }
 0x750   : > { %v1847_v11 = vadd.s32 %v1846_v18, %v1844_v34 }
 0x751   : > { %v5458_v14 = vcvt.s32.f32 %v1989_v45 }
 0x752   : > { %v1925_v36 = vand.u32 63, %v1847_v11 }
 0x753   : > { %1992 = vmin.xlane.f32.xlu2 %v5458_v14 }
 0x754   : > { %vm1933_vm9 = vcmp.eq.s32.totalorder %v4415_v23, %v1925_v36 }
 0x755   : > { %v1858_v15 = vpop.xlane.xlu2 %1857  ;;  %v2650_v22 = vld [vmem:[#allocation2 + $0x148] sm:$0xff]  ;;  %v5464_v46 = vsel %vm1933_vm9, 2147483647, %v5325_v16  ;;  %v3395_v1 = vsel %vm1933_vm9, 1.0, %v6071_v27  ;;  %v1875_v16 = vcvt.f32.s32 %v5417_v42 }
 0x756   : > { %v1859_v44 = vcvt.f32.s32 %v1858_v15  ;;  %3482 = vmatmul.msk.f32.gmra.mxu2 %vm958_vm11, %v2650_v22  ;;  %v5470_v21 = vsel %vm958_vm11, %v5464_v46, 2147483647  ;;  %1958 = vst.msk [vmem:[#allocation2 + $0x150] sm:$0xff] %vm958_vm11, %v3395_v1  ;;  %v1905_v1 = vcvt.f32.s32 %v5426_v3 }
 0x757   : > { %v2004_v12 = vshra.s32 %v5470_v21, 16  ;;  %v1876_v8 = vshll.u32 %v1875_v16, 16 }
 0x758   : > { %v1862_v49 = vadd.s32 %v1861_v10, %v1859_v44  ;;  %v1906_v16 = vshll.u32 %v1905_v1, 16 }
 0x759   : > { %v5474_v35 = vcvt.s32.f32 %v2004_v12 }
 0x75a   : > { %v1926_v50 = vand.u32 63, %v1862_v49 }
 0x75b   : > { %2007 = vmin.xlane.f32.xlu0 %v5474_v35 }
 0x75c   : > { %vm1934_vm12 = vcmp.eq.s32.totalorder %v4415_v23, %v1926_v50 }
 0x75d   : > { %v1873_v57 = vpop.xlane.xlu0 %1872  ;;  %v2651_v52 = vld [vmem:[#allocation2 + $0x150] sm:$0xff]  ;;  %v5480_v2 = vsel %vm1934_vm12, 2147483647, %v5341_v37  ;;  %v3396_v62 = vsel %vm1934_vm12, 1.0, %v6071_v27  ;;  %v1890_v37 = vcvt.f32.s32 %v5422_v39 }
 0x75e   : > { %v1874_v5 = vcvt.f32.s32 %v1873_v57  ;;  %3483 = vmatmul.msk.f32.gmra.mxu2 %vm958_vm11, %v2651_v52  ;;  %v5486_v41 = vsel %vm958_vm11, %v5480_v2, 2147483647  ;;  %1959 = vst.msk [vmem:[#allocation2 + $0x158] sm:$0xff] %vm958_vm11, %v3396_v62 }
 0x75f   : > { %v2019_v42 = vshra.s32 %v5486_v41, 16  ;;  %v1891_v11 = vshll.u32 %v1890_v37, 16 }
 0x760   : > { %v1877_v20 = vadd.s32 %v1876_v8, %v1874_v5 }
 0x761   : > { %v5490_v47 = vcvt.s32.f32 %v2019_v42 }
 0x762   : > { %v1927_v26 = vand.u32 63, %v1877_v20 }
 0x763   : > { %2022 = vmin.xlane.f32.xlu1 %v5490_v47 }
 0x764   : > { %vm1935_vm13 = vcmp.eq.s32.totalorder %v4415_v23, %v1927_v26 }
 0x765   : > { %v1888_v17 = vpop.xlane.xlu1 %1887  ;;  %v2652_v18 = vld [vmem:[#allocation2 + $0x158] sm:$0xff]  ;;  %v3397_v34 = vsel %vm1935_vm13, 1.0, %v6071_v27  ;;  %v5497_v45 = vsel %vm1935_vm13, 2147483647, %v5356_v30 }
 0x766   : > { %v1889_v51 = vcvt.f32.s32 %v1888_v17  ;;  %3484 = vmatmul.msk.f32.gmra.mxu2 %vm958_vm11, %v2652_v18  ;;  %1960 = vst.msk [vmem:[#allocation2 + $0x160] sm:$0xff] %vm958_vm11, %v3397_v34  ;;  %v5503_v39 = vsel %vm958_vm11, %v5497_v45, 2147483647  ;;  %v1920_v18 = vcvt.f32.s32 %v5430_v28 }
 0x767   : > { %v2034_v36 = vshra.s32 %v5503_v39, 16 }
 0x768   : > { %v1892_v15 = vadd.s32 %v1891_v11, %v1889_v51  ;;  %v1921_v11 = vshll.u32 %v1920_v18, 16 }
 0x769   : > { %v5506_v22 = vcvt.s32.f32 %v2034_v36 }
 0x76a   : > { %v1928_v10 = vand.u32 63, %v1892_v15 }
 0x76b   : > { %2037 = vmin.xlane.f32.xlu2 %v5506_v22 }
 0x76c   : > { %vm1936_vm14 = vcmp.eq.s32.totalorder %v4415_v23, %v1928_v10 }
 0x76d   : > { %v1903_v30 = vpop.xlane.xlu2 %1902  ;;  %v2653_v44 = vld [vmem:[#allocation2 + $0x160] sm:$0xff]  ;;  %v5512_v12 = vsel %vm1936_vm14, 2147483647, %v5373_v13  ;;  %v3398_v49 = vsel %vm1936_vm14, 1.0, %v6071_v27 }
 0x76e   : > { %v1904_v50 = vcvt.f32.s32 %v1903_v30  ;;  %3485 = vmatmul.msk.f32.gmra.mxu2 %vm958_vm11, %v2653_v44  ;;  %v5518_v57 = vsel %vm958_vm11, %v5512_v12, 2147483647  ;;  %1961 = vst.msk [vmem:[#allocation2 + $0x168] sm:$0xff] %vm958_vm11, %v3398_v49  ;;  %v1988_v44 = vand.u32 65535, %v5454_v48  ;;  %v2003_v48 = vand.u32 65535, %v5470_v21 }
 0x76f   : > { %v2049_v3 = vshra.s32 %v5518_v57, 16  ;;  %v2033_v21 = vand.u32 65535, %v5503_v39 }
 0x770   : > { %v1907_v52 = vadd.s32 %v1906_v16, %v1904_v50 }
 0x771   : > { %v5522_v62 = vcvt.s32.f32 %v2049_v3 }
 0x772   : > { %v1929_v8 = vand.u32 63, %v1907_v52 }
 0x773   : > { %2052 = vmin.xlane.f32.xlu0 %v5522_v62 }
 0x774   : > { %vm1937_vm1 = vcmp.eq.s32.totalorder %v4415_v23, %v1929_v8 }
 0x775   : > { %v2654_v13 = vld [vmem:[#allocation2 + $0x168] sm:$0xff]  ;;  %v5527_v5 = vsel %vm1937_vm1, 2147483647, %v5388_v19  ;;  %v3399_v42 = vsel %vm1937_vm1, 1.0, %v6071_v27  ;;  %v1973_v19 = vand.u32 65535, %v5439_v61 }
 0x776   : > { %3486 = vmatmul.msk.f32.gmra.mxu2 %vm958_vm11, %v2654_v13  ;;  %v2062_v20 = vsel %vm958_vm11, %v5527_v5, 2147483647  ;;  %1962 = vst.msk [vmem:[#allocation2 + $0x170] sm:$0xff] %vm958_vm11, %v3399_v42  ;;  %v2005_v13 = vcvt.s32.f32 %v2003_v48 }
 0x777   : > { %v2064_v37 = vshra.s32 %v2062_v20, 16  ;;  %v1975_v1 = vcvt.s32.f32 %v1973_v19 }
 0x779   : > { %v2066_v26 = vcvt.s32.f32 %v2064_v37  ;;  %v2018_v37 = vand.u32 65535, %v5486_v41  ;;  %v2048_v41 = vand.u32 65535, %v5518_v57 }
 0x77b   : > { %2067 = vmin.xlane.f32.xlu2 %v2066_v26  ;;  %v2020_v18 = vcvt.s32.f32 %v2018_v37 }
 0x77d   : > { %v2655_v17 = vld [vmem:[#allocation2 + $0x170] sm:$0xff] }
 0x77e   : > { %3487 = vmatmul.msk.f32.gmra.mxu2 %vm958_vm11, %v2655_v17 }
 0x7bb   : > { %v1918_v34 = vpop.xlane.xlu1 %1917 }
 0x7bc   : > { %v1919_v51 = vcvt.f32.s32 %v1918_v34  ;;  %v2035_v34 = vcvt.s32.f32 %v2033_v21 }
 0x7be   : > { %v1922_v36 = vadd.s32 %v1921_v11, %v1919_v51  ;;  %v1978_v15 = vpop.xlane.xlu0 %1977  ;;  %v2050_v51 = vcvt.s32.f32 %v2048_v41 }
 0x7bf   : > { %vm1979_vm2 = vcmp.eq.f32.partialorder %v5443_v40, %v1978_v15  ;;  %v1990_v40 = vcvt.s32.f32 %v1988_v44 }
 0x7c0   : > { %v1930_v10 = vand.u32 63, %v1922_v36  ;;  %v1980_v30 = vsel %vm1979_vm2, %v1975_v1, inf  ;;  %v2063_v36 = vand.u32 65535, %v2062_v20 }
 0x7c1   : > { %1981 = vmin.xlane.f32.xlu1 %v1980_v30 }
 0x7c2   : > { %vm1938_vm3 = vcmp.eq.s32.totalorder %v4415_v23, %v1930_v10  ;;  %v2065_v1 = vcvt.s32.f32 %v2063_v36 }
 0x7c3   : > { %v3400_v49 = vsel %vm1938_vm3, 1.0, %v6071_v27  ;;  %v5542_v28 = vsel %vm1938_vm3, 2147483647, %v5402_v25 }
 0x7c4   : > { %1963 = vst.msk [vmem:[#allocation2 + $0x178] sm:$0xff] %vm958_vm11, %v3400_v49  ;;  %v2077_v61 = vsel %vm958_vm11, %v5542_v28, 2147483647 }
 0x7c5   : > { %v2079_v16 = vshra.s32 %v2077_v61, 16 }
 0x7c6   : > { %v1993_v50 = vpop.xlane.xlu2 %1992 }
 0x7c7   : > { %v2081_v3 = vcvt.s32.f32 %v2079_v16  ;;  %vm1994_vm4 = vcmp.eq.f32.partialorder %v5458_v14, %v1993_v50  ;;  %v2078_v16 = vand.u32 65535, %v2077_v61 }
 0x7c8   : > { %v1995_v52 = vsel %vm1994_vm4, %v1990_v40, inf  ;;  %v1999_v40 = vcvt.f32.s32 %v1993_v50 }
 0x7c9   : > { %2082 = vmin.xlane.f32.xlu1 %v2081_v3  ;;  %1996 = vmin.xlane.f32.xlu0 %v1995_v52  ;;  %v2080_v48 = vcvt.s32.f32 %v2078_v16 }
 0x7cb   : > { %v2656_v8 = vld [vmem:[#allocation2 + $0x178] sm:$0xff] }
 0x7cc   : > { %3488 = vmatmul.msk.f32.gmra.mxu2 %vm958_vm11, %v2656_v8 }
 0x7ce   : > { %v2008_v25 = vpop.xlane.xlu0 %2007 }
 0x7cf   : > { %vm2009_vm15 = vcmp.eq.f32.partialorder %v5474_v35, %v2008_v25 }
 0x7d0   : > { %v2010_v42 = vsel %vm2009_vm15, %v2005_v13, inf  ;;  %v2000_v13 = vshll.u32 %v1999_v40, 16 }
 0x7d1   : > { %2011 = vmin.xlane.f32.xlu2 %v2010_v42 }
 0x7d6   : > { %v5552_v17 = vpop.xlane.xlu1 %2022 }
 0x7d7   : > { %vm2024_vm0 = vcmp.eq.f32.partialorder %v5490_v47, %v5552_v17 }
 0x7d8   : > { %v2025_v14 = vsel %vm2024_vm0, %v2020_v18, inf }
 0x7d9   : > { %2026 = vmin.xlane.f32.xlu0 %v2025_v14  ;;  %v2014_v14 = vcvt.f32.s32 %v2008_v25 }
 0x7db   : > { %v2015_v41 = vshll.u32 %v2014_v14, 16 }
 0x7de   : > { %v5557_v19 = vpop.xlane.xlu2 %2037 }
 0x7df   : > { %vm2039_vm5 = vcmp.eq.f32.partialorder %v5506_v22, %v5557_v19  ;;  %v1984_v22 = vcvt.f32.s32 %v1978_v15 }
 0x7e0   : > { %v2040_v35 = vsel %vm2039_vm5, %v2035_v34, inf }
 0x7e1   : > { %2041 = vmin.xlane.f32.xlu1 %v2040_v35  ;;  %v1985_v44 = vshll.u32 %v1984_v22, 16 }
 0x7e6   : > { %v5562_v11 = vpop.xlane.xlu0 %2052 }
 0x7e7   : > { %vm2054_vm6 = vcmp.eq.f32.partialorder %v5522_v62, %v5562_v11 }
 0x7e8   : > { %v2055_v47 = vsel %vm2054_vm6, %v2050_v51, inf }
 0x7e9   : > { %2056 = vmin.xlane.f32.xlu2 %v2055_v47 }
 0x7ee   : > { %v5566_v39 = vpop.xlane.xlu2 %2067 }
 0x7ef   : > { %vm2069_vm8 = vcmp.eq.f32.partialorder %v2066_v26, %v5566_v39 }
 0x7f0   : > { %v2070_v10 = vsel %vm2069_vm8, %v2065_v1, inf }
 0x7f1   : > { %2071 = vmin.xlane.f32.xlu0 %v2070_v10  ;;  %v2029_v10 = vcvt.f32.s32 %v5552_v17 }
 0x834   : > { %v1982_v30 = vpop.xlane.xlu1 %1981 }
 0x835   : > { %v1983_v57 = vcvt.f32.s32 %v1982_v30 }
 0x837   : > { %v1986_v49 = vadd.s32 %v1985_v44, %v1983_v57 }
 0x839   : > { %v2092_v52 = vand.u32 63, %v1986_v49  ;;  %v2030_v49 = vshll.u32 %v2029_v10, 16 }
 0x83b   : > { %vm2100_vm7 = vcmp.eq.s32.totalorder %v4415_v23, %v2092_v52 }
 0x83c   : > { %v5570_v62 = vpop.xlane.xlu1 %2082  ;;  %v1997_v20 = vpop.xlane.xlu0 %1996  ;;  %v3401_v8 = vsel %vm2100_vm7, 1.0, %v6071_v27  ;;  %v5574_v26 = vsel %vm2100_vm7, 2147483647, %v5433_v33 }
 0x83d   : > { %v1998_v15 = vcvt.f32.s32 %v1997_v20  ;;  %vm2084_vm10 = vcmp.eq.f32.partialorder %v2081_v3, %v5570_v62  ;;  %2125 = vst.msk [vmem:[#allocation2 + $0x180] sm:$0xff] %vm958_vm11, %v3401_v8  ;;  %v5580_v61 = vsel %vm958_vm11, %v5574_v26, 2147483647  ;;  %v2089_v6 = vcvt.f32.s32 %v5570_v62 }
 0x83e   : > { %v2085_v50 = vsel %vm2084_vm10, %v2080_v48, inf  ;;  %v2143_v42 = vshra.s32 %v5580_v61, 16  ;;  %v2142_v60 = vand.u32 65535, %v5580_v61 }
 0x83f   : > { %v2001_v37 = vadd.s32 %v2000_v13, %v1998_v15  ;;  %2086 = vmin.xlane.f32.xlu2 %v2085_v50 }
 0x840   : > { %v5583_v18 = vcvt.s32.f32 %v2143_v42 }
 0x841   : > { %v2093_v33 = vand.u32 63, %v2001_v37 }
 0x842   : > { %2146 = vmin.xlane.f32.xlu1 %v5583_v18 }
 0x843   : > { %vm2101_vm9 = vcmp.eq.s32.totalorder %v4415_v23, %v2093_v33 }
 0x844   : > { %v2012_v3 = vpop.xlane.xlu2 %2011  ;;  %v2657_v21 = vld [vmem:[#allocation2 + $0x180] sm:$0xff]  ;;  %v3402_v34 = vsel %vm2101_vm9, 1.0, %v6071_v27  ;;  %v5589_v35 = vsel %vm2101_vm9, 2147483647, %v5448_v0 }
 0x845   : > { %v2013_v51 = vcvt.f32.s32 %v2012_v3  ;;  %3489 = vmatmul.msk.f32.vlgmr.msra.gmra.mxu3 %vm958_vm11, %v2657_v21  ;;  %2126 = vst.msk [vmem:[#allocation2 + $0x188] sm:$0xff] %vm958_vm11, %v3402_v34  ;;  %v5595_v25 = vsel %vm958_vm11, %v5589_v35, 2147483647  ;;  %v5633_v34 = vpop.f32.mrf.mxu1 }
 0x846   : > { %v2158_v47 = vshra.s32 %v5595_v25, 16  ;;  %6091 = vst [vmem:[#allocation10_spill] sm:$0xff] %v5633_v34  ;;  %v2157_v62 = vand.u32 65535, %v5595_v25 }
 0x847   : > { %v2016_v36 = vadd.s32 %v2015_v41, %v2013_v51 }
 0x848   : > { %v5598_v1 = vcvt.s32.f32 %v2158_v47 }
 0x849   : > { %v2094_v22 = vand.u32 63, %v2016_v36 }
 0x84a   : > { %2161 = vmin.xlane.f32.xlu0 %v5598_v1 }
 0x84b   : > { %vm2102_vm12 = vcmp.eq.s32.totalorder %v4415_v23, %v2094_v22 }
 0x84c   : > { %v2027_v0 = vpop.xlane.xlu0 %2026  ;;  %v2658_v30 = vld [vmem:[#allocation2 + $0x188] sm:$0xff]  ;;  %v5604_v44 = vsel %vm2102_vm12, 2147483647, %v5464_v46  ;;  %v3403_v57 = vsel %vm2102_vm12, 1.0, %v6071_v27  ;;  %v2044_v46 = vcvt.f32.s32 %v5557_v19 }
 0x84d   : > { %v2028_v16 = vcvt.f32.s32 %v2027_v0  ;;  %3490 = vmatmul.msk.f32.gmra.mxu3 %vm958_vm11, %v2658_v30  ;;  %v5610_v40 = vsel %vm958_vm11, %v5604_v44, 2147483647  ;;  %2127 = vst.msk [vmem:[#allocation2 + $0x190] sm:$0xff] %vm958_vm11, %v3403_v57  ;;  %v5647_v0 = vpop.f32.mrf.mxu2 }
 0x84e   : > { %v2173_v17 = vshra.s32 %v5610_v40, 16  ;;  %v2045_v42 = vshll.u32 %v2044_v46, 16  ;;  %6092 = vst [vmem:[#allocation11_spill] sm:$0xff] %v5647_v0  ;;  %v2144_v0 = vcvt.s32.f32 %v2142_v60 }
 0x84f   : > { %v2031_v52 = vadd.s32 %v2030_v49, %v2028_v16 }
 0x850   : > { %v5614_v20 = vcvt.s32.f32 %v2173_v17  ;;  %v5653_v17 = vpop.f32.mrf.mxu1 }
 0x851   : > { %v2095_v48 = vand.u32 63, %v2031_v52  ;;  %6093 = vst [vmem:[#allocation12_spill] sm:$0xff] %v5653_v17 }
 0x852   : > { %2176 = vmin.xlane.f32.xlu1 %v5614_v20 }
 0x853   : > { %vm2103_vm13 = vcmp.eq.s32.totalorder %v4415_v23, %v2095_v48 }
 0x854   : > { %v2042_v8 = vpop.xlane.xlu1 %2041  ;;  %v2659_v13 = vld [vmem:[#allocation2 + $0x190] sm:$0xff]  ;;  %v5620_v15 = vsel %vm2103_vm13, 2147483647, %v5480_v2  ;;  %v3404_v50 = vsel %vm2103_vm13, 1.0, %v6071_v27  ;;  %v2059_v2 = vcvt.f32.s32 %v5562_v11 }
 0x855   : > { %v2043_v37 = vcvt.f32.s32 %v2042_v8  ;;  %3491 = vmatmul.msk.f32.gmra.mxu3 %vm958_vm11, %v2659_v13  ;;  %v5626_v14 = vsel %vm958_vm11, %v5620_v15, 2147483647  ;;  %2128 = vst.msk [vmem:[#allocation2 + $0x198] sm:$0xff] %vm958_vm11, %v3404_v50 }
 0x856   : > { %v2188_v19 = vshra.s32 %v5626_v14, 16  ;;  %v2060_v10 = vshll.u32 %v2059_v2, 16 }
 0x857   : > { %v2046_v33 = vadd.s32 %v2045_v42, %v2043_v37  ;;  %v5667_v42 = vpop.f32.mrf.mxu2 }
 0x858   : > { %v5630_v3 = vcvt.s32.f32 %v2188_v19  ;;  %6094 = vst [vmem:[#allocation13_spill] sm:$0xff] %v5667_v42  ;;  %v5672_v2 = vpop.f32.mrf.mxu1  ;;  %v2090_v42 = vshll.u32 %v2089_v6, 16 }
 0x859   : > { %v2096_v21 = vand.u32 63, %v2046_v33 }
 0x85a   : > { %2191 = vmin.xlane.f32.xlu2 %v5630_v3 }
 0x85b   : > { %vm2104_vm14 = vcmp.eq.s32.totalorder %v4415_v23, %v2096_v21 }
 0x85c   : > { %v2057_v41 = vpop.xlane.xlu2 %2056  ;;  %v2660_v51 = vld [vmem:[#allocation2 + $0x198] sm:$0xff]  ;;  %v3405_v47 = vsel %vm2104_vm14, 1.0, %v6071_v27  ;;  %v5639_v36 = vsel %vm2104_vm14, 2147483647, %v5497_v45  ;;  %v2074_v45 = vcvt.f32.s32 %v5566_v39 }
 0x85d   : > { %v2058_v22 = vcvt.f32.s32 %v2057_v41  ;;  %3492 = vmatmul.msk.f32.gmra.mxu3 %vm958_vm11, %v2660_v51  ;;  %2129 = vst.msk [vmem:[#allocation2 + $0x1a0] sm:$0xff] %vm958_vm11, %v3405_v47  ;;  %v5645_v11 = vsel %vm958_vm11, %v5639_v36, 2147483647 }
 0x85e   : > { %v2203_v30 = vshra.s32 %v5645_v11, 16  ;;  %v2075_v13 = vshll.u32 %v2074_v45, 16 }
 0x85f   : > { %v2061_v57 = vadd.s32 %v2060_v10, %v2058_v22  ;;  %v3010_v10 = vpop.f32.mrf.mxu2 }
 0x860   : > { %v5650_v49 = vcvt.s32.f32 %v2203_v30 }
 0x861   : > { %v2097_v16 = vand.u32 63, %v2061_v57  ;;  %v5690_v57 = vpop.f32.mrf.mxu1 }
 0x862   : > { %2206 = vmin.xlane.f32.xlu0 %v5650_v49 }
 0x863   : > { %vm2105_vm1 = vcmp.eq.s32.totalorder %v4415_v23, %v2097_v16 }
 0x864   : > { %v2072_v52 = vpop.xlane.xlu0 %2071  ;;  %v2661_v46 = vld [vmem:[#allocation2 + $0x1a0] sm:$0xff]  ;;  %v5658_v48 = vsel %vm2105_vm1, 2147483647, %v5512_v12  ;;  %v3406_v8 = vsel %vm2105_vm1, 1.0, %v6071_v27 }
 0x865   : > { %v2073_v50 = vcvt.f32.s32 %v2072_v52  ;;  %3493 = vmatmul.msk.f32.gmra.mxu3 %vm958_vm11, %v2661_v46  ;;  %v5664_v39 = vsel %vm958_vm11, %v5658_v48, 2147483647  ;;  %2130 = vst.msk [vmem:[#allocation2 + $0x1a8] sm:$0xff] %vm958_vm11, %v3406_v8 }
 0x866   : > { %v2218_v37 = vshra.s32 %v5664_v39, 16 }
 0x867   : > { %v2076_v19 = vadd.s32 %v2075_v13, %v2073_v50  ;;  %v5693_v45 = vpop.f32.mrf.mxu2 }
 0x868   : > { %v5670_v33 = vcvt.s32.f32 %v2218_v37 }
 0x869   : > { %v2098_v12 = vand.u32 63, %v2076_v19  ;;  %v5695_v16 = vpop.f32.mrf.mxu1 }
 0x86a   : > { %2221 = vmin.xlane.f32.xlu1 %v5670_v33 }
 0x86b   : > { %vm2106_vm2 = vcmp.eq.s32.totalorder %v4415_v23, %v2098_v12  ;;  %v5711_v12 = vpop.f32.mrf.mxu0 }
 0x86c   : > { %v2662_v21 = vld [vmem:[#allocation2 + $0x1a8] sm:$0xff]  ;;  %v5677_v41 = vsel %vm2106_vm2, 2147483647, %v5527_v5  ;;  %v3407_v51 = vsel %vm2106_vm2, 1.0, %v6071_v27  ;;  %6095 = vst [vmem:[#allocation14_spill] sm:$0xff] %v5711_v12 }
 0x86d   : > { %3494 = vmatmul.msk.f32.gmra.mxu3 %vm958_vm11, %v2662_v21  ;;  %v5683_v47 = vsel %vm958_vm11, %v5677_v41, 2147483647  ;;  %2131 = vst.msk [vmem:[#allocation2 + $0x1b0] sm:$0xff] %vm958_vm11, %v3407_v51 }
 0x86e   : > { %v2233_v22 = vshra.s32 %v5683_v47, 16 }
 0x86f   : > { %v5697_v52 = vpop.f32.mrf.mxu2 }
 0x870   : > { %v5687_v30 = vcvt.s32.f32 %v2233_v22 }
 0x871   : > { %v5699_v46 = vpop.f32.mrf.mxu1 }
 0x872   : > { %2236 = vmin.xlane.f32.xlu0 %v5687_v30 }
 0x873   : > { %v5717_v22 = vpop.f32.mrf.mxu0 }
 0x874   : > { %v2663_v5 = vld [vmem:[#allocation2 + $0x1b0] sm:$0xff]  ;;  %6098 = vst [vmem:[#allocation17_spill] sm:$0xff] %v5717_v22 }
 0x875   : > { %3495 = vmatmul.msk.f32.gmra.mxu3 %vm958_vm11, %v2663_v5 }
 0x877   : > { %v5701_v8 = vpop.f32.mrf.mxu2 }
 0x879   : > { %v5703_v13 = vpop.f32.mrf.mxu1 }
 0x87f   : > { %v5705_v50 = vpop.f32.mrf.mxu2 }
 0x881   : > { %v5707_v37 = vpop.f32.mrf.mxu1 }
 0x887   : > { %v5709_v19 = vpop.f32.mrf.mxu2 }
 0x889   : > { %v5713_v21 = vpop.f32.mrf.mxu1 }
 0x88a   : > { %6096 = vst [vmem:[#allocation15_spill] sm:$0xff] %v5713_v21  ;;  %v2938_v21 = vpop.f32.mrf.mxu0 }
 0x88f   : > { %v5715_v51 = vpop.f32.mrf.mxu2 }
 0x890   : > { %6097 = vst [vmem:[#allocation16_spill] sm:$0xff] %v5715_v51 }
 0x891   : > { %v5719_v5 = vpop.f32.mrf.mxu1 }
 0x892   : > { %6099 = vst [vmem:[#allocation18_spill] sm:$0xff] %v5719_v5 }
 0x897   : > { %v5723_v27 = vpop.f32.mrf.mxu2 }
 0x898   : > { %6100 = vst [vmem:[#allocation19_spill] sm:$0xff] %v5723_v27  ;;  %v2172_v27 = vand.u32 65535, %v5610_v40 }
 0x899   : > { %v2986_v12 = vpop.f32.mrf.mxu1 }
 0x89a   : > { %v2174_v29 = vcvt.s32.f32 %v2172_v27 }
 0x89f   : > { %v3034_v61 = vpop.f32.mrf.mxu2 }
 0x8b2   : > { %v2087_v43 = vpop.xlane.xlu2 %2086 }
 0x8b3   : > { %v2088_v17 = vcvt.f32.s32 %v2087_v43  ;;  %v6101_v43 = vmov 0.0  }
 0x8b5   : > { %v2091_v53 = vadd.s32 %v2090_v42, %v2088_v17  ;;  %v5725_v54 = vpop.xlane.xlu1 %2146 }
 0x8b6   : > { %vm2148_vm3 = vcmp.eq.f32.partialorder %v5583_v18, %v5725_v54 }
 0x8b7   : > { %v2099_v22 = vand.u32 63, %v2091_v53  ;;  %v2149_v5 = vsel %vm2148_vm3, %v2144_v0, inf  ;;  %v2159_v0 = vcvt.s32.f32 %v2157_v62  ;;  %v3037_v62 = vpop.f32.mrf.mxu2 }
 0x8b8   : > { %2150 = vmin.xlane.f32.xlu2 %v2149_v5  ;;  %v2989_v5 = vpop.f32.mrf.mxu1 }
 0x8b9   : > { %vm2107_vm4 = vcmp.eq.s32.totalorder %v4415_v23, %v2099_v22  ;;  %v2941_v22 = vpop.f32.mrf.mxu0 }
 0x8ba   : > { %v5732_v6 = vsel %vm2107_vm4, 2147483647, %v5542_v28  ;;  %v3408_v17 = vsel %vm2107_vm4, 1.0, %v6101_v43  ;;  %v3130_v28 = vmax.f32 %v4931_v59, %v2938_v21  ;;  %v3138_v59 = vmax.f32 %v4955_v24, %v2941_v22 }
 0x8bb   : > { %v5737_v60 = vsel %vm958_vm11, %v5732_v6, 2147483647  ;;  %2132 = vst.msk [vmem:[#allocation2 + $0x1b8] sm:$0xff] %vm958_vm11, %v3408_v17 }
 0x8bc   : > { %v2248_v53 = vshra.s32 %v5737_v60, 16  ;;  %v3131_v17 = vmax.f32 %v3130_v28, %v5672_v2  ;;  %v3139_v40 = vmax.f32 %v3138_v59, %v5690_v57 }
 0x8bd   : > { %v5741_v18 = vpop.xlane.xlu0 %2161 }
 0x8be   : > { %vm2163_vm15 = vcmp.eq.f32.partialorder %v5598_v1, %v5741_v18  ;;  %v5745_v25 = vcvt.s32.f32 %v2248_v53  ;;  %v3132_v34 = vmax.f32 %v3131_v17, %v2986_v12  ;;  %v2187_v12 = vand.u32 65535, %v5626_v14 }
 0x8bf   : > { %v2164_v42 = vsel %vm2163_vm15, %v2159_v0, inf  ;;  %v3040_v17 = vpop.f32.mrf.mxu2 }
 0x8c0   : > { %2165 = vmin.xlane.f32.xlu1 %v2164_v42  ;;  %2251 = vmin.xlane.f32.xlu2 %v5745_v25  ;;  %v3133_v1 = vmax.f32 %v3132_v34, %v3010_v10  ;;  %v2992_v34 = vpop.f32.mrf.mxu1  ;;  %v3140_v10 = vmax.f32 %v3139_v40, %v2989_v5  ;;  %v2202_v5 = vand.u32 65535, %v5645_v11 }
 0x8c2   : > { %v2664_v51 = vld [vmem:[#allocation2 + $0x1b8] sm:$0xff]  ;;  %v3134_v21 = vmax.f32 %v3133_v1, %v3034_v61  ;;  %v3141_v27 = vmax.f32 %v3140_v10, %v5693_v45 }
 0x8c3   : > { %3496 = vmatmul.msk.f32.gmra.mxu3 %vm958_vm11, %v2664_v51  ;;  %v2944_v51 = vpop.f32.mrf.mxu0 }
 0x8c4   : > { %v3142_v24 = vmax.f32 %v3141_v27, %v3037_v62 }
 0x8c5   : > { %v5752_v53 = vpop.xlane.xlu1 %2176 }
 0x8c6   : > { %vm2178_vm0 = vcmp.eq.f32.partialorder %v5614_v20, %v5752_v53  ;;  %v2189_v20 = vcvt.s32.f32 %v2187_v12 }
 0x8c7   : > { %v2179_v0 = vsel %vm2178_vm0, %v2174_v29, inf  ;;  %v3146_v29 = vmax.f32 %v4965_v63, %v2944_v51  ;;  %v2217_v51 = vand.u32 65535, %v5664_v39 }
 0x8c8   : > { %v3058_v42 = vpop.f32.mrf.mxu3  ;;  %2180 = vmin.xlane.f32.xlu0 %v2179_v0  ;;  %v2995_v59 = vpop.f32.mrf.mxu1 }
 0x8c9   : > { %v5758_v2 = vmax.f32 %v3134_v21, %v3058_v42  ;;  %v3147_v14 = vmax.f32 %v3146_v29, %v5695_v16  ;;  %v3043_v16 = vpop.f32.mrf.mxu2  ;;  %v2219_v27 = vcvt.s32.f32 %v2217_v51  ;;  %v2247_v51 = vand.u32 65535, %v5737_v60 }
 0x8cb   : > { %v3148_v45 = vmax.f32 %v3147_v14, %v2992_v34  ;;  %v2947_v1 = vpop.f32.mrf.mxu0 }
 0x8cc   : > { %v3154_v63 = vmax.f32 %v4976_v32, %v2947_v1 }
 0x8cd   : > { %v5762_v28 = vpop.xlane.xlu2 %2191  ;;  %v3149_v21 = vmax.f32 %v3148_v45, %v5697_v52 }
 0x8ce   : > { %vm2193_vm5 = vcmp.eq.f32.partialorder %v5630_v3, %v5762_v28  ;;  %v2204_v3 = vcvt.s32.f32 %v2202_v5  ;;  %v3155_v11 = vmax.f32 %v3154_v63, %v5699_v46  ;;  %v6102_v46 = vmax.f32 %v4987_v4, %v4990_v38 }
 0x8cf   : > { %v2194_v57 = vsel %vm2193_vm5, %v2189_v20, inf  ;;  %v3150_v62 = vmax.f32 %v3149_v21, %v3040_v17  ;;  %v6103_v4 = vmax.f32 %v4998_v9, %v5000_v7  ;;  %v2168_v9 = vcvt.f32.s32 %v5741_v18 }
 0x8d0   : > { %v3061_v61 = vpop.f32.mrf.mxu3  ;;  %2195 = vmin.xlane.f32.xlu1 %v2194_v57  ;;  %v3156_v52 = vmax.f32 %v3155_v11, %v2995_v59  ;;  %v3163_v29 = vmax.f32 %v6102_v46, %v5703_v13 }
 0x8d1   : > { %v5768_v22 = vmax.f32 %v3142_v24, %v3061_v61  ;;  %v3046_v24 = vpop.f32.mrf.mxu2  ;;  %v3171_v38 = vmax.f32 %v6103_v4, %v5707_v37 }
 0x8d2   : > { %v3157_v34 = vmax.f32 %v3156_v52, %v5701_v8  ;;  %v2232_v8 = vand.u32 65535, %v5683_v47 }
 0x8d4   : > { %v3158_v32 = vmax.f32 %v3157_v34, %v3043_v16 }
 0x8d5   : > { %v5772_v0 = vpop.xlane.xlu0 %2206 }
 0x8d6   : > { %vm2208_vm6 = vcmp.eq.f32.partialorder %v5650_v49, %v5772_v0  ;;  %v2998_v49 = vpop.f32.mrf.mxu1 }
 0x8d7   : > { %v2209_v42 = vsel %vm2208_vm6, %v2204_v3, inf  ;;  %v3164_v57 = vmax.f32 %v3163_v29, %v2998_v49 }
 0x8d8   : > { %v3064_v40 = vpop.f32.mrf.mxu3  ;;  %2210 = vmin.xlane.f32.xlu2 %v2209_v42 }
 0x8d9   : > { %v5778_v12 = vmax.f32 %v3150_v62, %v3064_v40  ;;  %v3165_v61 = vmax.f32 %v3164_v57, %v5705_v50  ;;  %v3049_v50 = vpop.f32.mrf.mxu2 }
 0x8db   : > { %v3166_v5 = vmax.f32 %v3165_v61, %v3046_v24 }
 0x8dd   : > { %v5782_v10 = vpop.xlane.xlu1 %2221 }
 0x8de   : > { %vm2223_vm8 = vcmp.eq.f32.partialorder %v5670_v33, %v5782_v10  ;;  %v2234_v33 = vcvt.s32.f32 %v2232_v8  ;;  %v3001_v1 = vpop.f32.mrf.mxu1 }
 0x8df   : > { %v2224_v20 = vsel %vm2223_vm8, %v2219_v27, inf  ;;  %v3172_v13 = vmax.f32 %v3171_v38, %v3001_v1  ;;  %v2198_v1 = vcvt.f32.s32 %v5762_v28 }
 0x8e0   : > { %v3067_v17 = vpop.f32.mrf.mxu3  ;;  %2225 = vmin.xlane.f32.xlu0 %v2224_v20 }
 0x8e1   : > { %v5790_v39 = vmax.f32 %v3158_v32, %v3067_v17  ;;  %v3173_v21 = vmax.f32 %v3172_v13, %v5709_v19  ;;  %v2249_v19 = vcvt.s32.f32 %v2247_v51 }
 0x8e3   : > { %v3174_v3 = vmax.f32 %v3173_v21, %v3049_v50  ;;  %v2199_v50 = vshll.u32 %v2198_v1, 16 }
 0x8e5   : > { %v5794_v14 = vpop.xlane.xlu0 %2236 }
 0x8e6   : > { %vm2238_vm7 = vcmp.eq.f32.partialorder %v5687_v30, %v5794_v14  ;;  %v2153_v30 = vcvt.f32.s32 %v5725_v54  ;;  %v2169_v54 = vshll.u32 %v2168_v9, 16 }
 0x8e7   : > { %v2239_v45 = vsel %vm2238_vm7, %v2234_v33, inf }
 0x8e8   : > { %v3070_v59 = vpop.f32.mrf.mxu3  ;;  %2240 = vmin.xlane.f32.xlu1 %v2239_v45  ;;  %v2154_v16 = vshll.u32 %v2153_v30, 16 }
 0x8e9   : > { %v5802_v47 = vmax.f32 %v3166_v5, %v3070_v59 }
 0x8f0   : > { %v3073_v63 = vpop.f32.mrf.mxu3 }
 0x8f1   : > { %v5805_v62 = vmax.f32 %v3174_v3, %v3073_v63 }
 0x92b   : > { %v2151_v42 = vpop.xlane.xlu2 %2150 }
 0x92c   : > { %v2152_v40 = vcvt.f32.s32 %v2151_v42  ;;  %v2213_v42 = vcvt.f32.s32 %v5772_v0 }
 0x92e   : > { %v2155_v11 = vadd.s32 %v2154_v16, %v2152_v40  ;;  %v2214_v9 = vshll.u32 %v2213_v42, 16 }
 0x930   : > { %v2261_v7 = vand.u32 63, %v2155_v11 }
 0x932   : > { %vm2269_vm10 = vcmp.eq.s32.totalorder %v4415_v23, %v2261_v7 }
 0x933   : > { %v2166_v37 = vpop.xlane.xlu1 %2165  ;;  %v5811_v52 = vpop.xlane.xlu2 %2251  ;;  %v2302_v34 = vsel %vm2269_vm10, 2147483647, %v5574_v26  ;;  %v3409_v27 = vsel %vm2269_vm10, 1.0, %v6101_v43  ;;  %v2183_v26 = vcvt.f32.s32 %v5752_v53 }
 0x934   : > { %v2167_v49 = vcvt.f32.s32 %v2166_v37  ;;  %vm2253_vm9 = vcmp.eq.f32.partialorder %v5745_v25, %v5811_v52  ;;  %v5818_v60 = vsel %vm958_vm11, %v2302_v34, 2147483647  ;;  %2294 = vst.msk [vmem:[#allocation2 + $0x1c0] sm:$0xff] %vm958_vm11, %v3409_v27  ;;  %v2228_v27 = vcvt.f32.s32 %v5782_v10 }
 0x935   : > { %v2254_v18 = vsel %vm2253_vm9, %v2249_v19, inf  ;;  %v2312_v32 = vshra.s32 %v5818_v60, 16  ;;  %v2184_v57 = vshll.u32 %v2183_v26, 16 }
 0x936   : > { %v2170_v20 = vadd.s32 %v2169_v54, %v2167_v49  ;;  %2255 = vmin.xlane.f32.xlu0 %v2254_v18 }
 0x937   : > { %v5822_v17 = vcvt.s32.f32 %v2312_v32 }
 0x938   : > { %v2262_v46 = vand.u32 63, %v2170_v20  ;;  %v2229_v20 = vshll.u32 %v2228_v27, 16 }
 0x939   : > { %2315 = vmin.xlane.f32.xlu2 %v5822_v17 }
 0x93a   : > { %vm2270_vm12 = vcmp.eq.s32.totalorder %v4415_v23, %v2262_v46 }
 0x93b   : > { %v2181_v25 = vpop.xlane.xlu0 %2180  ;;  %v2665_v29 = vld [vmem:[#allocation2 + $0x1c0] sm:$0xff]  ;;  %v3410_v8 = vsel %vm2270_vm12, 1.0, %v6101_v43  ;;  %v2303_v24 = vsel %vm2270_vm12, 2147483647, %v5589_v35 }
 0x93c   : > { %v2182_v61 = vcvt.f32.s32 %v2181_v25  ;;  %3497 = vmatmul.msk.f32.gmra.mxu3 %vm958_vm11, %v2665_v29  ;;  %2295 = vst.msk [vmem:[#allocation2 + $0x1c8] sm:$0xff] %vm958_vm11, %v3410_v8  ;;  %v5832_v33 = vsel %vm958_vm11, %v2303_v24, 2147483647  ;;  %v2243_v8 = vcvt.f32.s32 %v5794_v14 }
 0x93d   : > { %v2327_v53 = vshra.s32 %v5832_v33, 16  ;;  %v2326_v27 = vand.u32 65535, %v5832_v33 }
 0x93e   : > { %v2185_v5 = vadd.s32 %v2184_v57, %v2182_v61 }
 0x93f   : > { %v5835_v45 = vcvt.s32.f32 %v2327_v53 }
 0x940   : > { %v2263_v59 = vand.u32 63, %v2185_v5  ;;  %v2244_v5 = vshll.u32 %v2243_v8, 16 }
 0x941   : > { %2330 = vmin.xlane.f32.xlu1 %v5835_v45 }
 0x942   : > { %vm2271_vm13 = vcmp.eq.s32.totalorder %v4415_v23, %v2263_v59 }
 0x943   : > { %v2196_v35 = vpop.xlane.xlu1 %2195  ;;  %v2666_v4 = vld [vmem:[#allocation2 + $0x1c8] sm:$0xff]  ;;  %v3411_v38 = vsel %vm2271_vm13, 1.0, %v6101_v43  ;;  %v2304_v13 = vsel %vm2271_vm13, 2147483647, %v5604_v44 }
 0x944   : > { %v2197_v21 = vcvt.f32.s32 %v2196_v35  ;;  %3498 = vmatmul.msk.f32.gmra.mxu3 %vm958_vm11, %v2666_v4  ;;  %2296 = vst.msk [vmem:[#allocation2 + $0x1d0] sm:$0xff] %vm958_vm11, %v3411_v38  ;;  %v5845_v3 = vsel %vm958_vm11, %v2304_v13, 2147483647 }
 0x945   : > { %v2342_v28 = vshra.s32 %v5845_v3, 16  ;;  %v2341_v33 = vand.u32 65535, %v5845_v3 }
 0x946   : > { %v2200_v63 = vadd.s32 %v2199_v50, %v2197_v21 }
 0x947   : > { %v5848_v30 = vcvt.s32.f32 %v2342_v28 }
 0x948   : > { %v2264_v16 = vand.u32 63, %v2200_v63 }
 0x949   : > { %2345 = vmin.xlane.f32.xlu2 %v5848_v30 }
 0x94a   : > { %vm2272_vm14 = vcmp.eq.s32.totalorder %v4415_v23, %v2264_v16  ;;  %v2258_v16 = vcvt.f32.s32 %v5811_v52 }
 0x94b   : > { %v3412_v44 = vsel %vm2272_vm14, 1.0, %v6101_v43  ;;  %v2305_v40 = vsel %vm2272_vm14, 2147483647, %v5620_v15  ;;  %v2211_v11 = vpop.xlane.xlu2 %2210  ;;  %v2667_v51 = vld [vmem:[#allocation2 + $0x1d0] sm:$0xff] }
 0x94c   : > { %2297 = vst.msk [vmem:[#allocation2 + $0x1d8] sm:$0xff] %vm958_vm11, %v3412_v44  ;;  %v2212_v7 = vcvt.f32.s32 %v2211_v11  ;;  %3499 = vmatmul.msk.f32.gmra.mxu3 %vm958_vm11, %v2667_v51  ;;  %v5858_v37 = vsel %vm958_vm11, %v2305_v40, 2147483647  ;;  %v2311_v44 = vand.u32 65535, %v5818_v60  ;;  %v2259_v11 = vshll.u32 %v2258_v16, 16 }
 0x94d   : > { %v2357_v0 = vshra.s32 %v5858_v37, 16 }
 0x94e   : > { %v2215_v19 = vadd.s32 %v2214_v9, %v2212_v7  ;;  %v2313_v7 = vcvt.s32.f32 %v2311_v44 }
 0x94f   : > { %v5861_v34 = vcvt.s32.f32 %v2357_v0 }
 0x950   : > { %v2265_v54 = vand.u32 63, %v2215_v19 }
 0x951   : > { %2360 = vmin.xlane.f32.xlu0 %v5861_v34 }
 0x952   : > { %vm2273_vm1 = vcmp.eq.s32.totalorder %v4415_v23, %v2265_v54 }
 0x953   : > { %v3413_v15 = vsel %vm2273_vm1, 1.0, %v6101_v43  ;;  %v2306_v49 = vsel %vm2273_vm1, 2147483647, %v5639_v36  ;;  %v2226_v18 = vpop.xlane.xlu0 %2225  ;;  %v2668_v32 = vld [vmem:[#allocation2 + $0x1d8] sm:$0xff] }
 0x954   : > { %2298 = vst.msk [vmem:[#allocation2 + $0x1e0] sm:$0xff] %vm958_vm11, %v3413_v15  ;;  %v2227_v26 = vcvt.f32.s32 %v2226_v18  ;;  %3500 = vmatmul.msk.f32.gmra.mxu3 %vm958_vm11, %v2668_v32  ;;  %v5871_v46 = vsel %vm958_vm11, %v2306_v49, 2147483647  ;;  %v2328_v18 = vcvt.s32.f32 %v2326_v27 }
 0x955   : > { %v2372_v10 = vshra.s32 %v5871_v46, 16 }
 0x956   : > { %v2230_v25 = vadd.s32 %v2229_v20, %v2227_v26 }
 0x957   : > { %v5874_v29 = vcvt.s32.f32 %v2372_v10 }
 0x958   : > { %v2266_v24 = vand.u32 63, %v2230_v25  ;;  %v2356_v25 = vand.u32 65535, %v5858_v37 }
 0x959   : > { %2375 = vmin.xlane.f32.xlu1 %v5874_v29 }
 0x95a   : > { %vm2274_vm2 = vcmp.eq.s32.totalorder %v4415_v23, %v2266_v24  ;;  %v2358_v24 = vcvt.s32.f32 %v2356_v25 }
 0x95b   : > { %v3414_v36 = vsel %vm2274_vm2, 1.0, %v6101_v43  ;;  %v2307_v57 = vsel %vm2274_vm2, 2147483647, %v5658_v48  ;;  %v2241_v61 = vpop.xlane.xlu1 %2240  ;;  %v2669_v53 = vld [vmem:[#allocation2 + $0x1e0] sm:$0xff] }
 0x95c   : > { %2299 = vst.msk [vmem:[#allocation2 + $0x1e8] sm:$0xff] %vm958_vm11, %v3414_v36  ;;  %v2242_v1 = vcvt.f32.s32 %v2241_v61  ;;  %3501 = vmatmul.msk.f32.gmra.mxu3 %vm958_vm11, %v2669_v53  ;;  %v5884_v59 = vsel %vm958_vm11, %v2307_v57, 2147483647  ;;  %v2371_v36 = vand.u32 65535, %v5871_v46 }
 0x95d   : > { %v2387_v14 = vshra.s32 %v5884_v59, 16 }
 0x95e   : > { %v2245_v35 = vadd.s32 %v2244_v5, %v2242_v1  ;;  %v2373_v57 = vcvt.s32.f32 %v2371_v36 }
 0x95f   : > { %v5887_v4 = vcvt.s32.f32 %v2387_v14 }
 0x960   : > { %v2267_v38 = vand.u32 63, %v2245_v35 }
 0x961   : > { %2390 = vmin.xlane.f32.xlu2 %v5887_v4 }
 0x962   : > { %vm2275_vm3 = vcmp.eq.s32.totalorder %v4415_v23, %v2267_v38 }
 0x963   : > { %v3415_v48 = vsel %vm2275_vm3, 1.0, %v6101_v43  ;;  %v2308_v13 = vsel %vm2275_vm3, 2147483647, %v5677_v41  ;;  %v2670_v50 = vld [vmem:[#allocation2 + $0x1e8] sm:$0xff] }
 0x964   : > { %2300 = vst.msk [vmem:[#allocation2 + $0x1f0] sm:$0xff] %vm958_vm11, %v3415_v48  ;;  %3502 = vmatmul.msk.f32.gmra.mxu3 %vm958_vm11, %v2670_v50  ;;  %v2400_v21 = vsel %vm958_vm11, %v2308_v13, 2147483647 }
 0x965   : > { %v2402_v28 = vshra.s32 %v2400_v21, 16  ;;  %v2401_v5 = vand.u32 65535, %v2400_v21 }
 0x967   : > { %v2404_v63 = vcvt.s32.f32 %v2402_v28  ;;  %v2403_v1 = vcvt.s32.f32 %v2401_v5 }
 0x969   : > { %2405 = vmin.xlane.f32.xlu1 %v2404_v63 }
 0x96b   : > { %v2671_v42 = vld [vmem:[#allocation2 + $0x1f0] sm:$0xff] }
 0x96c   : > { %3503 = vmatmul.msk.f32.gmra.mxu3 %vm958_vm11, %v2671_v42 }
 0x9a9   : > { %v2256_v40 = vpop.xlane.xlu0 %2255 }
 0x9aa   : > { %v2257_v41 = vcvt.f32.s32 %v2256_v40 }
 0x9ac   : > { %v2260_v51 = vadd.s32 %v2259_v11, %v2257_v41  ;;  %v2316_v9 = vpop.xlane.xlu2 %2315 }
 0x9ad   : > { %vm2317_vm4 = vcmp.eq.f32.partialorder %v5822_v17, %v2316_v9 }
 0x9ae   : > { %v2268_v0 = vand.u32 63, %v2260_v51  ;;  %v2318_v19 = vsel %vm2317_vm4, %v2313_v7, inf }
 0x9af   : > { %2319 = vmin.xlane.f32.xlu0 %v2318_v19 }
 0x9b0   : > { %vm2276_vm15 = vcmp.eq.s32.totalorder %v4415_v23, %v2268_v0 }
 0x9b1   : > { %v3416_v54 = vsel %vm2276_vm15, 1.0, %v6101_v43  ;;  %v2309_v52 = vsel %vm2276_vm15, 2147483647, %v5732_v6  ;;  %v2343_v6 = vcvt.s32.f32 %v2341_v33 }
 0x9b2   : > { %2301 = vst.msk [vmem:[#allocation2 + $0x1f8] sm:$0xff] %vm958_vm11, %v3416_v54  ;;  %v2415_v60 = vsel %vm958_vm11, %v2309_v52, 2147483647 }
 0x9b3   : > { %v2417_v15 = vshra.s32 %v2415_v60, 16  ;;  %v2416_v13 = vand.u32 65535, %v2415_v60 }
 0x9b4   : > { %v2331_v49 = vpop.xlane.xlu1 %2330 }
 0x9b5   : > { %vm2332_vm0 = vcmp.eq.f32.partialorder %v5835_v45, %v2331_v49  ;;  %v2419_v17 = vcvt.s32.f32 %v2417_v15  ;;  %v2337_v50 = vcvt.f32.s32 %v2331_v49  ;;  %v2418_v16 = vcvt.s32.f32 %v2416_v13 }
 0x9b6   : > { %v2333_v32 = vsel %vm2332_vm0, %v2328_v18, inf }
 0x9b7   : > { %2334 = vmin.xlane.f32.xlu2 %v2333_v32  ;;  %2420 = vmin.xlane.f32.xlu0 %v2419_v17  ;;  %v2338_v44 = vshll.u32 %v2337_v50, 16  ;;  %v5955_v50 = vpop.f32.mrf.mxu3 }
 0x9b9   : > { %v2672_v20 = vld [vmem:[#allocation2 + $0x1f8] sm:$0xff] }
 0x9ba   : > { %3504 = vmatmul.msk.f32.gmra.mxu3 %vm958_vm11, %v2672_v20 }
 0x9bc   : > { %v2346_v26 = vpop.xlane.xlu2 %2345 }
 0x9bd   : > { %vm2347_vm5 = vcmp.eq.f32.partialorder %v5848_v30, %v2346_v26  ;;  %v2386_v30 = vand.u32 65535, %v5884_v59  ;;  %v2352_v41 = vcvt.f32.s32 %v2346_v26 }
 0x9be   : > { %v2348_v10 = vsel %vm2347_vm5, %v2343_v6, inf }
 0x9bf   : > { %2349 = vmin.xlane.f32.xlu1 %v2348_v10  ;;  %v2388_v37 = vcvt.s32.f32 %v2386_v30  ;;  %v2353_v19 = vshll.u32 %v2352_v41, 16 }
 0x9c4   : > { %v2361_v8 = vpop.xlane.xlu0 %2360 }
 0x9c5   : > { %vm2362_vm6 = vcmp.eq.f32.partialorder %v5861_v34, %v2361_v8  ;;  %v2367_v52 = vcvt.f32.s32 %v2361_v8 }
 0x9c6   : > { %v2363_v45 = vsel %vm2362_vm6, %v2358_v24, inf }
 0x9c7   : > { %2364 = vmin.xlane.f32.xlu2 %v2363_v45 }
 0x9cc   : > { %v5913_v3 = vpop.xlane.xlu1 %2375 }
 0x9cd   : > { %vm2377_vm8 = vcmp.eq.f32.partialorder %v5874_v29, %v5913_v3  ;;  %v2322_v29 = vcvt.f32.s32 %v2316_v9  ;;  %v2382_v20 = vcvt.f32.s32 %v5913_v3 }
 0x9ce   : > { %v2378_v61 = vsel %vm2377_vm8, %v2373_v57, inf }
 0x9cf   : > { %2379 = vmin.xlane.f32.xlu0 %v2378_v61  ;;  %v2323_v38 = vshll.u32 %v2322_v29, 16  ;;  %v2383_v8 = vshll.u32 %v2382_v20, 16 }
 0x9d4   : > { %v5918_v53 = vpop.xlane.xlu2 %2390 }
 0x9d5   : > { %vm2392_vm7 = vcmp.eq.f32.partialorder %v5887_v4, %v5918_v53  ;;  %v2397_v36 = vcvt.f32.s32 %v5918_v53 }
 0x9d6   : > { %v2393_v34 = vsel %vm2392_vm7, %v2388_v37, inf }
 0x9d7   : > { %2394 = vmin.xlane.f32.xlu1 %v2393_v34  ;;  %v2398_v37 = vshll.u32 %v2397_v36, 16 }
 0x9dc   : > { %v5922_v46 = vpop.xlane.xlu1 %2405 }
 0x9dd   : > { %vm2407_vm10 = vcmp.eq.f32.partialorder %v2404_v63, %v5922_v46 }
 0x9de   : > { %v2408_v14 = vsel %vm2407_vm10, %v2403_v1, inf  ;;  %v2412_v1 = vcvt.f32.s32 %v5922_v46 }
 0x9df   : > { %2409 = vmin.xlane.f32.xlu2 %v2408_v14 }
 0xa22   : > { %v2320_v35 = vpop.xlane.xlu0 %2319 }
 0xa23   : > { %v2321_v59 = vcvt.f32.s32 %v2320_v35 }
 0xa25   : > { %v2324_v48 = vadd.s32 %v2323_v38, %v2321_v59  ;;  %v2413_v38 = vshll.u32 %v2412_v1, 16  ;;  %v6105_v1 = vld [vmem:[#allocation10_spill] sm:$0xff] }
 0xa27   : > { %v2430_v28 = vand.u32 63, %v2324_v48 }
 0xa29   : > { %vm2438_vm9 = vcmp.eq.s32.totalorder %v4415_v23, %v2430_v28 }
 0xa2a   : > { %v3417_v4 = vsel %vm2438_vm9, 1.0, %v6101_v43  ;;  %v5927_v21 = vpop.xlane.xlu0 %2420  ;;  %v2335_v42 = vpop.xlane.xlu2 %2334 }
 0xa2b   : > { %2463 = vst.msk [vmem:[#allocation2 + $0x200] sm:$0xff] %vm958_vm11, %v3417_v4  ;;  %vm2422_vm12 = vcmp.eq.f32.partialorder %v2419_v17, %v5927_v21  ;;  %v2336_v63 = vcvt.f32.s32 %v2335_v42  ;;  %v2368_v17 = vshll.u32 %v2367_v52, 16  ;;  %v5960_v4 = vpop.f32.mrf.mxu3 }
 0xa2c   : > { %v2423_v40 = vsel %vm2422_vm12, %v2418_v16, inf }
 0xa2d   : > { %v2339_v11 = vadd.s32 %v2338_v44, %v2336_v63  ;;  %2424 = vmin.xlane.f32.xlu0 %v2423_v40 }
 0xa2f   : > { %v2431_v51 = vand.u32 63, %v2339_v11 }
 0xa31   : > { %vm2439_vm13 = vcmp.eq.s32.totalorder %v4415_v23, %v2431_v51  ;;  %v2427_v51 = vcvt.f32.s32 %v5927_v21  ;;  %v5975_v21 = vld [vmem:[%s6069_s4] ss:$0 sm:$0xff] }
 0xa32   : > { %v3418_v9 = vsel %vm2439_vm13, 1.0, %v6101_v43  ;;  %v2350_v7 = vpop.xlane.xlu1 %2349  ;;  %v2673_v0 = vld [vmem:[#allocation2 + $0x200] sm:$0xff] }
 0xa33   : > { %2464 = vst.msk [vmem:[#allocation2 + $0x208] sm:$0xff] %vm958_vm11, %v3418_v9  ;;  %v2351_v27 = vcvt.f32.s32 %v2350_v7  ;;  %3505 = vmatmul.msk.f32.gmra.mxu3 %vm958_vm11, %v2673_v0  ;;  %v3082_v16 = vpop.f32.mrf.mxu3  ;;  %v2428_v7 = vshll.u32 %v2427_v51, 16 }
 0xa35   : > { %v2354_v54 = vadd.s32 %v2353_v19, %v2351_v27 }
 0xa37   : > { %v2432_v60 = vand.u32 63, %v2354_v54 }
 0xa39   : > { %vm2440_vm14 = vcmp.eq.s32.totalorder %v4415_v23, %v2432_v60 }
 0xa3a   : > { %v3419_v15 = vsel %vm2440_vm14, 1.0, %v6101_v43  ;;  %v2365_v49 = vpop.xlane.xlu2 %2364  ;;  %v2674_v18 = vld [vmem:[#allocation2 + $0x208] sm:$0xff] }
 0xa3b   : > { %2465 = vst.msk [vmem:[#allocation2 + $0x210] sm:$0xff] %vm958_vm11, %v3419_v15  ;;  %v2366_v32 = vcvt.f32.s32 %v2365_v49  ;;  %3506 = vmatmul.msk.f32.gmra.mxu3 %vm958_vm11, %v2674_v18  ;;  %v3085_v44 = vpop.f32.mrf.mxu3  ;;  %v3136_v49 = vmax.f32 %v5758_v2, %v3082_v16  ;;  %v2522_v2 = vadd.f32 %v5975_v21, %v4919_v58  ;;  %v2528_v58 = vadd.f32 %v5975_v21, %v4924_v31  ;;  %v6108_v31 = vld [vmem:[#allocation11_spill] sm:$0xff] }
 0xa3d   : > { %v2369_v33 = vadd.s32 %v2368_v17, %v2366_v32 }
 0xa3f   : > { %v2433_v26 = vand.u32 63, %v2369_v33  ;;  %v3144_v33 = vmax.f32 %v5768_v22, %v3085_v44  ;;  %v2525_v22 = vadd.f32 %v5975_v21, %v4921_v56 }
 0xa41   : > { %vm2441_vm1 = vcmp.eq.s32.totalorder %v4415_v23, %v2433_v26 }
 0xa42   : > { %v3420_v6 = vsel %vm2441_vm1, 1.0, %v6101_v43  ;;  %v2380_v10 = vpop.xlane.xlu0 %2379  ;;  %v2675_v25 = vld [vmem:[#allocation2 + $0x210] sm:$0xff] }
 0xa43   : > { %2466 = vst.msk [vmem:[#allocation2 + $0x218] sm:$0xff] %vm958_vm11, %v3420_v6  ;;  %v2381_v24 = vcvt.f32.s32 %v2380_v10  ;;  %3507 = vmatmul.msk.f32.gmra.mxu3 %vm958_vm11, %v2675_v25  ;;  %v3088_v63 = vpop.f32.mrf.mxu3 }
 0xa44   : > { %v3152_v10 = vmax.f32 %v5778_v12, %v3088_v63 }
 0xa45   : > { %v2384_v45 = vadd.s32 %v2383_v8, %v2381_v24 }
 0xa47   : > { %v2434_v57 = vand.u32 63, %v2384_v45 }
 0xa49   : > { %vm2442_vm2 = vcmp.eq.s32.totalorder %v4415_v23, %v2434_v57 }
 0xa4a   : > { %v3421_v3 = vsel %vm2442_vm2, 1.0, %v6101_v43  ;;  %v2395_v61 = vpop.xlane.xlu1 %2394  ;;  %v2676_v30 = vld [vmem:[#allocation2 + $0x218] sm:$0xff] }
 0xa4b   : > { %2467 = vst.msk [vmem:[#allocation2 + $0x220] sm:$0xff] %vm958_vm11, %v3421_v3  ;;  %v2396_v34 = vcvt.f32.s32 %v2395_v61  ;;  %3508 = vmatmul.msk.f32.gmra.mxu3 %vm958_vm11, %v2676_v30  ;;  %v3091_v40 = vpop.f32.mrf.mxu3 }
 0xa4c   : > { %v3160_v36 = vmax.f32 %v5790_v39, %v3091_v40 }
 0xa4d   : > { %v2399_v5 = vadd.s32 %v2398_v37, %v2396_v34  ;;  %v6104_v34 = vld [vmem:[#allocation6_spill] sm:$0xff] }
 0xa4e   : > { %v2531_v56 = vadd.f32 %v5975_v21, %v6104_v34 }
 0xa4f   : > { %v2435_v14 = vand.u32 63, %v2399_v5 }
 0xa51   : > { %vm2443_vm3 = vcmp.eq.s32.totalorder %v4415_v23, %v2435_v14  ;;  %v6106_v14 = vld [vmem:[#allocation14_spill] sm:$0xff] }
 0xa52   : > { %v3422_v53 = vsel %vm2443_vm3, 1.0, %v6101_v43  ;;  %v2410_v29 = vpop.xlane.xlu2 %2409  ;;  %v2677_v35 = vld [vmem:[#allocation2 + $0x220] sm:$0xff]  ;;  %v3178_v39 = vmax.f32 %v6106_v14, %v6105_v1 }
 0xa53   : > { %2468 = vst.msk [vmem:[#allocation2 + $0x228] sm:$0xff] %vm958_vm11, %v3422_v53  ;;  %v2411_v59 = vcvt.f32.s32 %v2410_v29  ;;  %3509 = vmatmul.msk.f32.gmra.mxu3 %vm958_vm11, %v2677_v35  ;;  %v3094_v11 = vpop.f32.mrf.mxu3  ;;  %v6107_v29 = vld [vmem:[#allocation15_spill] sm:$0xff] }
 0xa54   : > { %v3168_v12 = vmax.f32 %v5802_v47, %v3094_v11  ;;  %v3179_v35 = vmax.f32 %v3178_v39, %v6107_v29  ;;  %v3052_v47 = vpop.f32.mrf.mxu2 }
 0xa55   : > { %v2414_v48 = vadd.s32 %v2413_v38, %v2411_v59 }
 0xa56   : > { %v3180_v59 = vmax.f32 %v3179_v35, %v6108_v31 }
 0xa57   : > { %v2436_v13 = vand.u32 63, %v2414_v48 }
 0xa59   : > { %vm2444_vm4 = vcmp.eq.s32.totalorder %v4415_v23, %v2436_v13 }
 0xa5a   : > { %v3423_v46 = vsel %vm2444_vm4, 1.0, %v6101_v43  ;;  %v2678_v28 = vld [vmem:[#allocation2 + $0x228] sm:$0xff] }
 0xa5b   : > { %2469 = vst.msk [vmem:[#allocation2 + $0x230] sm:$0xff] %vm958_vm11, %v3423_v46  ;;  %3510 = vmatmul.msk.f32.gmra.mxu3 %vm958_vm11, %v2678_v28  ;;  %v3097_v41 = vpop.f32.mrf.mxu3  ;;  %v6109_v46 = vld [vmem:[#allocation7_spill] sm:$0xff] }
 0xa5c   : > { %v3176_v48 = vmax.f32 %v5805_v62, %v3097_v41  ;;  %v2534_v28 = vadd.f32 %v5975_v21, %v6109_v46  ;;  %v6111_v41 = vld [vmem:[#allocation8_spill] sm:$0xff] }
 0xa62   : > { %v2679_v42 = vld [vmem:[#allocation2 + $0x230] sm:$0xff] }
 0xa63   : > { %3511 = vmatmul.msk.f32.gmra.mxu3 %vm958_vm11, %v2679_v42  ;;  %v5964_v54 = vpop.f32.mrf.mxu3  ;;  %v6110_v42 = vld [vmem:[#allocation16_spill] sm:$0xff] }
 0xa64   : > { %v3181_v16 = vmax.f32 %v3180_v59, %v6110_v42 }
 0xa66   : > { %v3182_v63 = vmax.f32 %v3181_v16, %v3052_v47 }
 0xa68   : > { %v3183_v11 = vmax.f32 %v3182_v63, %v5955_v50  ;;  %v6115_v50 = vld [vmem:[#allocation13_spill] sm:$0xff] }
 0xa6b   : > { %v5969_v60 = vpop.f32.mrf.mxu3 }
 0xaa0   : > { %v2425_v9 = vpop.xlane.xlu0 %2424 }
 0xaa1   : > { %v2426_v0 = vcvt.f32.s32 %v2425_v9  ;;  %v3184_v9 = vmax.f32 %v3183_v11, %v5964_v54 }
 0xaa3   : > { %v2429_v19 = vadd.s32 %v2428_v7, %v2426_v0  ;;  %v2537_v7 = vadd.f32 %v5975_v21, %v6111_v41 }
 0xaa5   : > { %v2437_v27 = vand.u32 63, %v2429_v19 }
 0xaa7   : > { %vm2445_vm15 = vcmp.eq.s32.totalorder %v4415_v23, %v2437_v27  ;;  %v2519_v23 = vadd.f32 %v5975_v21, %v4917_v55 }
 0xaa8   : > { %v3424_v52 = vsel %vm2445_vm15, 1.0, %v6101_v43 }
 0xaa9   : > { %2470 = vst.msk [vmem:[#allocation2 + $0x238] sm:$0xff] %vm958_vm11, %v3424_v52  ;;  %v6112_v52 = vld [vmem:[#allocation12_spill] sm:$0xff] }
 0xab0   : > { %v2680_v15 = vld [vmem:[#allocation2 + $0x238] sm:$0xff] }
 0xab1   : > { %3512 = vmatmul.msk.f32.gmra.mxu3 %vm958_vm11, %v2680_v15  ;;  %v6113_v15 = vld [vmem:[#allocation17_spill] sm:$0xff] }
 0xab6   : > { %v3106_v18 = vpop.f32.mrf.mxu3 }
 0xab7   : > { %v3137_v43 = vmax.f32 %v3136_v49, %v3106_v18  ;;  %v3186_v49 = vmax.f32 %v6113_v15, %v6112_v52  ;;  %v6114_v18 = vld [vmem:[#allocation18_spill] sm:$0xff] }
 0xab9   : > { %v3194_v17 = vadd.f32 %v3137_v43, %v2519_v23  ;;  %v3187_v23 = vmax.f32 %v3186_v49, %v6114_v18 }
 0xabb   : > { %v3202_v32 = vmax.f32 %v3194_v17, 0.0  ;;  %v3188_v43 = vmax.f32 %v3187_v23, %v6115_v50  ;;  %v3055_v17 = vpop.f32.mrf.mxu2 }
 0xabd   : > { %3210 = vst [vmem:[%s5984_s12] sm:$0xff] %v3202_v32  ;;  %v6116_v32 = vld [vmem:[#allocation19_spill] sm:$0xff] }
 0xabe   : > { %v3109_v20 = vpop.f32.mrf.mxu3  ;;  %v3189_v54 = vmax.f32 %v3188_v43, %v6116_v32 }
 0xabf   : > { %v3145_v26 = vmax.f32 %v3144_v33, %v3109_v20 }
 0xac0   : > { %v3190_v33 = vmax.f32 %v3189_v54, %v3055_v17 }
 0xac1   : > { %v3195_v6 = vadd.f32 %v3145_v26, %v2522_v2 }
 0xac2   : > { %v3191_v20 = vmax.f32 %v3190_v33, %v5960_v4 }
 0xac3   : > { %v3203_v55 = vmax.f32 %v3195_v6, 0.0  ;;  %v6117_v6 = vld [vmem:[#allocation9_spill] sm:$0xff] }
 0xac4   : > { %v3192_v2 = vmax.f32 %v3191_v20, %v5969_v60 }
 0xac5   : > { %3211 = vst [vmem:[%s5984_s12 + $0x8] sm:$0xff] %v3203_v55  ;;  %v2540_v55 = vadd.f32 %v5975_v21, %v6117_v6 }
 0xac6   : > { %v3112_v25 = vpop.f32.mrf.mxu3 }
 0xac7   : > { %v3153_v8 = vmax.f32 %v3152_v10, %v3112_v25 }
 0xac9   : > { %v3196_v24 = vadd.f32 %v3153_v8, %v2525_v22 }
 0xacb   : > { %v3204_v45 = vmax.f32 %v3196_v24, 0.0 }
 0xacd   : > { %3212 = vst [vmem:[%s5984_s12 + $0x10] sm:$0xff] %v3204_v45 }
 0xace   : > { %v3115_v57 = vpop.f32.mrf.mxu3 }
 0xacf   : > { %v3161_v3 = vmax.f32 %v3160_v36, %v3115_v57 }
 0xad1   : > { %v3197_v61 = vadd.f32 %v3161_v3, %v2528_v58 }
 0xad3   : > { %v3205_v30 = vmax.f32 %v3197_v61, 0.0 }
 0xad5   : > { %3213 = vst [vmem:[%s5984_s12 + $0x18] sm:$0xff] %v3205_v30 }
 0xad6   : > { %v3118_v37 = vpop.f32.mrf.mxu3 }
 0xad7   : > { %v3169_v5 = vmax.f32 %v3168_v12, %v3118_v37 }
 0xad9   : > { %v3198_v53 = vadd.f32 %v3169_v5, %v2531_v56 }
 0xadb   : > { %v3206_v38 = vmax.f32 %v3198_v53, 0.0 }
 0xadd   : > { %3214 = vst [vmem:[%s5984_s12 + $0x20] sm:$0xff] %v3206_v38 }
 0xade   : > { %v3121_v13 = vpop.f32.mrf.mxu3 }
 0xadf   : > { %v3177_v44 = vmax.f32 %v3176_v48, %v3121_v13 }
 0xae1   : > { %v3199_v40 = vadd.f32 %v3177_v44, %v2534_v28 }
 0xae3   : > { %v3207_v51 = vmax.f32 %v3199_v40, 0.0 }
 0xae5   : > { %3215 = vst [vmem:[%s5984_s12 + $0x28] sm:$0xff] %v3207_v51 }
 0xae6   : > { %v3124_v62 = vpop.f32.mrf.mxu3 }
 0xae7   : > { %v3185_v0 = vmax.f32 %v3184_v9, %v3124_v62 }
 0xae9   : > { %v3200_v19 = vadd.f32 %v3185_v0, %v2537_v7 }
 0xaeb   : > { %v3208_v27 = vmax.f32 %v3200_v19, 0.0 }
 0xaed   : > { %3216 = vst [vmem:[%s5984_s12 + $0x30] sm:$0xff] %v3208_v27 }
 0xb34   : > { %v3127_v26 = vpop.f32.mrf.mxu3 }
 0xb35   : > { %v3193_v10 = vmax.f32 %v3192_v2, %v3127_v26 }
 0xb37   : > { %v3201_v25 = vadd.f32 %v3193_v10, %v2540_v55 }
 0xb39   : > { %v3209_v22 = vmax.f32 %v3201_v25, 0.0 }
 0xb3b   : > { %3217 = vst [vmem:[%s5984_s12 + $0x38] sm:$0xff] %v3209_v22 }
 0xb3c   : > { %3751 = shalt.err (!%p3748_p5)
}
 0xb3d   : > { %s3805_s10 = smov 128   ;;  %s3806_s12 = smov 8  }
 0xb3e   : > { %3585 = dma.vmem_to_hbm [thread:$0]  (%p3877_p4), %s3234_s17, 1024, %s3236_s24, %s3219_s21, %s3805_s10, %s3805_s10, %s3806_s12  }
 0xb3f PF: > { %p3591_p6 = scmp.ge.s32.totalorder %s3802_s23, 2  ;;  %s3250_s13 = sand.u32 1, %s3782_s18  }
 0xb40   : > { %s3251_s14 = scalar_lea.sflag [#allocation4], %s3250_s13 }
 0xb41   : > { %p3588_p7 = pnand %p3591_p6, %p3884_p8 }
 0xb43   : > { %p3589_p9 = pneg %p3588_p7 }
 0xb45   : > { %3777 = dma.done.wait (%p3589_p9), %s3251_s14, 1024  }
 0xb46   : > { %3779 = vsyncadd (%p3589_p9), %s3251_s14, 4294966272  ;;  %s18_s23 = sadd.s32 1, %s3802_s23   ;;  %s6118_s18 = smov %s3786_s19 }
 0xb47   : > { %p15_p10 = scmp.ge.s32.totalorder %s18_s23, 4   ;;  %s6119_s19 = smov %s3790_s20 }
 0xb48   : > { %s6120_s20 = smov %s3890_s6  ;;  %s6121_s21 = smov %s3798_s22 }
 0xb49   : > { %s6122_s22 = smov %s6124_s26  ;;  %17 = sbr.rel (!%p15_p10) target bundleno = 4 (0x4), region = 86 }
 0xb4e   :  { %3257 = vsyncpa [#allocation4], 1 }
 0xb4f   :  { %3259 = vsyncpa [#allocation4 + $0x1], 1 }

</bundles_post_ra>
